<compile_context>
chip_gen: v7x
topology: tpu7x:2x2x1
jax: 0.10.0
libtpu: 0.0.40
codegen_flags: <defaults>
</compile_context>

<pallas_src>
import jax
import jax.numpy as jnp
from jax.experimental import pallas as pl
from jax.experimental.pallas import tpu as pltpu

EPS = 1e-5  # PyTorch BatchNorm default eps


# ---------------- helpers ----------------

def _round_up(n, m):
    return ((n + m - 1) // m) * m


def _row_tile(total, target):
    """Sublane-axis tile: a multiple of 8 (or the full extent), capped at
    `target` and at ceil(total/2) so a 'parallel' 1-D grid has >= 2 steps when
    feasible (both v7x TensorCores get work even for small batches)."""
    if total <= 8:
        return total
    half = -(-total // 2)          # ceil(total / 2)
    half = -(-half // 8) * 8       # round up to multiple of 8
    tile = min(target, half)
    tile = max(8, (tile // 8) * 8)
    return tile if tile < total else total


# ---------------- Pallas kernels ----------------

def _make_conv_bn_kernel(want_intermediates):
    # conv4 (im2col matmul) + bias -> relu4 -> bn4 (eval stats folded to scale/shift)
    def kernel(p_ref, w_ref, b_ref, s_ref, t_ref, *out_refs):
        conv = jnp.dot(p_ref[...], w_ref[...],
                       preferred_element_type=jnp.float32) + b_ref[...]
        relu = jnp.maximum(conv, 0.0)
        bn = relu * s_ref[...] + t_ref[...]
        if want_intermediates:
            conv_ref, relu_ref, bn_ref = out_refs
            conv_ref[...] = conv.astype(conv_ref.dtype)
            relu_ref[...] = relu.astype(relu_ref.dtype)
        else:
            (bn_ref,) = out_refs
        bn_ref[...] = bn.astype(bn_ref.dtype)
    return kernel


def _fc_full_kernel(x_ref, w5_ref, b5_ref, s5_ref, t5_ref, w6_ref, b6_ref,
                    fc5_ref, relu5_ref, bn5_ref, fc6_ref):
    # fc5 + bias -> relu5 -> bn5 (folded) -> dropout(eval = identity) -> fc6
    fc5 = jnp.dot(x_ref[...], w5_ref[...],
                  preferred_element_type=jnp.float32) + b5_ref[...]
    relu5 = jnp.maximum(fc5, 0.0)
    bn5 = relu5 * s5_ref[...] + t5_ref[...]
    fc6 = jnp.dot(bn5.astype(jnp.bfloat16), w6_ref[...],
                  preferred_element_type=jnp.float32) + b6_ref[...]
    fc5_ref[...] = fc5.astype(fc5_ref.dtype)
    relu5_ref[...] = relu5.astype(relu5_ref.dtype)
    bn5_ref[...] = bn5.astype(bn5_ref.dtype)
    fc6_ref[...] = fc6


def _fc_fast_kernel(x_ref, w5_ref, b5_ref, w6f_ref, b6f_ref, fc6_ref):
    # fast path: bn5 + b6 folded offline into (w6f, b6f); dropout eval = identity.
    fc5 = jnp.dot(x_ref[...], w5_ref[...],
                  preferred_element_type=jnp.float32) + b5_ref[...]
    relu5 = jnp.maximum(fc5, 0.0)
    fc6_ref[...] = jnp.dot(relu5.astype(jnp.bfloat16), w6f_ref[...],
                           preferred_element_type=jnp.float32) + b6f_ref[...]


# ---------------- offline parameter preparation (outside jit) ----------------

def prepare_params(params, H, W, eps=EPS):
    """Fold BN into scale/shift and permute/pad weights into kernel-ready layouts."""
    conv_w = params['conv4_w']                       # (Cout, Cin, KH, KW)
    Cout, Cin, KH, KW = conv_w.shape
    Ho, Wo = H - KH + 1, W - KW + 1
    hidden, k5 = params['fc5_w'].shape               # (300, Cout*Ho*Wo)
    assert k5 == Cout * Ho * Wo
    num_classes = params['fc6_w'].shape[0]
    pad_h = _round_up(hidden, 128)                   # 300 -> 384 (lane-dense)
    pad_c = _round_up(num_classes, 128)              # 10  -> 128 (lane-dense)

    prep = {}
    # conv weight: (Cout,Cin,KH,KW) -> rows ordered (kh, kw, ci), bf16.
    prep['w4'] = (jnp.transpose(conv_w, (2, 3, 1, 0))
                  .reshape(KH * KW * Cin, Cout).astype(jnp.bfloat16))
    prep['b4'] = params['conv4_b'].reshape(1, Cout).astype(jnp.float32)
    s4 = params['bn4_gamma'] * jax.lax.rsqrt(params['bn4_var'] + eps)
    prep['s4'] = s4.reshape(1, Cout).astype(jnp.float32)
    prep['t4'] = (params['bn4_beta'] - params['bn4_mean'] * s4
                  ).reshape(1, Cout).astype(jnp.float32)

    # fc5 weight: torch columns are channel-major (c, ho, wo); permute rows to
    # NHWC order (ho, wo, c) so the conv kernel's output feeds fc5 directly,
    # then zero-pad the output width 300 -> 384 for lane-dense stores.
    w5 = params['fc5_w'].reshape(hidden, Cout, Ho, Wo)
    w5 = jnp.transpose(w5, (2, 3, 1, 0)).reshape(Ho * Wo * Cout, hidden)
    prep['w5'] = jnp.pad(w5, ((0, 0), (0, pad_h - hidden))).astype(jnp.bfloat16)
    prep['b5'] = jnp.pad(params['fc5_b'], (0, pad_h - hidden)
                         ).reshape(1, pad_h).astype(jnp.float32)
    s5 = params['bn5_gamma'] * jax.lax.rsqrt(params['bn5_var'] + eps)
    t5 = params['bn5_beta'] - params['bn5_mean'] * s5
    prep['s5'] = jnp.pad(s5, (0, pad_h - hidden)).reshape(1, pad_h).astype(jnp.float32)
    prep['t5'] = jnp.pad(t5, (0, pad_h - hidden)).reshape(1, pad_h).astype(jnp.float32)

    # fc6 weight: (num_classes, 300) -> (384, 128) zero-padded, bf16.
    w6 = params['fc6_w'].T                           # (hidden, num_classes)
    prep['w6'] = jnp.pad(w6, ((0, pad_h - hidden), (0, pad_c - num_classes))
                         ).astype(jnp.bfloat16)
    prep['b6'] = jnp.pad(params['fc6_b'], (0, pad_c - num_classes)
                         ).reshape(1, pad_c).astype(jnp.float32)

    # Fast-path fusion: bn5 folded into fc6.
    #   fc6 = (relu5*s5 + t5) @ w6 + b6 = relu5 @ (s5[:,None]*w6) + (t5 @ w6 + b6)
    w6f = s5[:, None] * w6
    b6f = t5 @ w6 + params['fc6_b']
    prep['w6f'] = jnp.pad(w6f, ((0, pad_h - hidden), (0, pad_c - num_classes))
                          ).astype(jnp.bfloat16)
    prep['b6f'] = jnp.pad(b6f, (0, pad_c - num_classes)
                          ).reshape(1, pad_c).astype(jnp.float32)
    return prep


# ---------------- forward wrapper ----------------

def net_forward(x_nchw, prep, *, hidden, num_classes, want_intermediates=True):
    N, Cin, H, W = x_nchw.shape
    KH = KW = 3
    Ho, Wo = H - KH + 1, W - KW + 1
    K = prep['w4'].shape[0]            # KH*KW*Cin
    Cout = prep['w4'].shape[1]
    K5 = prep['w5'].shape[0]           # Ho*Wo*Cout
    pad_h = prep['w5'].shape[1]
    pad_c = prep['w6'].shape[1]
    M = N * Ho * Wo

    cparams = pltpu.CompilerParams(dimension_semantics=("parallel",),
                                   vmem_limit_bytes=32 * 1024 * 1024)
    row_spec = lambda width: pl.BlockSpec((1, width), lambda i: (0, 0))

    # ---- wrapper glue: NCHW -> NHWC (bf16) and im2col patches ----
    # (accepted 9x patch read amplification; built in bf16 to halve footprint)
    x_nhwc = jnp.transpose(x_nchw, (0, 2, 3, 1)).astype(jnp.bfloat16)
    patches = jnp.concatenate(
        [x_nhwc[:, kh:kh + Ho, kw:kw + Wo, :]
         for kh in range(KH) for kw in range(KW)],
        axis=-1).reshape(M, K)

    # ---- stage 1: conv4 matmul + bias + ReLU + folded bn4, tiled over rows ----
    tile_m = _row_tile(M, 1024)
    conv_out_spec = pl.BlockSpec((tile_m, Cout), lambda i: (i, 0))
    conv_out_shape = jax.ShapeDtypeStruct((M, Cout), jnp.bfloat16)   # bf16 handoff
    n_conv_out = 3 if want_intermediates else 1
    conv_outs = pl.pallas_call(
        _make_conv_bn_kernel(want_intermediates),
        grid=(pl.cdiv(M, tile_m),),
        in_specs=[
            pl.BlockSpec((tile_m, K), lambda i: (i, 0)),   # patch tiles, double-buffered
            pl.BlockSpec((K, Cout), lambda i: (0, 0)),     # resident weight
            row_spec(Cout), row_spec(Cout), row_spec(Cout),
        ],
        out_specs=(conv_out_spec,) * n_conv_out,
        out_shape=(conv_out_shape,) * n_conv_out,
        compiler_params=cparams,
    )(patches, prep['w4'], prep['b4'], prep['s4'], prep['t4'])
    if want_intermediates:
        conv_flat, relu_flat, bn_flat = conv_outs
    else:
        (bn_flat,) = conv_outs

    # ---- stage 2: fc5 -> relu5 -> bn5 -> fc6, tiled over batch rows ----
    # bn_flat rows are already NHWC-ordered, bf16, and w5 was permuted to match,
    # so no NCHW transpose / f32->bf16 cast sits on the compute path.
    flat_nhwc = bn_flat.reshape(N, K5)
    tile_b = _row_tile(N, 512)
    x_spec = pl.BlockSpec((tile_b, K5), lambda i: (i, 0))
    w5_spec = pl.BlockSpec((K5, pad_h), lambda i: (0, 0))    # resident w5 (bf16)
    w6_spec = pl.BlockSpec((pad_h, pad_c), lambda i: (0, 0))
    fcC_spec = pl.BlockSpec((tile_b, pad_c), lambda i: (i, 0))
    fcC_shape = jax.ShapeDtypeStruct((N, pad_c), jnp.float32)

    if want_intermediates:
        fcH_spec = pl.BlockSpec((tile_b, pad_h), lambda i: (i, 0))
        fcH_shape = jax.ShapeDtypeStruct((N, pad_h), jnp.bfloat16)
        fc_outs = pl.pallas_call(
            _fc_full_kernel,
            grid=(pl.cdiv(N, tile_b),),
            in_specs=[x_spec, w5_spec, row_spec(pad_h), row_spec(pad_h),
                      row_spec(pad_h), w6_spec, row_spec(pad_c)],
            out_specs=(fcH_spec, fcH_spec, fcH_spec, fcC_spec),
            out_shape=(fcH_shape, fcH_shape, fcH_shape, fcC_shape),
            compiler_params=cparams,
        )(flat_nhwc, prep['w5'], prep['b5'], prep['s5'], prep['t5'],
          prep['w6'], prep['b6'])
    else:
        fc_outs = pl.pallas_call(
            _fc_fast_kernel,
            grid=(pl.cdiv(N, tile_b),),
            in_specs=[x_spec, w5_spec, row_spec(pad_h), w6_spec, row_spec(pad_c)],
            out_specs=(fcC_spec,),
            out_shape=(fcC_shape,),
            compiler_params=cparams,
        )(flat_nhwc, prep['w5'], prep['b5'], prep['w6f'], prep['b6f'])

    # ---- wrapper glue: parity outputs in PyTorch layouts (f32) ----
    def to_nchw_f32(a):
        return jnp.transpose(a.reshape(N, Ho, Wo, Cout).astype(jnp.float32),
                             (0, 3, 1, 2))

    bn4 = to_nchw_f32(bn_flat)
    out = {'bn4': bn4}
    if want_intermediates:
        fc5p, relu5p, bn5p, fc6p = fc_outs
        out['conv4'] = to_nchw_f32(conv_flat)
        out['relu4'] = to_nchw_f32(relu_flat)
        out['flat'] = bn4.reshape(N, Cout * Ho * Wo)     # torch channel-major .view
        out['fc5'] = fc5p[:, :hidden].astype(jnp.float32)
        out['relu5'] = relu5p[:, :hidden].astype(jnp.float32)
        out['bn5'] = bn5p[:, :hidden].astype(jnp.float32)
        out['fc6'] = fc6p[:, :num_classes]
    else:
        (fc6p,) = fc_outs
        out['fc6'] = fc6p[:, :num_classes]
    return out


# ---------------- pure-JAX f32 reference (eval mode) ----------------

def reference_forward(x, params, eps=EPS):
    conv = jax.lax.conv_general_dilated(
        x, params['conv4_w'], (1, 1), 'VALID',
        dimension_numbers=('NCHW', 'OIHW', 'NCHW')) \
        + params['conv4_b'].reshape(1, -1, 1, 1)
    relu4 = jnp.maximum(conv, 0.0)
    s4 = params['bn4_gamma'] * jax.lax.rsqrt(params['bn4_var'] + eps)
    t4 = params['bn4_beta'] - params['bn4_mean'] * s4
    bn4 = relu4 * s4.reshape(1, -1, 1, 1) + t4.reshape(1, -1, 1, 1)
    flat = bn4.reshape(x.shape[0], -1)
    fc5 = flat @ params['fc5_w'].T + params['fc5_b']
    relu5 = jnp.maximum(fc5, 0.0)
    s5 = params['bn5_gamma'] * jax.lax.rsqrt(params['bn5_var'] + eps)
    t5 = params['bn5_beta'] - params['bn5_mean'] * s5
    bn5 = relu5 * s5 + t5
    fc6 = bn5 @ params['fc6_w'].T + params['fc6_b']
    return {'conv4': conv, 'relu4': relu4, 'bn4': bn4, 'flat': flat,
            'fc5': fc5, 'relu5': relu5, 'bn5': bn5, 'fc6': fc6}


# ---------------- deterministic parameter init (torch layouts) ----------------

def init_params(key, conv_output_size, num_classes=10):
    ks = jax.random.split(key, 16)
    p = {}
    p['conv4_w'] = 0.02 * jax.random.normal(ks[0], (256, 192, 3, 3), jnp.float32)
    p['conv4_b'] = 0.02 * jax.random.normal(ks[1], (256,), jnp.float32)
    p['bn4_gamma'] = 1.0 + 0.1 * jax.random.normal(ks[2], (256,), jnp.float32)
    p['bn4_beta'] = 0.1 * jax.random.normal(ks[3], (256,), jnp.float32)
    p['bn4_mean'] = 0.1 * jax.random.normal(ks[4], (256,), jnp.float32)
    p['bn4_var'] = jax.random.uniform(ks[5], (256,), jnp.float32, 0.5, 1.5)
    p['fc5_w'] = 0.02 * jax.random.normal(ks[6], (300, conv_output_size), jnp.float32)
    p['fc5_b'] = 0.02 * jax.random.normal(ks[7], (300,), jnp.float32)
    p['bn5_gamma'] = 1.0 + 0.1 * jax.random.normal(ks[8], (300,), jnp.float32)
    p['bn5_beta'] = 0.1 * jax.random.normal(ks[9], (300,), jnp.float32)
    p['bn5_mean'] = 0.1 * jax.random.normal(ks[10], (300,), jnp.float32)
    p['bn5_var'] = jax.random.uniform(ks[11], (300,), jnp.float32, 0.5, 1.5)
    p['fc6_w'] = 0.02 * jax.random.normal(ks[12], (num_classes, 300), jnp.float32)
    p['fc6_b'] = 0.02 * jax.random.normal(ks[13], (num_classes,), jnp.float32)
    return p


def _assert_close(name, got, want, atol):
    err = float(jnp.max(jnp.abs(got.astype(jnp.float32) - want.astype(jnp.float32))))
    assert err <= atol, f"{name}: max abs err {err} > atol {atol}"


if __name__ == "__main__":
    key = jax.random.PRNGKey(0)
    kx, kp = jax.random.split(key)

    # Net fixes Cin=192, Cout=256, kernel 3x3; small batch/spatial for the demo.
    N, Cin, H, W = 2, 192, 6, 6
    KH = KW = 3
    Ho, Wo = H - KH + 1, W - KW + 1
    conv_output_size = 256 * Ho * Wo          # 4096
    NUM_CLASSES = 10
    HIDDEN = 300

    x = jax.random.normal(kx, (N, Cin, H, W), jnp.float32)
    params = init_params(kp, conv_output_size, NUM_CLASSES)
    prep = prepare_params(params, H, W)       # once, outside the jitted forward

    fwd = jax.jit(net_forward,
                  static_argnames=('hidden', 'num_classes', 'want_intermediates'))

    # Full parity dict (matches the PyTorch forward contract).
    out = fwd(x, prep, hidden=HIDDEN, num_classes=NUM_CLASSES)
    out = jax.tree_util.tree_map(jax.block_until_ready, out)

    assert out['conv4'].shape == (N, 256, Ho, Wo)
    assert out['relu4'].shape == (N, 256, Ho, Wo)
    assert out['bn4'].shape == (N, 256, Ho, Wo)
    assert out['flat'].shape == (N, conv_output_size)
    assert out['fc5'].shape == (N, HIDDEN)
    assert out['relu5'].shape == (N, HIDDEN)
    assert out['bn5'].shape == (N, HIDDEN)
    assert out['fc6'].shape == (N, NUM_CLASSES)

    # Parity vs a pure-JAX f32 reference (bf16 operands / f32 accumulation tolerance).
    ref = jax.jit(reference_forward)(x, params)
    ref = jax.tree_util.tree_map(jax.block_until_ready, ref)
    for name, tol in [('conv4', 0.1), ('relu4', 0.1), ('bn4', 0.1), ('flat', 0.1),
                      ('fc5', 0.15), ('relu5', 0.15), ('bn5', 0.15), ('fc6', 0.15)]:
        _assert_close(name, out[name], ref[name], tol)

    # Fast inference path: only bn4 + class scores; bn5/b6 folded into fc6.
    fast = fwd(x, prep, hidden=HIDDEN, num_classes=NUM_CLASSES,
               want_intermediates=False)
    fast = jax.tree_util.tree_map(jax.block_until_ready, fast)
    assert fast['fc6'].shape == (N, NUM_CLASSES)
    assert fast['bn4'].shape == (N, 256, Ho, Wo)
    _assert_close('fc6_fast_vs_ref', fast['fc6'], ref['fc6'], 0.15)
    _assert_close('fc6_fast_vs_full', fast['fc6'], out['fc6'], 0.08)

    print("KERNEL_OK")
</pallas_src>

<mosaic_0001>
module attributes {stable_mosaic.version = 11 : i64} {
  func.func @kernel(%arg0: i32, %arg1: memref<16x1728xbf16, #tpu.memory_space<vmem>>, %arg2: memref<1728x256xbf16, #tpu.memory_space<vmem>>, %arg3: memref<1x256xf32, #tpu.memory_space<vmem>>, %arg4: memref<1x256xf32, #tpu.memory_space<vmem>>, %arg5: memref<1x256xf32, #tpu.memory_space<vmem>>, %arg6: memref<16x256xbf16, #tpu.memory_space<vmem>>, %arg7: memref<16x256xbf16, #tpu.memory_space<vmem>>, %arg8: memref<16x256xbf16, #tpu.memory_space<vmem>>) attributes {dimension_semantics = [#tpu.dimension_semantics<parallel>], iteration_bounds = array<i64: 2>, scalar_prefetch = 0 : i64, scratch_operands = 0 : i64, tpu.core_type = #tpu.core_type<tc>, window_params = [{transform_indices = @transform_0, window_bounds = array<i64: 16, 1728>}, {pipeline_mode = #tpu.pipeline_mode<synchronous>, transform_indices = @transform_1, window_bounds = array<i64: 1728, 256>}, {pipeline_mode = #tpu.pipeline_mode<synchronous>, transform_indices = @transform_2, window_bounds = array<i64: 1, 256>}, {pipeline_mode = #tpu.pipeline_mode<synchronous>, transform_indices = @transform_3, window_bounds = array<i64: 1, 256>}, {pipeline_mode = #tpu.pipeline_mode<synchronous>, transform_indices = @transform_4, window_bounds = array<i64: 1, 256>}, {transform_indices = @transform_5, window_bounds = array<i64: 16, 256>}, {transform_indices = @transform_6, window_bounds = array<i64: 16, 256>}, {transform_indices = @transform_7, window_bounds = array<i64: 16, 256>}]} {
    %c0 = arith.constant 0 : index
    %c0_0 = arith.constant 0 : index
    %0 = vector.load %arg1[%c0, %c0_0] : memref<16x1728xbf16, #tpu.memory_space<vmem>>, vector<16x1728xbf16>
    %c0_1 = arith.constant 0 : index
    %c0_2 = arith.constant 0 : index
    %1 = vector.load %arg2[%c0_1, %c0_2] : memref<1728x256xbf16, #tpu.memory_space<vmem>>, vector<1728x256xbf16>
    %cst = arith.constant dense<0.000000e+00> : vector<16x256xf32>
    %2 = tpu.matmul %0, %1, %cst {dimension_numbers = #tpu.dot_dimension_numbers<[1], [0], [0], [1], [0, 0, 1, 1], [], []>} : vector<16x1728xbf16>, vector<1728x256xbf16>, vector<16x256xf32> -> vector<16x256xf32>
    %c0_3 = arith.constant 0 : index
    %c0_4 = arith.constant 0 : index
    %3 = vector.load %arg3[%c0_3, %c0_4] : memref<1x256xf32, #tpu.memory_space<vmem>>, vector<1x256xf32>
    %4 = vector.broadcast %3 : vector<1x256xf32> to vector<16x256xf32>
    %5 = arith.addf %2, %4 : vector<16x256xf32>
    %cst_5 = arith.constant 0.000000e+00 : f32
    %6 = vector.broadcast %cst_5 : f32 to vector<16x256xf32>
    %7 = arith.maximumf %5, %6 : vector<16x256xf32>
    %c0_6 = arith.constant 0 : index
    %c0_7 = arith.constant 0 : index
    %8 = vector.load %arg4[%c0_6, %c0_7] : memref<1x256xf32, #tpu.memory_space<vmem>>, vector<1x256xf32>
    %9 = vector.broadcast %8 : vector<1x256xf32> to vector<16x256xf32>
    %10 = arith.mulf %7, %9 : vector<16x256xf32>
    %c0_8 = arith.constant 0 : index
    %c0_9 = arith.constant 0 : index
    %11 = vector.load %arg5[%c0_8, %c0_9] : memref<1x256xf32, #tpu.memory_space<vmem>>, vector<1x256xf32>
    %12 = vector.broadcast %11 : vector<1x256xf32> to vector<16x256xf32>
    %13 = arith.addf %10, %12 : vector<16x256xf32>
    %14 = arith.truncf %5 : vector<16x256xf32> to vector<16x256xbf16>
    %c0_10 = arith.constant 0 : index
    %c0_11 = arith.constant 0 : index
    %15 = vector.load %arg6[%c0_10, %c0_11] : memref<16x256xbf16, #tpu.memory_space<vmem>>, vector<16x256xbf16>
    tpu.vector_store %arg6[%c0_10, %c0_11], %14 {strides = array<i32>} : memref<16x256xbf16, #tpu.memory_space<vmem>>, vector<16x256xbf16>,
    %16 = arith.truncf %7 : vector<16x256xf32> to vector<16x256xbf16>
    %c0_12 = arith.constant 0 : index
    %c0_13 = arith.constant 0 : index
    %17 = vector.load %arg7[%c0_12, %c0_13] : memref<16x256xbf16, #tpu.memory_space<vmem>>, vector<16x256xbf16>
    tpu.vector_store %arg7[%c0_12, %c0_13], %16 {strides = array<i32>} : memref<16x256xbf16, #tpu.memory_space<vmem>>, vector<16x256xbf16>,
    %18 = arith.truncf %13 : vector<16x256xf32> to vector<16x256xbf16>
    %c0_14 = arith.constant 0 : index
    %c0_15 = arith.constant 0 : index
    %19 = vector.load %arg8[%c0_14, %c0_15] : memref<16x256xbf16, #tpu.memory_space<vmem>>, vector<16x256xbf16>
    tpu.vector_store %arg8[%c0_14, %c0_15], %18 {strides = array<i32>} : memref<16x256xbf16, #tpu.memory_space<vmem>>, vector<16x256xbf16>,
    return
  }
  func.func @transform_0(%arg0: i32) -> (i32, i32) {
    %c0_i32 = arith.constant 0 : i32
    %c0_i32_0 = arith.constant 0 : i32
    return %arg0, %c0_i32 : i32, i32
  }
  func.func @transform_1(%arg0: i32) -> (i32, i32) {
    %c0_i32 = arith.constant 0 : i32
    %c0_i32_0 = arith.constant 0 : i32
    %c0_i32_1 = arith.constant 0 : i32
    return %c0_i32, %c0_i32_0 : i32, i32
  }
  func.func @transform_2(%arg0: i32) -> (i32, i32) {
    %c0_i32 = arith.constant 0 : i32
    %c0_i32_0 = arith.constant 0 : i32
    %c0_i32_1 = arith.constant 0 : i32
    return %c0_i32, %c0_i32_0 : i32, i32
  }
  func.func @transform_3(%arg0: i32) -> (i32, i32) {
    %c0_i32 = arith.constant 0 : i32
    %c0_i32_0 = arith.constant 0 : i32
    %c0_i32_1 = arith.constant 0 : i32
    return %c0_i32, %c0_i32_0 : i32, i32
  }
  func.func @transform_4(%arg0: i32) -> (i32, i32) {
    %c0_i32 = arith.constant 0 : i32
    %c0_i32_0 = arith.constant 0 : i32
    %c0_i32_1 = arith.constant 0 : i32
    return %c0_i32, %c0_i32_0 : i32, i32
  }
  func.func @transform_5(%arg0: i32) -> (i32, i32) {
    %c0_i32 = arith.constant 0 : i32
    %c0_i32_0 = arith.constant 0 : i32
    return %arg0, %c0_i32 : i32, i32
  }
  func.func @transform_6(%arg0: i32) -> (i32, i32) {
    %c0_i32 = arith.constant 0 : i32
    %c0_i32_0 = arith.constant 0 : i32
    return %arg0, %c0_i32 : i32, i32
  }
  func.func @transform_7(%arg0: i32) -> (i32, i32) {
    %c0_i32 = arith.constant 0 : i32
    %c0_i32_0 = arith.constant 0 : i32
    return %arg0, %c0_i32 : i32, i32
  }
}

module attributes {stable_mosaic.version = 11 : i64} {
  func.func @_fc_full_kernel(%arg0: i32, %arg1: memref<2x4096xbf16, #tpu.memory_space<vmem>>, %arg2: memref<4096x384xbf16, #tpu.memory_space<vmem>>, %arg3: memref<1x384xf32, #tpu.memory_space<vmem>>, %arg4: memref<1x384xf32, #tpu.memory_space<vmem>>, %arg5: memref<1x384xf32, #tpu.memory_space<vmem>>, %arg6: memref<384x128xbf16, #tpu.memory_space<vmem>>, %arg7: memref<1x128xf32, #tpu.memory_space<vmem>>, %arg8: memref<2x384xbf16, #tpu.memory_space<vmem>>, %arg9: memref<2x384xbf16, #tpu.memory_space<vmem>>, %arg10: memref<2x384xbf16, #tpu.memory_space<vmem>>, %arg11: memref<2x128xf32, #tpu.memory_space<vmem>>) attributes {dimension_semantics = [#tpu.dimension_semantics<parallel>], iteration_bounds = array<i64: 1>, scalar_prefetch = 0 : i64, scratch_operands = 0 : i64, tpu.core_type = #tpu.core_type<tc>, window_params = [{transform_indices = @transform_0, window_bounds = array<i64: 2, 4096>}, {pipeline_mode = #tpu.pipeline_mode<synchronous>, transform_indices = @transform_1, window_bounds = array<i64: 4096, 384>}, {pipeline_mode = #tpu.pipeline_mode<synchronous>, transform_indices = @transform_2, window_bounds = array<i64: 1, 384>}, {pipeline_mode = #tpu.pipeline_mode<synchronous>, transform_indices = @transform_3, window_bounds = array<i64: 1, 384>}, {pipeline_mode = #tpu.pipeline_mode<synchronous>, transform_indices = @transform_4, window_bounds = array<i64: 1, 384>}, {pipeline_mode = #tpu.pipeline_mode<synchronous>, transform_indices = @transform_5, window_bounds = array<i64: 384, 128>}, {pipeline_mode = #tpu.pipeline_mode<synchronous>, transform_indices = @transform_6, window_bounds = array<i64: 1, 128>}, {transform_indices = @transform_7, window_bounds = array<i64: 2, 384>}, {transform_indices = @transform_8, window_bounds = array<i64: 2, 384>}, {transform_indices = @transform_9, window_bounds = array<i64: 2, 384>}, {transform_indices = @transform_10, window_bounds = array<i64: 2, 128>}]} {
    %c0 = arith.constant 0 : index
    %c0_0 = arith.constant 0 : index
    %0 = vector.load %arg1[%c0, %c0_0] : memref<2x4096xbf16, #tpu.memory_space<vmem>>, vector<2x4096xbf16>
    %c0_1 = arith.constant 0 : index
    %c0_2 = arith.constant 0 : index
    %1 = vector.load %arg2[%c0_1, %c0_2] : memref<4096x384xbf16, #tpu.memory_space<vmem>>, vector<4096x384xbf16>
    %cst = arith.constant dense<0.000000e+00> : vector<2x384xf32>
    %2 = tpu.matmul %0, %1, %cst {dimension_numbers = #tpu.dot_dimension_numbers<[1], [0], [0], [1], [0, 0, 1, 1], [], []>} : vector<2x4096xbf16>, vector<4096x384xbf16>, vector<2x384xf32> -> vector<2x384xf32>
    %c0_3 = arith.constant 0 : index
    %c0_4 = arith.constant 0 : index
    %3 = vector.load %arg3[%c0_3, %c0_4] : memref<1x384xf32, #tpu.memory_space<vmem>>, vector<1x384xf32>
    %4 = vector.broadcast %3 : vector<1x384xf32> to vector<2x384xf32>
    %5 = arith.addf %2, %4 : vector<2x384xf32>
    %cst_5 = arith.constant 0.000000e+00 : f32
    %6 = vector.broadcast %cst_5 : f32 to vector<2x384xf32>
    %7 = arith.maximumf %5, %6 : vector<2x384xf32>
    %c0_6 = arith.constant 0 : index
    %c0_7 = arith.constant 0 : index
    %8 = vector.load %arg4[%c0_6, %c0_7] : memref<1x384xf32, #tpu.memory_space<vmem>>, vector<1x384xf32>
    %9 = vector.broadcast %8 : vector<1x384xf32> to vector<2x384xf32>
    %10 = arith.mulf %7, %9 : vector<2x384xf32>
    %c0_8 = arith.constant 0 : index
    %c0_9 = arith.constant 0 : index
    %11 = vector.load %arg5[%c0_8, %c0_9] : memref<1x384xf32, #tpu.memory_space<vmem>>, vector<1x384xf32>
    %12 = vector.broadcast %11 : vector<1x384xf32> to vector<2x384xf32>
    %13 = arith.addf %10, %12 : vector<2x384xf32>
    %14 = arith.truncf %13 : vector<2x384xf32> to vector<2x384xbf16>
    %c0_10 = arith.constant 0 : index
    %c0_11 = arith.constant 0 : index
    %15 = vector.load %arg6[%c0_10, %c0_11] : memref<384x128xbf16, #tpu.memory_space<vmem>>, vector<384x128xbf16>
    %cst_12 = arith.constant dense<0.000000e+00> : vector<2x128xf32>
    %16 = tpu.matmul %14, %15, %cst_12 {dimension_numbers = #tpu.dot_dimension_numbers<[1], [0], [0], [1], [0, 0, 1, 1], [], []>} : vector<2x384xbf16>, vector<384x128xbf16>, vector<2x128xf32> -> vector<2x128xf32>
    %c0_13 = arith.constant 0 : index
    %c0_14 = arith.constant 0 : index
    %17 = vector.load %arg7[%c0_13, %c0_14] : memref<1x128xf32, #tpu.memory_space<vmem>>, vector<1x128xf32>
    %18 = vector.broadcast %17 : vector<1x128xf32> to vector<2x128xf32>
    %19 = arith.addf %16, %18 : vector<2x128xf32>
    %20 = arith.truncf %5 : vector<2x384xf32> to vector<2x384xbf16>
    %c0_15 = arith.constant 0 : index
    %c0_16 = arith.constant 0 : index
    %21 = vector.load %arg8[%c0_15, %c0_16] : memref<2x384xbf16, #tpu.memory_space<vmem>>, vector<2x384xbf16>
    tpu.vector_store %arg8[%c0_15, %c0_16], %20 {strides = array<i32>} : memref<2x384xbf16, #tpu.memory_space<vmem>>, vector<2x384xbf16>,
    %22 = arith.truncf %7 : vector<2x384xf32> to vector<2x384xbf16>
    %c0_17 = arith.constant 0 : index
    %c0_18 = arith.constant 0 : index
    %23 = vector.load %arg9[%c0_17, %c0_18] : memref<2x384xbf16, #tpu.memory_space<vmem>>, vector<2x384xbf16>
    tpu.vector_store %arg9[%c0_17, %c0_18], %22 {strides = array<i32>} : memref<2x384xbf16, #tpu.memory_space<vmem>>, vector<2x384xbf16>,
    %24 = arith.truncf %13 : vector<2x384xf32> to vector<2x384xbf16>
    %c0_19 = arith.constant 0 : index
    %c0_20 = arith.constant 0 : index
    %25 = vector.load %arg10[%c0_19, %c0_20] : memref<2x384xbf16, #tpu.memory_space<vmem>>, vector<2x384xbf16>
    tpu.vector_store %arg10[%c0_19, %c0_20], %24 {strides = array<i32>} : memref<2x384xbf16, #tpu.memory_space<vmem>>, vector<2x384xbf16>,
    %c0_21 = arith.constant 0 : index
    %c0_22 = arith.constant 0 : index
    %26 = vector.load %arg11[%c0_21, %c0_22] : memref<2x128xf32, #tpu.memory_space<vmem>>, vector<2x128xf32>
    tpu.vector_store %arg11[%c0_21, %c0_22], %19 {strides = array<i32>} : memref<2x128xf32, #tpu.memory_space<vmem>>, vector<2x128xf32>,
    return
  }
  func.func @transform_0(%arg0: i32) -> (i32, i32) {
    %c0_i32 = arith.constant 0 : i32
    %c0_i32_0 = arith.constant 0 : i32
    return %arg0, %c0_i32 : i32, i32
  }
  func.func @transform_1(%arg0: i32) -> (i32, i32) {
    %c0_i32 = arith.constant 0 : i32
    %c0_i32_0 = arith.constant 0 : i32
    %c0_i32_1 = arith.constant 0 : i32
    return %c0_i32, %c0_i32_0 : i32, i32
  }
  func.func @transform_2(%arg0: i32) -> (i32, i32) {
    %c0_i32 = arith.constant 0 : i32
    %c0_i32_0 = arith.constant 0 : i32
    %c0_i32_1 = arith.constant 0 : i32
    return %c0_i32, %c0_i32_0 : i32, i32
  }
  func.func @transform_3(%arg0: i32) -> (i32, i32) {
    %c0_i32 = arith.constant 0 : i32
    %c0_i32_0 = arith.constant 0 : i32
    %c0_i32_1 = arith.constant 0 : i32
    return %c0_i32, %c0_i32_0 : i32, i32
  }
  func.func @transform_4(%arg0: i32) -> (i32, i32) {
    %c0_i32 = arith.constant 0 : i32
    %c0_i32_0 = arith.constant 0 : i32
    %c0_i32_1 = arith.constant 0 : i32
    return %c0_i32, %c0_i32_0 : i32, i32
  }
  func.func @transform_5(%arg0: i32) -> (i32, i32) {
    %c0_i32 = arith.constant 0 : i32
    %c0_i32_0 = arith.constant 0 : i32
    %c0_i32_1 = arith.constant 0 : i32
    return %c0_i32, %c0_i32_0 : i32, i32
  }
  func.func @transform_6(%arg0: i32) -> (i32, i32) {
    %c0_i32 = arith.constant 0 : i32
    %c0_i32_0 = arith.constant 0 : i32
    %c0_i32_1 = arith.constant 0 : i32
    return %c0_i32, %c0_i32_0 : i32, i32
  }
  func.func @transform_7(%arg0: i32) -> (i32, i32) {
    %c0_i32 = arith.constant 0 : i32
    %c0_i32_0 = arith.constant 0 : i32
    return %arg0, %c0_i32 : i32, i32
  }
  func.func @transform_8(%arg0: i32) -> (i32, i32) {
    %c0_i32 = arith.constant 0 : i32
    %c0_i32_0 = arith.constant 0 : i32
    return %arg0, %c0_i32 : i32, i32
  }
  func.func @transform_9(%arg0: i32) -> (i32, i32) {
    %c0_i32 = arith.constant 0 : i32
    %c0_i32_0 = arith.constant 0 : i32
    return %arg0, %c0_i32 : i32, i32
  }
  func.func @transform_10(%arg0: i32) -> (i32, i32) {
    %c0_i32 = arith.constant 0 : i32
    %c0_i32_0 = arith.constant 0 : i32
    return %arg0, %c0_i32 : i32, i32
  }
}

</mosaic_0001>

<bundles_post_ra>
// kernel: net_forward.2
= control target key start
LH: loop header
LB: loop body
LE: loop exit
PB: predicated region body
PF: predicated region fallthrough
CT: control target
= control target key end

     0   :  { %13 = vsyncpa [#allocation3], 0  ;;  %s3376_s0 = inlined_call_operand.vmem [shape: bf16[32,1728], index: 0, kind: input, shape index: {}]   ;;  %s3377_s1 = inlined_call_operand.hbm [shape: bf16[1728,256], index: 1, kind: input, shape index: {}]   ;;  %s3378_s2 = inlined_call_operand.hbm [shape: f32[1,256], index: 2, kind: input, shape index: {}]   ;;  %s3379_s3 = inlined_call_operand.hbm [shape: f32[1,256], index: 3, kind: input, shape index: {}]   ;;  %s3380_s4 = inlined_call_operand.hbm [shape: f32[1,256], index: 4, kind: input, shape index: {}]   ;;  %s3381_s5 = inlined_call_operand.vmem [shape: bf16[32,256], index: 5, kind: output, shape index: {0}]   ;;  %s3382_s6 = inlined_call_operand.vmem [shape: bf16[32,256], index: 6, kind: output, shape index: {1}]   ;;  %s3383_s7 = inlined_call_operand.vmem [shape: bf16[32,256], index: 7, kind: output, shape index: {2}]  }
   0x1   :  { %14 = vsyncpa [#allocation5], 0 }
   0x2   :  { %15 = vsyncpa [#allocation8], 0  ;;  %s3192_s24 = smov 0  }
   0x3 LB: > { %s3146_s25 = smov [#allocation4]   ;;  %s2317_s27 = sadd.s32 4294967295, %s3144_s24   ;;  %s3144_s24 = sphi %s3192_s24, %s21_s24  }
   0x4   : > { %s240_s26 = sshll.u32 %s3146_s25, 4  ;;  %p2319_p0 = scmp.ge.s32.totalorder %s3144_s24, 1  ;;  %s3206_s26 = int_to_ptr.vmem [resolvable:$true] %s240_s26 }
   0x5   : > { %p214_p1 = scmp.lt.s32.totalorder %s3144_s24, 3  ;;  %p3202_p2 = scmp.eq.s32.totalorder %s2317_s27, 0 }
   0x6   : > { %s3147_s30 = smov [#allocation2]   ;;  %s3148_s10 = smov [#allocation6]  }
   0x7   : > { %s3387_s28 = scalar_select %p3202_p2, 1, 0 }
   0x8   : > { %p3208_p3 = pnand %p2319_p0, %p214_p1  ;;  %s226_s8 = sshll.u32 %s3147_s30, 4  ;;  %s3214_s8 = int_to_ptr.vmem [resolvable:$true] %s226_s8 }
   0x9   : > { %s251_s11 = sshll.u32 %s3148_s10, 4  ;;  %s3149_s12 = smov [#allocation7]   ;;  %s3222_s11 = int_to_ptr.vmem [resolvable:$true] %s251_s11 }
   0xa   : > { %s3388_s29 = scalar_select %p3208_p3, 1, 0 }
   0xb   : > { %p2634_p4 = pneg %p3208_p3  ;;  %s3224_s13 = sshll.u32 %s3149_s12, 4  ;;  %s263_s13 = int_to_ptr.vmem [resolvable:$true] %s3224_s13 }
   0xc   : > { %s3014_s16 = scalar_lea.hbm %s3378_s2, 32 }
   0xd   : > { %p3218_p5 = pnand %p3202_p2, %p2634_p4  ;;  %p3015_p6 = scmp.ne.s32.totalorder %s3378_s2, %s3014_s16 }
   0xe   : > { %p3021_p10 = scmp.lt.u32.totalorder %s3014_s16, %s3378_s2 }
   0xf   : > { %p3234_p7 = pneg %p3218_p5 }
  0x11   : > { %p3017_p8 = pnand %p3234_p7, %p3015_p6 }
  0x13   : > { %p3018_p9 = pneg %p3017_p8 }
  0x15   : > { %p3023_p11 = pnand %p3021_p10, %p3018_p9 }
  0x17   : > { %3026 = shalt.err (!%p3023_p11)
}
  0x18   : > { %s3027_s22 = scalar_lea.vmem %s3206_s26, 32  ;;  %p3035_p1 = scmp.lt.s32.totalorder %s3206_s26, %s3206_s26 }
  0x19   : > { %p3028_p12 = scmp.ne.s32.totalorder %s3206_s26, %s3027_s22  ;;  %p3036_p4 = scmp.lt.s32.totalorder %s3027_s22, %s3027_s22 }
  0x1b   : > { %p3030_p13 = pnand %p3028_p12, %p3234_p7  ;;  %p3037_p6 = por %p3036_p4, %p3035_p1 }
  0x1d   : > { %p3031_p0 = pneg %p3030_p13 }
  0x1f   : > { %p3038_p8 = pnand %p3037_p6, %p3031_p0 }
  0x21   : > { %3041 = shalt.err (!%p3038_p8)
}
  0x22   : > { %2640 = dma.hbm_to_vmem [thread:$0]  (!%p3218_p5), %s3378_s2, 32, %s3206_s26, [#allocation5]  }
  0x23   : > { %s3042_s12 = scalar_lea.hbm %s3377_s1, 27648 }
  0x24   : > { %p3043_p9 = scmp.ne.s32.totalorder %s3377_s1, %s3042_s12  ;;  %p3049_p12 = scmp.lt.u32.totalorder %s3042_s12, %s3377_s1 }
  0x26   : > { %p3045_p10 = pnand %p3043_p9, %p3234_p7 }
  0x28   : > { %p3046_p11 = pneg %p3045_p10 }
  0x2a   : > { %p3051_p13 = pnand %p3049_p12, %p3046_p11 }
  0x2c   : > { %3054 = shalt.err (!%p3051_p13)
}
  0x2d   : > { %s3055_s26 = scalar_lea.vmem %s3214_s8, 27648  ;;  %p3063_p6 = scmp.lt.s32.totalorder %s3214_s8, %s3214_s8 }
  0x2e   : > { %p3056_p0 = scmp.ne.s32.totalorder %s3214_s8, %s3055_s26  ;;  %p3064_p8 = scmp.lt.s32.totalorder %s3055_s26, %s3055_s26 }
  0x30   : > { %p3058_p1 = pnand %p3056_p0, %p3234_p7  ;;  %p3065_p9 = por %p3064_p8, %p3063_p6 }
  0x32   : > { %p3059_p4 = pneg %p3058_p1 }
  0x34   : > { %p3066_p10 = pnand %p3065_p9, %p3059_p4 }
  0x36   : > { %3069 = shalt.err (!%p3066_p10)
}
  0x37   : > { %s3150_s18 = smov 128   ;;  %s3151_s20 = smov 8  }
  0x38   : > { %2637 = dma.hbm_to_vmem [thread:$0]  (!%p3218_p5), %s3377_s1, 27648, %s3214_s8, [#allocation3], %s3150_s18, %s3150_s18, %s3151_s20  }
  0x39   : > { %s3070_s30 = scalar_lea.hbm %s3379_s3, 32 }
  0x3a   : > { %p3071_p11 = scmp.ne.s32.totalorder %s3379_s3, %s3070_s30  ;;  %p3077_p0 = scmp.lt.u32.totalorder %s3070_s30, %s3379_s3 }
  0x3c   : > { %p3073_p12 = pnand %p3071_p11, %p3234_p7 }
  0x3e   : > { %p3074_p13 = pneg %p3073_p12 }
  0x40   : > { %p3079_p1 = pnand %p3077_p0, %p3074_p13 }
  0x42   : > { %3082 = shalt.err (!%p3079_p1)
}
  0x43   : > { %s3083_s8 = scalar_lea.vmem %s3222_s11, 32  ;;  %p3091_p9 = scmp.lt.s32.totalorder %s3222_s11, %s3222_s11 }
  0x44   : > { %p3084_p4 = scmp.ne.s32.totalorder %s3222_s11, %s3083_s8  ;;  %p3092_p10 = scmp.lt.s32.totalorder %s3083_s8, %s3083_s8 }
  0x46   : > { %p3086_p6 = pnand %p3084_p4, %p3234_p7  ;;  %p3093_p11 = por %p3092_p10, %p3091_p9 }
  0x48   : > { %p3087_p8 = pneg %p3086_p6 }
  0x4a   : > { %p3094_p12 = pnand %p3093_p11, %p3087_p8 }
  0x4c   : > { %3097 = shalt.err (!%p3094_p12)
}
  0x4d   : > { %2643 = dma.hbm_to_vmem [thread:$0]  (!%p3218_p5), %s3379_s3, 32, %s3222_s11, [#allocation5]  }
  0x4e   : > { %s3098_s20 = scalar_lea.hbm %s3380_s4, 32 }
  0x4f   : > { %p3099_p13 = scmp.ne.s32.totalorder %s3380_s4, %s3098_s20  ;;  %p3105_p4 = scmp.lt.u32.totalorder %s3098_s20, %s3380_s4 }
  0x51   : > { %p3101_p0 = pnand %p3099_p13, %p3234_p7 }
  0x53   : > { %p3102_p1 = pneg %p3101_p0 }
  0x55   : > { %p3107_p6 = pnand %p3105_p4, %p3102_p1 }
  0x57   : > { %3110 = shalt.err (!%p3107_p6)
}
  0x58   : > { %s3111_s30 = scalar_lea.vmem %s263_s13, 32  ;;  %p3119_p11 = scmp.lt.s32.totalorder %s263_s13, %s263_s13 }
  0x59   : > { %p3112_p8 = scmp.ne.s32.totalorder %s263_s13, %s3111_s30  ;;  %p3120_p12 = scmp.lt.s32.totalorder %s3111_s30, %s3111_s30 }
  0x5b   : > { %p3114_p9 = pnand %p3112_p8, %p3234_p7  ;;  %p3121_p2 = por %p3120_p12, %p3119_p11 }
  0x5d   : > { %p3115_p10 = pneg %p3114_p9 }
  0x5f   : > { %p3122_p3 = pnand %p3121_p2, %p3115_p10 }
  0x61   : > { %3125 = shalt.err (!%p3122_p3)
}
  0x62   : > { %2646 = dma.hbm_to_vmem [thread:$0]  (!%p3218_p5), %s3380_s4, 32, %s263_s13, [#allocation8]  }
  0x63   : > { %p3391_p13 = scmp.ne.s32.totalorder %s3388_s29, 0 }
  0x64   : > { %p3392_p0 = scmp.ne.s32.totalorder (!%p3391_p13), %s3387_s28, 0 }
  0x65   : > { %285 = sbr.rel (%p3391_p13) target bundleno = 581 (0x245), region = 40 }
  0x6c   : > { %3131 = dma.done.wait (%p3392_p0), [#allocation3], 27648  }
  0x6d   : > { %3133 = vsyncadd (%p3392_p0), [#allocation3], 4294939648 }
  0x6e   : > { %3135 = dma.done.wait (%p3392_p0), [#allocation5], 64  }
  0x6f   : > { %3137 = vsyncadd (%p3392_p0), [#allocation5], 4294967232 }
  0x70   : > { %3139 = dma.done.wait (%p3392_p0), [#allocation8], 32  }
  0x71   : > { %3141 = vsyncadd (%p3392_p0), [#allocation8], 4294967264  ;;  %v2669_v0 = vld [vmem:[#allocation2 + $0x4] ss:$8 sps:$4 sm:$0xff]   ;;  %v2673_v2 = vld [vmem:[#allocation2] ss:$8 sps:$4 sm:$0xff]  }
  0x72   : > { %v2671_v1 = vld [vmem:[#allocation2 + $0x304] ss:$8 sps:$4 sm:$0xff]   ;;  %1767 = vmatprep.subr.bf16.mxu1 %v2669_v0  ;;  %v2674_v3 = vld [vmem:[#allocation2 + $0x300] ss:$8 sps:$4 sm:$0xff]   ;;  %v2675_v4 = vld [vmem:[#allocation2 + $0x14] ss:$8 sps:$4 sm:$0xff]  }
  0x73   : > { %1896 = vmatprep.subr.bf16.mxu0 %v2671_v1  ;;  %1768 = vmatpush1.bf16.msra.mxu1 %v2673_v2  ;;  %v2677_v5 = vld [vmem:[#allocation2 + $0x314] ss:$8 sps:$4 sm:$0xff]   ;;  %v2679_v6 = vld [vmem:[#allocation2 + $0x10] ss:$8 sps:$4 sm:$0xff]   ;;  %v2681_v8 = vld [vmem:[#allocation2 + $0x24] ss:$8 sps:$4 sm:$0xff]  }
  0x74   : > { %1897 = vmatpush1.bf16.msra.mxu0 %v2674_v3  ;;  %1769 = vmatprep.subr.bf16.mxu1 %v2675_v4  ;;  %v2680_v7 = vld [vmem:[#allocation2 + $0x310] ss:$8 sps:$4 sm:$0xff]   ;;  %v2683_v9 = vld [vmem:[#allocation2 + $0x324] ss:$8 sps:$4 sm:$0xff]   ;;  %v2685_v10 = vld [vmem:[#allocation2 + $0x20] ss:$8 sps:$4 sm:$0xff]  }
  0x75   : > { %1898 = vmatprep.subr.bf16.mxu0 %v2677_v5  ;;  %v2686_v11 = vld [vmem:[#allocation2 + $0x320] ss:$8 sps:$4 sm:$0xff]   ;;  %v2687_v12 = vld [vmem:[#allocation2 + $0x34] ss:$8 sps:$4 sm:$0xff]   ;;  %v2691_v14 = vld [vmem:[#allocation2 + $0x30] ss:$8 sps:$4 sm:$0xff]  }
  0x76   : > { %v2689_v13 = vld [vmem:[#allocation2 + $0x334] ss:$8 sps:$4 sm:$0xff]   ;;  %v2692_v15 = vld [vmem:[#allocation2 + $0x330] ss:$8 sps:$4 sm:$0xff]   ;;  %v2693_v16 = vld [vmem:[#allocation2 + $0x44] ss:$8 sps:$4 sm:$0xff]  }
  0x77   : > { %1770 = vmatpush1.bf16.msra.mxu1 %v2679_v6  ;;  %v2695_v17 = vld [vmem:[#allocation2 + $0x344] ss:$8 sps:$4 sm:$0xff]   ;;  %v2697_v18 = vld [vmem:[#allocation2 + $0x40] ss:$8 sps:$4 sm:$0xff]   ;;  %v2699_v20 = vld [vmem:[#allocation2 + $0x54] ss:$8 sps:$4 sm:$0xff]  }
  0x78   : > { %1899 = vmatpush1.bf16.msra.mxu0 %v2680_v7  ;;  %1771 = vmatprep.subr.bf16.mxu1 %v2681_v8  ;;  %v2698_v19 = vld [vmem:[#allocation2 + $0x340] ss:$8 sps:$4 sm:$0xff]   ;;  %v2701_v21 = vld [vmem:[#allocation2 + $0x354] ss:$8 sps:$4 sm:$0xff]   ;;  %v2703_v22 = vld [vmem:[#allocation2 + $0x50] ss:$8 sps:$4 sm:$0xff]  }
  0x79   : > { %1900 = vmatprep.subr.bf16.mxu0 %v2683_v9  ;;  %v2704_v23 = vld [vmem:[#allocation2 + $0x350] ss:$8 sps:$4 sm:$0xff]   ;;  %v2705_v24 = vld [vmem:[#allocation2 + $0x64] ss:$8 sps:$4 sm:$0xff]   ;;  %v2709_v26 = vld [vmem:[#allocation2 + $0x60] ss:$8 sps:$4 sm:$0xff]  }
  0x7a   : > { %v2707_v25 = vld [vmem:[#allocation2 + $0x364] ss:$8 sps:$4 sm:$0xff]   ;;  %v2710_v27 = vld [vmem:[#allocation2 + $0x360] ss:$8 sps:$4 sm:$0xff]   ;;  %v2711_v28 = vld [vmem:[#allocation2 + $0x74] ss:$8 sps:$4 sm:$0xff]  }
  0x7b   : > { %1772 = vmatpush1.bf16.msra.mxu1 %v2685_v10  ;;  %v2713_v29 = vld [vmem:[#allocation2 + $0x374] ss:$8 sps:$4 sm:$0xff]   ;;  %s2330_s28 = sshll.u32 %s2317_s27, 1  ;;  %v2715_v30 = vld [vmem:[#allocation2 + $0x70] ss:$8 sps:$4 sm:$0xff]   ;;  %vm1763_vm0 = vcmask 523264  }
  0x7c   : > { %1901 = vmatpush1.bf16.msra.mxu0 %v2686_v11  ;;  %1773 = vmatprep.subr.bf16.mxu1 %v2687_v12  ;;  %v2716_v31 = vld [vmem:[#allocation2 + $0x370] ss:$8 sps:$4 sm:$0xff]   ;;  %v2717_v32 = vld [vmem:[#allocation2 + $0x84] ss:$8 sps:$4 sm:$0xff]   ;;  %p344_p2 = scmp.lt.s32.totalorder %s2330_s28, 3 }
  0x7d   : > { %1902 = vmatprep.subr.bf16.mxu0 %v2689_v13  ;;  %v2719_v33 = vld [vmem:[#allocation2 + $0x384] ss:$8 sps:$4 sm:$0xff]   ;;  %v2721_v34 = vld [vmem:[#allocation2 + $0x80] ss:$8 sps:$4 sm:$0xff]   ;;  %v2723_v36 = vld [vmem:[#allocation2 + $0x94] ss:$8 sps:$4 sm:$0xff]  }
  0x7e   : > { %v2722_v35 = vld [vmem:[#allocation2 + $0x380] ss:$8 sps:$4 sm:$0xff]   ;;  %s3394_s28 = smov (!%p344_p2, %s2330_s28), 3  ;;  %v2725_v37 = vld [vmem:[#allocation2 + $0x394] ss:$8 sps:$4 sm:$0xff]  }
  0x7f   : > { %1774 = vmatpush1.bf16.msra.mxu1 %v2691_v14  ;;  %v2727_v38 = vld [vmem:[#allocation2 + $0x90] ss:$8 sps:$4 sm:$0xff]   ;;  %v2729_v40 = vld [vmem:[#allocation2 + $0xa4] ss:$8 sps:$4 sm:$0xff]   ;;  %s2617_s27 = smul.u32 56, %s3394_s28  ;;  %s3359_s19 = sshll.u32 %s3394_s28, 3 }
  0x80   : > { %1903 = vmatpush1.bf16.msra.mxu0 %v2692_v15  ;;  %1775 = vmatprep.subr.bf16.mxu1 %v2693_v16  ;;  %v2728_v39 = vld [vmem:[#allocation2 + $0x390] ss:$8 sps:$4 sm:$0xff]   ;;  %v2731_v41 = vld [vmem:[#allocation2 + $0x3a4] ss:$8 sps:$4 sm:$0xff]   ;;  %v2733_v42 = vld [vmem:[#allocation2 + $0xa0] ss:$8 sps:$4 sm:$0xff]   ;;  %s355_s15 = scalar_lea.vmem %s3381_s5, %s3359_s19  ;;  %s362_s17 = scalar_lea.vmem %s3382_s6, %s3359_s19 }
  0x81   : > { %1904 = vmatprep.subr.bf16.mxu0 %v2695_v17  ;;  %v2734_v43 = vld [vmem:[#allocation2 + $0x3a0] ss:$8 sps:$4 sm:$0xff]   ;;  %v2735_v44 = vld [vmem:[#allocation2 + $0xb4] ss:$8 sps:$4 sm:$0xff]   ;;  %s3342_s13 = scalar_lea.vmem %s3376_s0, %s2617_s27  ;;  %v2739_v46 = vld [vmem:[#allocation2 + $0xb0] ss:$8 sps:$4 sm:$0xff]   ;;  %s369_s20 = scalar_lea.vmem %s3383_s7, %s3359_s19 }
  0x82   : > { %v2737_v45 = vld [vmem:[#allocation2 + $0x3b4] ss:$8 sps:$4 sm:$0xff]   ;;  %v2740_v47 = vld [vmem:[#allocation2 + $0x3b0] ss:$8 sps:$4 sm:$0xff]   ;;  %v2741_v49 = vld [vmem:[#allocation2 + $0xc4] ss:$8 sps:$4 sm:$0xff]  }
  0x83   : > { %1776 = vmatpush1.bf16.msra.mxu1 %v2697_v18  ;;  %v2767_v48 = vld [vmem:[%s3342_s13 + $0x4] ss:$56 sps:$4 sm:$0xff]   ;;  %v2745_v52 = vld [vmem:[#allocation2 + $0xc0] ss:$8 sps:$4 sm:$0xff]   ;;  %v2751_v56 = vld [vmem:[#allocation2 + $0xd0] ss:$8 sps:$4 sm:$0xff]  }
  0x84   : > { %1905 = vmatpush1.bf16.msra.mxu0 %v2698_v19  ;;  %1777 = vmatprep.subr.bf16.mxu1 %v2699_v20  ;;  %v2743_v50 = vld [vmem:[#allocation2 + $0x3c4] ss:$8 sps:$4 sm:$0xff]   ;;  %v2773_v51 = vld [vmem:[%s3342_s13 + $0x1c] ss:$56 sps:$4 sm:$0xff]   ;;  %v2746_v53 = vld [vmem:[#allocation2 + $0x3c0] ss:$8 sps:$4 sm:$0xff]  }
  0x85   : > { %1906 = vmatprep.subr.bf16.mxu0 %v2701_v21  ;;  %1799 = vmatprep.mubr.bf16.mxu1 %v2767_v48  ;;  %v2747_v54 = vld [vmem:[#allocation2 + $0xd4] ss:$8 sps:$4 sm:$0xff]   ;;  %v2752_v57 = vld [vmem:[#allocation2 + $0x3d0] ss:$8 sps:$4 sm:$0xff]   ;;  %v2753_v58 = vld [vmem:[#allocation2 + $0xe4] ss:$8 sps:$4 sm:$0xff]  }
  0x86   : > { %v2749_v55 = vld [vmem:[#allocation2 + $0x3d4] ss:$8 sps:$4 sm:$0xff]   ;;  %1928 = vmatprep.mubr.bf16.mxu0 %v2773_v51  ;;  %v2755_v59 = vld [vmem:[#allocation2 + $0x3e4] ss:$8 sps:$4 sm:$0xff]   ;;  %v2757_v60 = vld [vmem:[#allocation2 + $0xe0] ss:$8 sps:$4 sm:$0xff]  }
  0x87   : > { %1778 = vmatpush1.bf16.msra.mxu1 %v2703_v22  ;;  %v2758_v61 = vld [vmem:[#allocation2 + $0x3e0] ss:$8 sps:$4 sm:$0xff]   ;;  %v2759_v62 = vld [vmem:[#allocation2 + $0xf4] ss:$8 sps:$4 sm:$0xff]   ;;  %v2763_v0 = vld [vmem:[#allocation2 + $0xf0] ss:$8 sps:$4 sm:$0xff]  }
  0x88   : > { %1907 = vmatpush1.bf16.msra.mxu0 %v2704_v23  ;;  %1779 = vmatprep.subr.bf16.mxu1 %v2705_v24  ;;  %v2761_v63 = vld [vmem:[#allocation2 + $0x3f4] ss:$8 sps:$4 sm:$0xff]   ;;  %v2764_v1 = vld [vmem:[#allocation2 + $0x3f0] ss:$8 sps:$4 sm:$0xff]   ;;  %v2770_v2 = vld [vmem:[#allocation2 + $0x104] ss:$8 sps:$4 sm:$0xff]  }
  0x89   : > { %1908 = vmatprep.subr.bf16.mxu0 %v2707_v25  ;;  %v2776_v3 = vld [vmem:[#allocation2 + $0x404] ss:$8 sps:$4 sm:$0xff]   ;;  %v2765_v4 = vld [vmem:[%s3342_s13] ss:$56 sps:$4 sm:$0xff]   ;;  %v2779_v8 = vld [vmem:[#allocation2 + $0x114] ss:$8 sps:$4 sm:$0xff]  }
  0x8a   : > { %v2768_v5 = vld [vmem:[#allocation2 + $0x100] ss:$8 sps:$4 sm:$0xff]   ;;  %v2771_v6 = vld [vmem:[%s3342_s13 + $0x18] ss:$56 sps:$4 sm:$0xff]   ;;  %v2782_v9 = vld [vmem:[#allocation2 + $0x414] ss:$8 sps:$4 sm:$0xff]  }
  0x8b   : > { %1780 = vmatpush1.bf16.msra.mxu1 %v2709_v26  ;;  %v2774_v7 = vld [vmem:[#allocation2 + $0x400] ss:$8 sps:$4 sm:$0xff]   ;;  %v2777_v10 = vld [vmem:[#allocation2 + $0x110] ss:$8 sps:$4 sm:$0xff]   ;;  %v2785_v12 = vld [vmem:[#allocation2 + $0x124] ss:$8 sps:$4 sm:$0xff]  }
  0x8c   : > { %1909 = vmatpush1.bf16.msra.mxu0 %v2710_v27  ;;  %1781 = vmatprep.subr.bf16.mxu1 %v2711_v28  ;;  %v2780_v11 = vld [vmem:[#allocation2 + $0x410] ss:$8 sps:$4 sm:$0xff]   ;;  %v2788_v13 = vld [vmem:[#allocation2 + $0x424] ss:$8 sps:$4 sm:$0xff]   ;;  %v2783_v14 = vld [vmem:[#allocation2 + $0x120] ss:$8 sps:$4 sm:$0xff]  }
  0x8d   : > { %1910 = vmatprep.subr.bf16.mxu0 %v2713_v29  ;;  %v2786_v15 = vld [vmem:[#allocation2 + $0x420] ss:$8 sps:$4 sm:$0xff]   ;;  %v2791_v16 = vld [vmem:[#allocation2 + $0x134] ss:$8 sps:$4 sm:$0xff]   ;;  %v2789_v18 = vld [vmem:[#allocation2 + $0x130] ss:$8 sps:$4 sm:$0xff]  }
  0x8e   : > { %v2794_v17 = vld [vmem:[#allocation2 + $0x434] ss:$8 sps:$4 sm:$0xff]   ;;  %v2792_v19 = vld [vmem:[#allocation2 + $0x430] ss:$8 sps:$4 sm:$0xff]   ;;  %v2797_v20 = vld [vmem:[#allocation2 + $0x144] ss:$8 sps:$4 sm:$0xff]  }
  0x8f   : > { %1782 = vmatpush1.bf16.msra.mxu1 %v2715_v30  ;;  %v2800_v21 = vld [vmem:[#allocation2 + $0x444] ss:$8 sps:$4 sm:$0xff]   ;;  %v2795_v22 = vld [vmem:[#allocation2 + $0x140] ss:$8 sps:$4 sm:$0xff]   ;;  %v2803_v24 = vld [vmem:[#allocation2 + $0x154] ss:$8 sps:$4 sm:$0xff]  }
  0x90   : > { %1911 = vmatpush1.bf16.msra.mxu0 %v2716_v31  ;;  %1783 = vmatprep.subr.bf16.mxu1 %v2717_v32  ;;  %v2798_v23 = vld [vmem:[#allocation2 + $0x440] ss:$8 sps:$4 sm:$0xff]   ;;  %v2806_v25 = vld [vmem:[#allocation2 + $0x454] ss:$8 sps:$4 sm:$0xff]   ;;  %v2801_v26 = vld [vmem:[#allocation2 + $0x150] ss:$8 sps:$4 sm:$0xff]  }
  0x91   : > { %1912 = vmatprep.subr.bf16.mxu0 %v2719_v33  ;;  %v2804_v27 = vld [vmem:[#allocation2 + $0x450] ss:$8 sps:$4 sm:$0xff]   ;;  %v2809_v28 = vld [vmem:[#allocation2 + $0x164] ss:$8 sps:$4 sm:$0xff]   ;;  %v2807_v30 = vld [vmem:[#allocation2 + $0x160] ss:$8 sps:$4 sm:$0xff]  }
  0x92   : > { %v2812_v29 = vld [vmem:[#allocation2 + $0x464] ss:$8 sps:$4 sm:$0xff]   ;;  %v2810_v31 = vld [vmem:[#allocation2 + $0x460] ss:$8 sps:$4 sm:$0xff]   ;;  %v2815_v32 = vld [vmem:[#allocation2 + $0x174] ss:$8 sps:$4 sm:$0xff]  }
  0x93   : > { %1784 = vmatpush1.bf16.msra.mxu1 %v2721_v34  ;;  %v2818_v33 = vld [vmem:[#allocation2 + $0x474] ss:$8 sps:$4 sm:$0xff]   ;;  %v2869_v34 = vld [vmem:[%s3342_s13 + $0xc] ss:$56 sps:$4 sm:$0xff]   ;;  %v2831_v48 = vld [vmem:[#allocation2 + $0x1a0] ss:$8 sps:$4 sm:$0xff]  }
  0x94   : > { %1913 = vmatpush1.bf16.msra.mxu0 %v2722_v35  ;;  %1785 = vmatprep.subr.bf16.mxu1 %v2723_v36  ;;  %v2813_v35 = vld [vmem:[#allocation2 + $0x170] ss:$8 sps:$4 sm:$0xff]   ;;  %v2842_v51 = vld [vmem:[#allocation2 + $0x4b4] ss:$8 sps:$4 sm:$0xff]  }
  0x95   : > { %1914 = vmatprep.subr.bf16.mxu0 %v2725_v37  ;;  %v2816_v36 = vld [vmem:[#allocation2 + $0x470] ss:$8 sps:$4 sm:$0xff]   ;;  %v2875_v37 = vld [vmem:[%s3342_s13 + $0x24] ss:$56 sps:$4 sm:$0xff]  }
  0x97   : > { %1786 = vmatpush1.bf16.msra.mxu1 %v2727_v38  ;;  %v2821_v38 = vld [vmem:[#allocation2 + $0x184] ss:$8 sps:$4 sm:$0xff]  }
  0x98   : > { %1915 = vmatpush1.bf16.msra.mxu0 %v2728_v39  ;;  %1787 = vmatprep.subr.bf16.mxu1 %v2729_v40  ;;  %v2824_v39 = vld [vmem:[#allocation2 + $0x484] ss:$8 sps:$4 sm:$0xff]   ;;  %v2819_v40 = vld [vmem:[#allocation2 + $0x180] ss:$8 sps:$4 sm:$0xff]  }
  0x99   : > { %1916 = vmatprep.subr.bf16.mxu0 %v2731_v41  ;;  %v2822_v41 = vld [vmem:[#allocation2 + $0x480] ss:$8 sps:$4 sm:$0xff]  }
  0x9b   : > { %1788 = vmatpush1.bf16.msra.mxu1 %v2733_v42  ;;  %v2827_v42 = vld [vmem:[#allocation2 + $0x194] ss:$8 sps:$4 sm:$0xff]  }
  0x9c   : > { %1917 = vmatpush1.bf16.msra.mxu0 %v2734_v43  ;;  %1789 = vmatprep.subr.bf16.mxu1 %v2735_v44  ;;  %v2830_v43 = vld [vmem:[#allocation2 + $0x494] ss:$8 sps:$4 sm:$0xff]   ;;  %v2825_v44 = vld [vmem:[#allocation2 + $0x190] ss:$8 sps:$4 sm:$0xff]  }
  0x9d   : > { %1918 = vmatprep.subr.bf16.mxu0 %v2737_v45  ;;  %v2828_v45 = vld [vmem:[#allocation2 + $0x490] ss:$8 sps:$4 sm:$0xff]  }
  0x9f   : > { %1790 = vmatpush1.bf16.msra.mxu1 %v2739_v46  ;;  %v2833_v46 = vld [vmem:[#allocation2 + $0x1a4] ss:$8 sps:$4 sm:$0xff]  }
  0xa0   : > { %1919 = vmatpush1.bf16.msra.mxu0 %v2740_v47  ;;  %1791 = vmatprep.subr.bf16.mxu1 %v2741_v49  ;;  %v2836_v47 = vld [vmem:[#allocation2 + $0x4a4] ss:$8 sps:$4 sm:$0xff]   ;;  %v2834_v49 = vld [vmem:[#allocation2 + $0x4a0] ss:$8 sps:$4 sm:$0xff]  }
  0xa1   : > { %1920 = vmatprep.subr.bf16.mxu0 %v2743_v50  ;;  %v2839_v50 = vld [vmem:[#allocation2 + $0x1b4] ss:$8 sps:$4 sm:$0xff]  }
  0xa3   : > { %1792 = vmatpush1.bf16.msra.mxu1 %v2745_v52  ;;  %v2837_v52 = vld [vmem:[#allocation2 + $0x1b0] ss:$8 sps:$4 sm:$0xff]  }
  0xa4   : > { %1921 = vmatpush1.bf16.msra.mxu0 %v2746_v53  ;;  %1793 = vmatprep.subr.bf16.mxu1 %v2747_v54  ;;  %v2840_v53 = vld [vmem:[#allocation2 + $0x4b0] ss:$8 sps:$4 sm:$0xff]   ;;  %v2845_v54 = vld [vmem:[#allocation2 + $0x1c4] ss:$8 sps:$4 sm:$0xff]  }
  0xa5   : > { %1922 = vmatprep.subr.bf16.mxu0 %v2749_v55  ;;  %v2848_v55 = vld [vmem:[#allocation2 + $0x4c4] ss:$8 sps:$4 sm:$0xff]  }
  0xa7   : > { %1794 = vmatpush1.bf16.msra.mxu1 %v2751_v56  ;;  %v2843_v56 = vld [vmem:[#allocation2 + $0x1c0] ss:$8 sps:$4 sm:$0xff]  }
  0xa8   : > { %1923 = vmatpush1.bf16.msra.mxu0 %v2752_v57  ;;  %1795 = vmatprep.subr.bf16.mxu1 %v2753_v58  ;;  %v2846_v57 = vld [vmem:[#allocation2 + $0x4c0] ss:$8 sps:$4 sm:$0xff]   ;;  %v2851_v58 = vld [vmem:[#allocation2 + $0x1d4] ss:$8 sps:$4 sm:$0xff]  }
  0xa9   : > { %1924 = vmatprep.subr.bf16.mxu0 %v2755_v59  ;;  %v2854_v59 = vld [vmem:[#allocation2 + $0x4d4] ss:$8 sps:$4 sm:$0xff]  }
  0xab   : > { %1796 = vmatpush1.bf16.msra.mxu1 %v2757_v60  ;;  %v2849_v60 = vld [vmem:[#allocation2 + $0x1d0] ss:$8 sps:$4 sm:$0xff]  }
  0xac   : > { %1925 = vmatpush1.bf16.msra.mxu0 %v2758_v61  ;;  %1797 = vmatprep.subr.bf16.mxu1 %v2759_v62  ;;  %v2852_v61 = vld [vmem:[#allocation2 + $0x4d0] ss:$8 sps:$4 sm:$0xff]   ;;  %v2857_v62 = vld [vmem:[#allocation2 + $0x1e4] ss:$8 sps:$4 sm:$0xff]  }
  0xad   : > { %1926 = vmatprep.subr.bf16.mxu0 %v2761_v63  ;;  %v2860_v63 = vld [vmem:[#allocation2 + $0x4e4] ss:$8 sps:$4 sm:$0xff]  }
  0xaf   : > { %1798 = vmatpush1.bf16.msra.mxu1 %v2763_v0  ;;  %v2855_v0 = vld [vmem:[#allocation2 + $0x1e0] ss:$8 sps:$4 sm:$0xff]  }
  0xb0   : > { %1927 = vmatpush1.bf16.msra.mxu0 %v2764_v1  ;;  %1810 = vmatprep.subr.bf16.mxu1 %v2770_v2  ;;  %v2858_v1 = vld [vmem:[#allocation2 + $0x4e0] ss:$8 sps:$4 sm:$0xff]   ;;  %v2863_v2 = vld [vmem:[#allocation2 + $0x1f4] ss:$8 sps:$4 sm:$0xff]  }
  0xb1   : > { %1939 = vmatprep.subr.bf16.mxu0 %v2776_v3  ;;  %v2866_v3 = vld [vmem:[#allocation2 + $0x4f4] ss:$8 sps:$4 sm:$0xff]  }
  0xb2   : > { %1800 = vmatmul.mubr.bf16.vlgmr.msra.gmra.mrb[0].mxu1 %v2765_v4  ;;  %v2861_v4 = vld [vmem:[#allocation2 + $0x1f0] ss:$8 sps:$4 sm:$0xff]  }
  0xb3   : > { %1929 = vmatmul.mubr.bf16.vlgmr.msra.gmra.mrb[0].mxu0 %v2771_v6  ;;  %1811 = vmatpush1.bf16.msra.mxu1 %v2768_v5  ;;  %v2864_v5 = vld [vmem:[#allocation2 + $0x4f0] ss:$8 sps:$4 sm:$0xff]   ;;  %v2872_v6 = vld [vmem:[#allocation2 + $0x204] ss:$8 sps:$4 sm:$0xff]  }
  0xb4   : > { %1940 = vmatpush1.bf16.msra.mxu0 %v2774_v7  ;;  %1812 = vmatprep.subr.bf16.mxu1 %v2779_v8  ;;  %v2878_v7 = vld [vmem:[#allocation2 + $0x504] ss:$8 sps:$4 sm:$0xff]   ;;  %v2867_v8 = vld [vmem:[%s3342_s13 + $0x8] ss:$56 sps:$4 sm:$0xff]  }
  0xb5   : > { %1941 = vmatprep.subr.bf16.mxu0 %v2782_v9  ;;  %1842 = vmatprep.mubr.bf16.mxu1 %v2869_v34  ;;  %v2870_v9 = vld [vmem:[#allocation2 + $0x200] ss:$8 sps:$4 sm:$0xff]   ;;  %v2911_v34 = vld [vmem:[#allocation2 + $0x264] ss:$8 sps:$4 sm:$0xff]  }
  0xb6   : > { %1971 = vmatprep.mubr.bf16.mxu0 %v2875_v37  ;;  %v2912_v37 = vld [vmem:[#allocation2 + $0x560] ss:$8 sps:$4 sm:$0xff]  }
  0xb7   : > { %1813 = vmatpush1.bf16.msra.mxu1 %v2777_v10  ;;  %v2873_v10 = vld [vmem:[%s3342_s13 + $0x20] ss:$56 sps:$4 sm:$0xff]  }
  0xb8   : > { %1942 = vmatpush1.bf16.msra.mxu0 %v2780_v11  ;;  %1814 = vmatprep.subr.bf16.mxu1 %v2785_v12  ;;  %v2876_v11 = vld [vmem:[#allocation2 + $0x500] ss:$8 sps:$4 sm:$0xff]   ;;  %v2881_v12 = vld [vmem:[#allocation2 + $0x214] ss:$8 sps:$4 sm:$0xff]  }
  0xb9   : > { %1943 = vmatprep.subr.bf16.mxu0 %v2788_v13  ;;  %v2884_v13 = vld [vmem:[#allocation2 + $0x514] ss:$8 sps:$4 sm:$0xff]  }
  0xbb   : > { %1815 = vmatpush1.bf16.msra.mxu1 %v2783_v14  ;;  %v2879_v14 = vld [vmem:[#allocation2 + $0x210] ss:$8 sps:$4 sm:$0xff]  }
  0xbc   : > { %1944 = vmatpush1.bf16.msra.mxu0 %v2786_v15  ;;  %1816 = vmatprep.subr.bf16.mxu1 %v2791_v16  ;;  %v2882_v15 = vld [vmem:[#allocation2 + $0x510] ss:$8 sps:$4 sm:$0xff]   ;;  %v2887_v16 = vld [vmem:[#allocation2 + $0x224] ss:$8 sps:$4 sm:$0xff]  }
  0xbd   : > { %1945 = vmatprep.subr.bf16.mxu0 %v2794_v17  ;;  %v2890_v17 = vld [vmem:[#allocation2 + $0x524] ss:$8 sps:$4 sm:$0xff]  }
  0xbf   : > { %1817 = vmatpush1.bf16.msra.mxu1 %v2789_v18  ;;  %v2885_v18 = vld [vmem:[#allocation2 + $0x220] ss:$8 sps:$4 sm:$0xff]  }
  0xc0   : > { %1946 = vmatpush1.bf16.msra.mxu0 %v2792_v19  ;;  %1818 = vmatprep.subr.bf16.mxu1 %v2797_v20  ;;  %v2971_v19 = vld [vmem:[%s3342_s13 + $0x14] ss:$56 sps:$4 sm:$0xff]   ;;  %v2888_v20 = vld [vmem:[#allocation2 + $0x520] ss:$8 sps:$4 sm:$0xff]  }
  0xc1   : > { %1947 = vmatprep.subr.bf16.mxu0 %v2800_v21  ;;  %v2974_v21 = vld [vmem:[%s3342_s13 + $0x2c] ss:$56 sps:$4 sm:$0xff]  }
  0xc3   : > { %1819 = vmatpush1.bf16.msra.mxu1 %v2795_v22  ;;  %v2893_v22 = vld [vmem:[#allocation2 + $0x234] ss:$8 sps:$4 sm:$0xff]  }
  0xc4   : > { %1948 = vmatpush1.bf16.msra.mxu0 %v2798_v23  ;;  %1820 = vmatprep.subr.bf16.mxu1 %v2803_v24  ;;  %v2896_v23 = vld [vmem:[#allocation2 + $0x534] ss:$8 sps:$4 sm:$0xff]   ;;  %v2891_v24 = vld [vmem:[#allocation2 + $0x230] ss:$8 sps:$4 sm:$0xff]  }
  0xc5   : > { %1949 = vmatprep.subr.bf16.mxu0 %v2806_v25  ;;  %v2894_v25 = vld [vmem:[#allocation2 + $0x530] ss:$8 sps:$4 sm:$0xff]  }
  0xc7   : > { %1821 = vmatpush1.bf16.msra.mxu1 %v2801_v26  ;;  %v2899_v26 = vld [vmem:[#allocation2 + $0x244] ss:$8 sps:$4 sm:$0xff]  }
  0xc8   : > { %1950 = vmatpush1.bf16.msra.mxu0 %v2804_v27  ;;  %1822 = vmatprep.subr.bf16.mxu1 %v2809_v28  ;;  %v2902_v27 = vld [vmem:[#allocation2 + $0x544] ss:$8 sps:$4 sm:$0xff]   ;;  %v2897_v28 = vld [vmem:[#allocation2 + $0x240] ss:$8 sps:$4 sm:$0xff]  }
  0xc9   : > { %1951 = vmatprep.subr.bf16.mxu0 %v2812_v29  ;;  %v2900_v29 = vld [vmem:[#allocation2 + $0x540] ss:$8 sps:$4 sm:$0xff]  }
  0xcb   : > { %1823 = vmatpush1.bf16.msra.mxu1 %v2807_v30  ;;  %v2905_v30 = vld [vmem:[#allocation2 + $0x254] ss:$8 sps:$4 sm:$0xff]  }
  0xcc   : > { %1952 = vmatpush1.bf16.msra.mxu0 %v2810_v31  ;;  %1824 = vmatprep.subr.bf16.mxu1 %v2815_v32  ;;  %v2908_v31 = vld [vmem:[#allocation2 + $0x554] ss:$8 sps:$4 sm:$0xff]   ;;  %v2903_v32 = vld [vmem:[#allocation2 + $0x250] ss:$8 sps:$4 sm:$0xff]  }
  0xcd   : > { %1953 = vmatprep.subr.bf16.mxu0 %v2818_v33  ;;  %v2906_v33 = vld [vmem:[#allocation2 + $0x550] ss:$8 sps:$4 sm:$0xff]  }
  0xcf   : > { %1825 = vmatpush1.bf16.msra.mxu1 %v2813_v35  ;;  %v2914_v35 = vld [vmem:[#allocation2 + $0x564] ss:$8 sps:$4 sm:$0xff]  }
  0xd0   : > { %1954 = vmatpush1.bf16.msra.mxu0 %v2816_v36  ;;  %1826 = vmatprep.subr.bf16.mxu1 %v2821_v38  ;;  %v2909_v36 = vld [vmem:[#allocation2 + $0x260] ss:$8 sps:$4 sm:$0xff]   ;;  %v2917_v38 = vld [vmem:[#allocation2 + $0x274] ss:$8 sps:$4 sm:$0xff]  }
  0xd1   : > { %1955 = vmatprep.subr.bf16.mxu0 %v2824_v39  ;;  %v2920_v39 = vld [vmem:[#allocation2 + $0x574] ss:$8 sps:$4 sm:$0xff]  }
  0xd3   : > { %1827 = vmatpush1.bf16.msra.mxu1 %v2819_v40  ;;  %v2915_v40 = vld [vmem:[#allocation2 + $0x270] ss:$8 sps:$4 sm:$0xff]  }
  0xd4   : > { %1956 = vmatpush1.bf16.msra.mxu0 %v2822_v41  ;;  %1828 = vmatprep.subr.bf16.mxu1 %v2827_v42  ;;  %v2918_v41 = vld [vmem:[#allocation2 + $0x570] ss:$8 sps:$4 sm:$0xff]   ;;  %v2923_v42 = vld [vmem:[#allocation2 + $0x284] ss:$8 sps:$4 sm:$0xff]  }
  0xd5   : > { %1957 = vmatprep.subr.bf16.mxu0 %v2830_v43  ;;  %v2926_v43 = vld [vmem:[#allocation2 + $0x584] ss:$8 sps:$4 sm:$0xff]  }
  0xd7   : > { %1829 = vmatpush1.bf16.msra.mxu1 %v2825_v44  ;;  %v2921_v44 = vld [vmem:[#allocation2 + $0x280] ss:$8 sps:$4 sm:$0xff]  }
  0xd8   : > { %1958 = vmatpush1.bf16.msra.mxu0 %v2828_v45  ;;  %1830 = vmatprep.subr.bf16.mxu1 %v2833_v46  ;;  %v2924_v45 = vld [vmem:[#allocation2 + $0x580] ss:$8 sps:$4 sm:$0xff]   ;;  %v2929_v46 = vld [vmem:[#allocation2 + $0x294] ss:$8 sps:$4 sm:$0xff]  }
  0xd9   : > { %1959 = vmatprep.subr.bf16.mxu0 %v2836_v47  ;;  %v2932_v47 = vld [vmem:[#allocation2 + $0x594] ss:$8 sps:$4 sm:$0xff]  }
  0xdb   : > { %1831 = vmatpush1.bf16.msra.mxu1 %v2831_v48  ;;  %v2927_v48 = vld [vmem:[#allocation2 + $0x290] ss:$8 sps:$4 sm:$0xff]  }
  0xdc   : > { %1960 = vmatpush1.bf16.msra.mxu0 %v2834_v49  ;;  %1832 = vmatprep.subr.bf16.mxu1 %v2839_v50  ;;  %v2930_v49 = vld [vmem:[#allocation2 + $0x590] ss:$8 sps:$4 sm:$0xff]   ;;  %v2935_v50 = vld [vmem:[#allocation2 + $0x2a4] ss:$8 sps:$4 sm:$0xff]  }
  0xdd   : > { %1961 = vmatprep.subr.bf16.mxu0 %v2842_v51  ;;  %v2938_v51 = vld [vmem:[#allocation2 + $0x5a4] ss:$8 sps:$4 sm:$0xff]  }
  0xdf   : > { %1833 = vmatpush1.bf16.msra.mxu1 %v2837_v52  ;;  %v2933_v52 = vld [vmem:[#allocation2 + $0x2a0] ss:$8 sps:$4 sm:$0xff]  }
  0xe0   : > { %1962 = vmatpush1.bf16.msra.mxu0 %v2840_v53  ;;  %1834 = vmatprep.subr.bf16.mxu1 %v2845_v54  ;;  %v2936_v53 = vld [vmem:[#allocation2 + $0x5a0] ss:$8 sps:$4 sm:$0xff]   ;;  %v2941_v54 = vld [vmem:[#allocation2 + $0x2b4] ss:$8 sps:$4 sm:$0xff]  }
  0xe1   : > { %1963 = vmatprep.subr.bf16.mxu0 %v2848_v55  ;;  %v2944_v55 = vld [vmem:[#allocation2 + $0x5b4] ss:$8 sps:$4 sm:$0xff]  }
  0xe3   : > { %1835 = vmatpush1.bf16.msra.mxu1 %v2843_v56  ;;  %v2939_v56 = vld [vmem:[#allocation2 + $0x2b0] ss:$8 sps:$4 sm:$0xff]  }
  0xe4   : > { %1964 = vmatpush1.bf16.msra.mxu0 %v2846_v57  ;;  %1836 = vmatprep.subr.bf16.mxu1 %v2851_v58  ;;  %v2942_v57 = vld [vmem:[#allocation2 + $0x5b0] ss:$8 sps:$4 sm:$0xff]   ;;  %v2947_v58 = vld [vmem:[#allocation2 + $0x2c4] ss:$8 sps:$4 sm:$0xff]  }
  0xe5   : > { %1965 = vmatprep.subr.bf16.mxu0 %v2854_v59  ;;  %v2950_v59 = vld [vmem:[#allocation2 + $0x5c4] ss:$8 sps:$4 sm:$0xff]  }
  0xe7   : > { %1837 = vmatpush1.bf16.msra.mxu1 %v2849_v60  ;;  %v2945_v60 = vld [vmem:[#allocation2 + $0x2c0] ss:$8 sps:$4 sm:$0xff]  }
  0xe8   : > { %1966 = vmatpush1.bf16.msra.mxu0 %v2852_v61  ;;  %1838 = vmatprep.subr.bf16.mxu1 %v2857_v62  ;;  %v2948_v61 = vld [vmem:[#allocation2 + $0x5c0] ss:$8 sps:$4 sm:$0xff]   ;;  %v2953_v62 = vld [vmem:[#allocation2 + $0x2d4] ss:$8 sps:$4 sm:$0xff]  }
  0xe9   : > { %1967 = vmatprep.subr.bf16.mxu0 %v2860_v63  ;;  %v2956_v63 = vld [vmem:[#allocation2 + $0x5d4] ss:$8 sps:$4 sm:$0xff]  }
  0xeb   : > { %1839 = vmatpush1.bf16.msra.mxu1 %v2855_v0  ;;  %v2951_v0 = vld [vmem:[#allocation2 + $0x2d0] ss:$8 sps:$4 sm:$0xff]  }
  0xec   : > { %1968 = vmatpush1.bf16.msra.mxu0 %v2858_v1  ;;  %1840 = vmatprep.subr.bf16.mxu1 %v2863_v2  ;;  %v2954_v1 = vld [vmem:[#allocation2 + $0x5d0] ss:$8 sps:$4 sm:$0xff]   ;;  %v2959_v2 = vld [vmem:[#allocation2 + $0x2e4] ss:$8 sps:$4 sm:$0xff]  }
  0xed   : > { %1969 = vmatprep.subr.bf16.mxu0 %v2866_v3  ;;  %v2962_v3 = vld [vmem:[#allocation2 + $0x5e4] ss:$8 sps:$4 sm:$0xff]  }
  0xef   : > { %1841 = vmatpush1.bf16.msra.mxu1 %v2861_v4  ;;  %v2957_v4 = vld [vmem:[#allocation2 + $0x2e0] ss:$8 sps:$4 sm:$0xff]  }
  0xf0   : > { %1970 = vmatpush1.bf16.msra.mxu0 %v2864_v5  ;;  %1853 = vmatprep.subr.bf16.mxu1 %v2872_v6  ;;  %v2960_v5 = vld [vmem:[#allocation2 + $0x5e0] ss:$8 sps:$4 sm:$0xff]   ;;  %v2965_v6 = vld [vmem:[#allocation2 + $0x2f4] ss:$8 sps:$4 sm:$0xff]  }
  0xf1   : > { %1982 = vmatprep.subr.bf16.mxu0 %v2878_v7  ;;  %v2968_v7 = vld [vmem:[#allocation2 + $0x5f4] ss:$8 sps:$4 sm:$0xff]  }
  0xf2   : > { %1843 = vmatmul.mubr.bf16.vlgmr.msra.gmra.mrb[0].mxu1 %v2867_v8  ;;  %v2963_v8 = vld [vmem:[#allocation2 + $0x2f0] ss:$8 sps:$4 sm:$0xff]  }
  0xf3   : > { %1972 = vmatmul.mubr.bf16.vlgmr.msra.gmra.mrb[0].mxu0 %v2873_v10  ;;  %1854 = vmatpush1.bf16.msra.mxu1 %v2870_v9  ;;  %v2966_v9 = vld [vmem:[#allocation2 + $0x5f0] ss:$8 sps:$4 sm:$0xff]   ;;  %v2977_v10 = vld [vmem:[#allocation2 + $0x604] ss:$8 sps:$4 sm:$0xff]  }
  0xf4   : > { %1983 = vmatpush1.bf16.msra.mxu0 %v2876_v11  ;;  %1855 = vmatprep.subr.bf16.mxu1 %v2881_v12  ;;  %v2969_v11 = vld [vmem:[%s3342_s13 + $0x10] ss:$56 sps:$4 sm:$0xff]  }
  0xf5   : > { %1984 = vmatprep.subr.bf16.mxu0 %v2884_v13  ;;  %1885 = vmatprep.mubr.bf16.mxu1 %v2971_v19  ;;  %v2972_v12 = vld [vmem:[%s3342_s13 + $0x28] ss:$56 sps:$4 sm:$0xff]   ;;  %v2986_v19 = vld [vmem:[#allocation2 + $0x634] ss:$8 sps:$4 sm:$0xff]  }
  0xf6   : > { %2014 = vmatprep.mubr.bf16.mxu0 %v2974_v21  ;;  %v2975_v13 = vld [vmem:[#allocation2 + $0x600] ss:$8 sps:$4 sm:$0xff]   ;;  %v2989_v21 = vld [vmem:[#allocation2 + $0x644] ss:$8 sps:$4 sm:$0xff]  }
  0xf7   : > { %1856 = vmatpush1.bf16.msra.mxu1 %v2879_v14  ;;  %v3011_v14 = vld [vmem:[%s3342_s13 + $0x34] ss:$56 sps:$4 sm:$0xff]  }
  0xf8   : > { %1985 = vmatpush1.bf16.msra.mxu0 %v2882_v15  ;;  %1857 = vmatprep.subr.bf16.mxu1 %v2887_v16  ;;  %v2980_v15 = vld [vmem:[#allocation2 + $0x614] ss:$8 sps:$4 sm:$0xff]   ;;  %v2978_v16 = vld [vmem:[#allocation2 + $0x610] ss:$8 sps:$4 sm:$0xff]  }
  0xf9   : > { %1986 = vmatprep.subr.bf16.mxu0 %v2890_v17  ;;  %v2983_v17 = vld [vmem:[#allocation2 + $0x624] ss:$8 sps:$4 sm:$0xff]  }
  0xfb   : > { %1858 = vmatpush1.bf16.msra.mxu1 %v2885_v18  ;;  %v2981_v18 = vld [vmem:[#allocation2 + $0x620] ss:$8 sps:$4 sm:$0xff]  }
  0xfc   : > { %1987 = vmatpush1.bf16.msra.mxu0 %v2888_v20  ;;  %1859 = vmatprep.subr.bf16.mxu1 %v2893_v22  ;;  %v2984_v20 = vld [vmem:[#allocation2 + $0x630] ss:$8 sps:$4 sm:$0xff]   ;;  %v2987_v22 = vld [vmem:[#allocation2 + $0x640] ss:$8 sps:$4 sm:$0xff]  }
  0xfd   : > { %1988 = vmatprep.subr.bf16.mxu0 %v2896_v23  ;;  %v2992_v23 = vld [vmem:[#allocation2 + $0x654] ss:$8 sps:$4 sm:$0xff]  }
  0xff   : > { %1860 = vmatpush1.bf16.msra.mxu1 %v2891_v24  ;;  %v2990_v24 = vld [vmem:[#allocation2 + $0x650] ss:$8 sps:$4 sm:$0xff]  }
 0x100   : > { %1989 = vmatpush1.bf16.msra.mxu0 %v2894_v25  ;;  %1861 = vmatprep.subr.bf16.mxu1 %v2899_v26  ;;  %v2995_v25 = vld [vmem:[#allocation2 + $0x664] ss:$8 sps:$4 sm:$0xff]   ;;  %v2993_v26 = vld [vmem:[#allocation2 + $0x660] ss:$8 sps:$4 sm:$0xff]  }
 0x101   : > { %1990 = vmatprep.subr.bf16.mxu0 %v2902_v27  ;;  %v2998_v27 = vld [vmem:[#allocation2 + $0x674] ss:$8 sps:$4 sm:$0xff]  }
 0x103   : > { %1862 = vmatpush1.bf16.msra.mxu1 %v2897_v28  ;;  %v2996_v28 = vld [vmem:[#allocation2 + $0x670] ss:$8 sps:$4 sm:$0xff]  }
 0x104   : > { %1991 = vmatpush1.bf16.msra.mxu0 %v2900_v29  ;;  %1863 = vmatprep.subr.bf16.mxu1 %v2905_v30  ;;  %v3001_v29 = vld [vmem:[#allocation2 + $0x684] ss:$8 sps:$4 sm:$0xff]   ;;  %v2999_v30 = vld [vmem:[#allocation2 + $0x680] ss:$8 sps:$4 sm:$0xff]  }
 0x105   : > { %1992 = vmatprep.subr.bf16.mxu0 %v2908_v31  ;;  %v3004_v31 = vld [vmem:[#allocation2 + $0x694] ss:$8 sps:$4 sm:$0xff]  }
 0x107   : > { %1864 = vmatpush1.bf16.msra.mxu1 %v2903_v32  ;;  %v3002_v32 = vld [vmem:[#allocation2 + $0x690] ss:$8 sps:$4 sm:$0xff]  }
 0x108   : > { %1993 = vmatpush1.bf16.msra.mxu0 %v2906_v33  ;;  %1865 = vmatprep.subr.bf16.mxu1 %v2911_v34  ;;  %v3007_v33 = vld [vmem:[#allocation2 + $0x6a4] ss:$8 sps:$4 sm:$0xff]   ;;  %v3005_v34 = vld [vmem:[#allocation2 + $0x6a0] ss:$8 sps:$4 sm:$0xff]  }
 0x109   : > { %1994 = vmatprep.subr.bf16.mxu0 %v2914_v35  ;;  %v3010_v35 = vld [vmem:[#allocation2 + $0x6b4] ss:$8 sps:$4 sm:$0xff]  }
 0x10b   : > { %1866 = vmatpush1.bf16.msra.mxu1 %v2909_v36  ;;  %v3008_v36 = vld [vmem:[#allocation2 + $0x6b0] ss:$8 sps:$4 sm:$0xff]  }
 0x10c   : > { %1995 = vmatpush1.bf16.msra.mxu0 %v2912_v37  ;;  %1867 = vmatprep.subr.bf16.mxu1 %v2917_v38  ;;  %v3013_v37 = vld [vmem:[%s3342_s13 + $0x30] ss:$56 sps:$4 sm:$0xff]  }
 0x10d   : > { %1996 = vmatprep.subr.bf16.mxu0 %v2920_v39 }
 0x10f   : > { %1868 = vmatpush1.bf16.msra.mxu1 %v2915_v40 }
 0x110   : > { %1997 = vmatpush1.bf16.msra.mxu0 %v2918_v41  ;;  %1869 = vmatprep.subr.bf16.mxu1 %v2923_v42  ;;  %v604_v42 = vlaneseq }
 0x111   : > { %1998 = vmatprep.subr.bf16.mxu0 %v2926_v43 }
 0x112   : > { %v605_v43 = vshrl.u32 %v604_v42, 7 }
 0x113   : > { %1870 = vmatpush1.bf16.msra.mxu1 %v2921_v44 }
 0x114   : > { %1999 = vmatpush1.bf16.msra.mxu0 %v2924_v45  ;;  %1871 = vmatprep.subr.bf16.mxu1 %v2929_v46  ;;  %v606_v44 = vsub.s32 0, %v605_v43  ;;  %v602_v45 = vld [vmem:[#allocation4] sm:$0x3]  ;;  %v610_v46 = vsub.s32 1, %v605_v43 }
 0x115   : > { %2000 = vmatprep.subr.bf16.mxu0 %v2932_v47 }
 0x116   : > { %v607_v47 = vrot.slane %v602_v45, %v606_v44 }
 0x117   : > { %1872 = vmatpush1.bf16.msra.mxu1 %v2927_v48  ;;  %v611_v48 = vrot.slane %v602_v45, %v610_v46 }
 0x118   : > { %2001 = vmatpush1.bf16.msra.mxu0 %v2930_v49  ;;  %1873 = vmatprep.subr.bf16.mxu1 %v2935_v50  ;;  %v2072_v49 = vld [vmem:[#allocation6] sm:$0x3] }
 0x119   : > { %2002 = vmatprep.subr.bf16.mxu0 %v2938_v51 }
 0x11b   : > { %1874 = vmatpush1.bf16.msra.mxu1 %v2933_v52 }
 0x11c   : > { %2003 = vmatpush1.bf16.msra.mxu0 %v2936_v53  ;;  %1875 = vmatprep.subr.bf16.mxu1 %v2941_v54  ;;  %v2088_v53 = vld [vmem:[#allocation7] sm:$0x3] }
 0x11d   : > { %2004 = vmatprep.subr.bf16.mxu0 %v2944_v55 }
 0x11f   : > { %1876 = vmatpush1.bf16.msra.mxu1 %v2939_v56  ;;  %v2077_v56 = vrot.slane %v2072_v49, %v606_v44 }
 0x120   : > { %2005 = vmatpush1.bf16.msra.mxu0 %v2942_v57  ;;  %1877 = vmatprep.subr.bf16.mxu1 %v2947_v58 }
 0x121   : > { %2006 = vmatprep.subr.bf16.mxu0 %v2950_v59 }
 0x123   : > { %1878 = vmatpush1.bf16.msra.mxu1 %v2945_v60  ;;  %v2081_v60 = vrot.slane %v2072_v49, %v610_v46 }
 0x124   : > { %2007 = vmatpush1.bf16.msra.mxu0 %v2948_v61  ;;  %1879 = vmatprep.subr.bf16.mxu1 %v2953_v62 }
 0x125   : > { %2008 = vmatprep.subr.bf16.mxu0 %v2956_v63  ;;  %v2093_v63 = vrot.slane %v2088_v53, %v606_v44 }
 0x127   : > { %1880 = vmatpush1.bf16.msra.mxu1 %v2951_v0 }
 0x128   : > { %2009 = vmatpush1.bf16.msra.mxu0 %v2954_v1  ;;  %1881 = vmatprep.subr.bf16.mxu1 %v2959_v2 }
 0x129   : > { %2010 = vmatprep.subr.bf16.mxu0 %v2962_v3  ;;  %v2097_v3 = vrot.slane %v2088_v53, %v610_v46 }
 0x12b   : > { %1882 = vmatpush1.bf16.msra.mxu1 %v2957_v4 }
 0x12c   : > { %2011 = vmatpush1.bf16.msra.mxu0 %v2960_v5  ;;  %1883 = vmatprep.subr.bf16.mxu1 %v2965_v6 }
 0x12d   : > { %2012 = vmatprep.subr.bf16.mxu0 %v2968_v7 }
 0x12f   : > { %1884 = vmatpush1.bf16.msra.mxu1 %v2963_v8 }
 0x130   : > { %2013 = vmatpush1.bf16.msra.mxu0 %v2966_v9 }
 0x131   : > { %2025 = vmatprep.subr.bf16.mxu0 %v2977_v10 }
 0x132   : > { %1886 = vmatmul.mubr.bf16.vlgmr.msra.gmra.mrb[0].mxu1 %v2969_v11 }
 0x133   : > { %2015 = vmatmul.mubr.bf16.vlgmr.msra.gmra.mrb[0].mxu0 %v2972_v12 }
 0x134   : > { %2026 = vmatpush1.bf16.msra.mxu0 %v2975_v13  ;;  %2571 = vmatprep.mubr.msk.bf16.mxu0 %vm1763_vm0, %v3011_v14 }
 0x135   : > { %2027 = vmatprep.subr.bf16.mxu0 %v2980_v15 }
 0x138   : > { %2028 = vmatpush1.bf16.msra.mxu0 %v2978_v16 }
 0x139   : > { %2029 = vmatprep.subr.bf16.mxu0 %v2983_v17 }
 0x13c   : > { %2030 = vmatpush1.bf16.msra.mxu0 %v2981_v18 }
 0x13d   : > { %2031 = vmatprep.subr.bf16.mxu0 %v2986_v19 }
 0x140   : > { %2032 = vmatpush1.bf16.msra.mxu0 %v2984_v20 }
 0x141   : > { %2033 = vmatprep.subr.bf16.mxu0 %v2989_v21 }
 0x144   : > { %2034 = vmatpush1.bf16.msra.mxu0 %v2987_v22 }
 0x145   : > { %2035 = vmatprep.subr.bf16.mxu0 %v2992_v23 }
 0x148   : > { %2036 = vmatpush1.bf16.msra.mxu0 %v2990_v24 }
 0x149   : > { %2037 = vmatprep.subr.bf16.mxu0 %v2995_v25 }
 0x14c   : > { %2038 = vmatpush1.bf16.msra.mxu0 %v2993_v26 }
 0x14d   : > { %2039 = vmatprep.subr.bf16.mxu0 %v2998_v27 }
 0x150   : > { %2040 = vmatpush1.bf16.msra.mxu0 %v2996_v28 }
 0x151   : > { %2041 = vmatprep.subr.bf16.mxu0 %v3001_v29 }
 0x154   : > { %2042 = vmatpush1.bf16.msra.mxu0 %v2999_v30 }
 0x155   : > { %2043 = vmatprep.subr.bf16.mxu0 %v3004_v31 }
 0x158   : > { %2044 = vmatpush1.bf16.msra.mxu0 %v3002_v32 }
 0x159   : > { %2045 = vmatprep.subr.bf16.mxu0 %v3007_v33 }
 0x15c   : > { %2046 = vmatpush1.bf16.msra.mxu0 %v3005_v34 }
 0x15d   : > { %2047 = vmatprep.subr.bf16.mxu0 %v3010_v35 }
 0x160   : > { %2048 = vmatpush1.bf16.msra.mxu0 %v3008_v36 }
 0x163   : > { %2058 = vmatmul.mubr.bf16.vlgmr.msra.gmra.mrb[0].mxu0 %v3013_v37 }
 0x205   : > { %v1887_v38 = vpop.f32.mrb[0].mxu1 }
 0x206   : > { %v1889_v39 = vpop.f32.mrb[1].mxu1  ;;  %v2589_v50 = vadd.f32 %v1887_v38, %v607_v47 }
 0x207   : > { %v1891_v40 = vpop.f32.mrb[2].mxu1  ;;  %v2591_v51 = vadd.f32 %v1889_v39, %v611_v48 }
 0x208   : > { %v1893_v41 = vpop.f32.mrb[3].mxu1  ;;  %v2593_v54 = vadd.f32 %v1891_v40, %v607_v47 }
 0x209   : > { %v2595_v58 = vadd.f32 %v1893_v41, %v611_v48 }
 0x236   : > { %v2059_v52 = vpop.f32.mrb[0].mxu0 }
 0x237   : > { %v2590_v55 = vadd.f32 %v2589_v50, %v2059_v52  ;;  %v2061_v57 = vpop.f32.mrb[1].mxu0 }
 0x238   : > { %v2592_v59 = vadd.f32 %v2591_v51, %v2061_v57  ;;  %v2063_v61 = vpop.f32.mrb[2].mxu0 }
 0x239   : > { %v2068_v62 = vmax.f32 %v2590_v55, 0.0  ;;  %v2594_v0 = vadd.f32 %v2593_v54, %v2063_v61  ;;  %v2065_v1 = vpop.f32.mrb[3].mxu0 }
 0x23a   : > { %v2069_v2 = vmax.f32 %v2592_v59, 0.0  ;;  %v2583_v4 = vpack.c.bf16 %v2592_v59, %v2590_v55  ;;  %v2596_v5 = vadd.f32 %v2595_v58, %v2065_v1 }
 0x23b   : > { %v2084_v6 = vmul.f32 %v2077_v56, %v2068_v62  ;;  %v2070_v7 = vmax.f32 %v2594_v0, 0.0 }
 0x23c   : > { %v2085_v8 = vmul.f32 %v2081_v60, %v2069_v2  ;;  %2116 = vst [vmem:[%s355_s15] sm:$0xff] %v2583_v4  ;;  %v2585_v9 = vpack.c.bf16 %v2069_v2, %v2068_v62  ;;  %v2071_v10 = vmax.f32 %v2596_v5, 0.0  ;;  %v2584_v11 = vpack.c.bf16 %v2596_v5, %v2594_v0 }
 0x23d   : > { %v2100_v12 = vadd.f32 %v2093_v63, %v2084_v6  ;;  %v2086_v13 = vmul.f32 %v2077_v56, %v2070_v7 }
 0x23e   : > { %v2101_v14 = vadd.f32 %v2097_v3, %v2085_v8  ;;  %2130 = vst [vmem:[%s362_s17] sm:$0xff] %v2585_v9  ;;  %v2087_v15 = vmul.f32 %v2081_v60, %v2071_v10  ;;  %2117 = vst [vmem:[%s355_s15 + $0x8] sm:$0xff] %v2584_v11  ;;  %v2586_v16 = vpack.c.bf16 %v2071_v10, %v2070_v7 }
 0x23f   : > { %v2102_v17 = vadd.f32 %v2093_v63, %v2086_v13 }
 0x240   : > { %v2587_v18 = vpack.c.bf16 %v2101_v14, %v2100_v12  ;;  %v2103_v19 = vadd.f32 %v2097_v3, %v2087_v15  ;;  %2131 = vst [vmem:[%s362_s17 + $0x8] sm:$0xff] %v2586_v16 }
 0x242   : > { %2144 = vst [vmem:[%s369_s20] sm:$0xff] %v2587_v18  ;;  %v2588_v20 = vpack.c.bf16 %v2103_v19, %v2102_v17 }
 0x244   : > { %2145 = vst [vmem:[%s369_s20 + $0x8] sm:$0xff] %v2588_v20 }
 0x245 PF: > { %s21_s24 = sadd.s32 1, %s3144_s24  }
 0x246   : > { %p18_p3 = scmp.ge.s32.totalorder %s21_s24, 4  }
 0x248   :  { %20 = sbr.rel (!%p18_p3) target bundleno = 3 (0x3), region = 111 }
 0x24f   :  { %2208 = vsyncpa [#allocation3], 1 }
 0x250   :  { %2210 = vsyncpa [#allocation3 + $0x1], 1 }
 0x251   :  { %2211 = vsyncpa [#allocation5], 1 }
 0x252   :  { %2212 = vsyncpa [#allocation8], 1 }

// kernel: net_forward.3
= control target key start
LH: loop header
LB: loop body
LE: loop exit
PB: predicated region body
PF: predicated region fallthrough
CT: control target
= control target key end

     0   :  { %v1062_v38 = vlaneseq  ;;  %v9486_v39 = vmov 1966171168   ;;  %s12249_s0 = inlined_call_operand.vmem [shape: bf16[2,4096], index: 0, kind: input, shape index: {}]   ;;  %s12250_s1 = inlined_call_operand.vmem [shape: bf16[4096,384], index: 1, kind: input, shape index: {}]   ;;  %s12251_s2 = inlined_call_operand.vmem [shape: f32[1,384], index: 2, kind: input, shape index: {}]   ;;  %s12252_s3 = inlined_call_operand.vmem [shape: f32[1,384], index: 3, kind: input, shape index: {}]   ;;  %s12253_s4 = inlined_call_operand.vmem [shape: f32[1,384], index: 4, kind: input, shape index: {}]   ;;  %s12254_s5 = inlined_call_operand.vmem [shape: bf16[384,128], index: 5, kind: input, shape index: {}]   ;;  %s12255_s6 = inlined_call_operand.vmem [shape: f32[1,128], index: 6, kind: input, shape index: {}]   ;;  %s12256_s7 = inlined_call_operand.vmem [shape: bf16[2,384], index: 7, kind: output, shape index: {0}]   ;;  %s12257_s8 = inlined_call_operand.vmem [shape: bf16[2,384], index: 8, kind: output, shape index: {1}]   ;;  %s12258_s9 = inlined_call_operand.vmem [shape: bf16[2,384], index: 9, kind: output, shape index: {2}]   ;;  %s12259_s10 = inlined_call_operand.hbm [shape: f32[2,128], index: 10, kind: output, shape index: {3}]  }
   0x1   :  { %v8409_v0 = vld [vmem:[%s12250_s1 + $0x4] ss:$12 sps:$4 sm:$0xff]   ;;  %v8413_v2 = vld [vmem:[%s12250_s1] ss:$12 sps:$4 sm:$0xff]   ;;  %v8415_v4 = vld [vmem:[%s12250_s1 + $0x1c] ss:$12 sps:$4 sm:$0xff]   ;;  %v1083_v40 = vunpack.c.l.s4 %v9486_v39 }
   0x2   :  { %v8411_v1 = vld [vmem:[%s12250_s1 + $0x484] ss:$12 sps:$4 sm:$0xff]   ;;  %5405 = vmatprep.subr.bf16.mxu1 %v8409_v0  ;;  %v8414_v3 = vld [vmem:[%s12250_s1 + $0x480] ss:$12 sps:$4 sm:$0xff]   ;;  %v8417_v5 = vld [vmem:[%s12250_s1 + $0x49c] ss:$12 sps:$4 sm:$0xff]  }
   0x3   :  { %5528 = vmatprep.subr.bf16.mxu0 %v8411_v1  ;;  %5406 = vmatpush1.bf16.msra.mxu1 %v8413_v2  ;;  %v8419_v6 = vld [vmem:[%s12250_s1 + $0x18] ss:$12 sps:$4 sm:$0xff]   ;;  %v8421_v8 = vld [vmem:[%s12250_s1 + $0x34] ss:$12 sps:$4 sm:$0xff]   ;;  %v8425_v10 = vld [vmem:[%s12250_s1 + $0x30] ss:$12 sps:$4 sm:$0xff]   ;;  %v1084_v46 = vunpack.c.0.s8 %v1083_v40 }
   0x4   :  { %5529 = vmatpush1.bf16.msra.mxu0 %v8414_v3  ;;  %5407 = vmatprep.subr.bf16.mxu1 %v8415_v4  ;;  %v8420_v7 = vld [vmem:[%s12250_s1 + $0x498] ss:$12 sps:$4 sm:$0xff]   ;;  %v8423_v9 = vld [vmem:[%s12250_s1 + $0x4b4] ss:$12 sps:$4 sm:$0xff]   ;;  %v8426_v11 = vld [vmem:[%s12250_s1 + $0x4b0] ss:$12 sps:$4 sm:$0xff]  }
   0x5   :  { %5530 = vmatprep.subr.bf16.mxu0 %v8417_v5  ;;  %v8427_v12 = vld [vmem:[%s12250_s1 + $0x4c] ss:$12 sps:$4 sm:$0xff]   ;;  %v8431_v14 = vld [vmem:[%s12250_s1 + $0x48] ss:$12 sps:$4 sm:$0xff]   ;;  %v8433_v16 = vld [vmem:[%s12250_s1 + $0x64] ss:$12 sps:$4 sm:$0xff]  }
   0x6   :  { %v8429_v13 = vld [vmem:[%s12250_s1 + $0x4cc] ss:$12 sps:$4 sm:$0xff]   ;;  %v8432_v15 = vld [vmem:[%s12250_s1 + $0x4c8] ss:$12 sps:$4 sm:$0xff]   ;;  %v8435_v17 = vld [vmem:[%s12250_s1 + $0x4e4] ss:$12 sps:$4 sm:$0xff]  }
   0x7   :  { %5408 = vmatpush1.bf16.msra.mxu1 %v8419_v6  ;;  %v8437_v18 = vld [vmem:[%s12250_s1 + $0x60] ss:$12 sps:$4 sm:$0xff]   ;;  %v8439_v20 = vld [vmem:[%s12250_s1 + $0x7c] ss:$12 sps:$4 sm:$0xff]   ;;  %v8443_v22 = vld [vmem:[%s12250_s1 + $0x78] ss:$12 sps:$4 sm:$0xff]  }
   0x8   :  { %5531 = vmatpush1.bf16.msra.mxu0 %v8420_v7  ;;  %5409 = vmatprep.subr.bf16.mxu1 %v8421_v8  ;;  %v8438_v19 = vld [vmem:[%s12250_s1 + $0x4e0] ss:$12 sps:$4 sm:$0xff]   ;;  %v8441_v21 = vld [vmem:[%s12250_s1 + $0x4fc] ss:$12 sps:$4 sm:$0xff]   ;;  %v8444_v23 = vld [vmem:[%s12250_s1 + $0x4f8] ss:$12 sps:$4 sm:$0xff]  }
   0x9   :  { %5532 = vmatprep.subr.bf16.mxu0 %v8423_v9  ;;  %v8445_v24 = vld [vmem:[%s12250_s1 + $0x94] ss:$12 sps:$4 sm:$0xff]   ;;  %v8449_v26 = vld [vmem:[%s12250_s1 + $0x90] ss:$12 sps:$4 sm:$0xff]   ;;  %v8451_v28 = vld [vmem:[%s12250_s1 + $0xac] ss:$12 sps:$4 sm:$0xff]  }
   0xa   :  { %v8447_v25 = vld [vmem:[%s12250_s1 + $0x514] ss:$12 sps:$4 sm:$0xff]   ;;  %v8450_v27 = vld [vmem:[%s12250_s1 + $0x510] ss:$12 sps:$4 sm:$0xff]   ;;  %v8453_v29 = vld [vmem:[%s12250_s1 + $0x52c] ss:$12 sps:$4 sm:$0xff]  }
   0xb   :  { %5410 = vmatpush1.bf16.msra.mxu1 %v8425_v10  ;;  %v8455_v30 = vld [vmem:[%s12250_s1 + $0xa8] ss:$12 sps:$4 sm:$0xff]   ;;  %v8457_v32 = vld [vmem:[%s12250_s1 + $0xc4] ss:$12 sps:$4 sm:$0xff]   ;;  %v8461_v34 = vld [vmem:[%s12250_s1 + $0xc0] ss:$12 sps:$4 sm:$0xff]  }
   0xc   :  { %5533 = vmatpush1.bf16.msra.mxu0 %v8426_v11  ;;  %5411 = vmatprep.subr.bf16.mxu1 %v8427_v12  ;;  %v8456_v31 = vld [vmem:[%s12250_s1 + $0x528] ss:$12 sps:$4 sm:$0xff]   ;;  %v8459_v33 = vld [vmem:[%s12250_s1 + $0x544] ss:$12 sps:$4 sm:$0xff]   ;;  %v8462_v35 = vld [vmem:[%s12250_s1 + $0x540] ss:$12 sps:$4 sm:$0xff]  }
   0xd   :  { %5534 = vmatprep.subr.bf16.mxu0 %v8429_v13  ;;  %v8463_v36 = vld [vmem:[%s12250_s1 + $0xdc] ss:$12 sps:$4 sm:$0xff]   ;;  %v8467_v41 = vld [vmem:[%s12250_s1 + $0xd8] ss:$12 sps:$4 sm:$0xff]   ;;  %v8469_v43 = vld [vmem:[%s12250_s1 + $0xf4] ss:$12 sps:$4 sm:$0xff]  }
   0xe   :  { %v8465_v37 = vld [vmem:[%s12250_s1 + $0x55c] ss:$12 sps:$4 sm:$0xff]   ;;  %v8468_v42 = vld [vmem:[%s12250_s1 + $0x558] ss:$12 sps:$4 sm:$0xff]   ;;  %v8471_v44 = vld [vmem:[%s12250_s1 + $0x574] ss:$12 sps:$4 sm:$0xff]  }
   0xf   :  { %5412 = vmatpush1.bf16.msra.mxu1 %v8431_v14  ;;  %v9671_v45 = vshrl.u32 %v1062_v38, 7  ;;  %v8473_v47 = vld [vmem:[%s12250_s1 + $0xf0] ss:$12 sps:$4 sm:$0xff]   ;;  %v8475_v49 = vld [vmem:[%s12250_s1 + $0x10c] ss:$12 sps:$4 sm:$0xff]   ;;  %v32_v52 = vld [vmem:[%s12249_s0] sm:$0xff] }
  0x10   :  { %5535 = vmatpush1.bf16.msra.mxu0 %v8432_v15  ;;  %5413 = vmatprep.subr.bf16.mxu1 %v8433_v16  ;;  %v8474_v48 = vld [vmem:[%s12250_s1 + $0x570] ss:$12 sps:$4 sm:$0xff]   ;;  %v8477_v50 = vld [vmem:[%s12250_s1 + $0x58c] ss:$12 sps:$4 sm:$0xff]   ;;  %v8479_v53 = vld [vmem:[%s12250_s1 + $0x108] ss:$12 sps:$4 sm:$0xff]   ;;  %v1081_v54 = vcombine.high %v32_v52, %v32_v52 }
  0x11   :  { %5536 = vmatprep.subr.bf16.mxu0 %v8435_v17  ;;  %v9686_v51 = vsub.s32 %v1084_v46, %v9671_v45  ;;  %v8480_v56 = vld [vmem:[%s12250_s1 + $0x588] ss:$12 sps:$4 sm:$0xff]   ;;  %v8481_v57 = vld [vmem:[%s12250_s1 + $0x124] ss:$12 sps:$4 sm:$0xff]   ;;  %v8485_v61 = vld [vmem:[%s12250_s1 + $0x120] ss:$12 sps:$4 sm:$0xff]  }
  0x12   :  { %v8483_v58 = vld [vmem:[%s12250_s1 + $0x5a4] ss:$12 sps:$4 sm:$0xff]   ;;  %v8486_v0 = vld [vmem:[%s12250_s1 + $0x5a0] ss:$12 sps:$4 sm:$0xff]   ;;  %v8487_v1 = vld [vmem:[%s12250_s1 + $0x13c] ss:$12 sps:$4 sm:$0xff]  }
  0x13   :  { %5414 = vmatpush1.bf16.msra.mxu1 %v8437_v18  ;;  %v1088_v55 = vrot.slane %v32_v52, %v9686_v51  ;;  %v1095_v60 = vrot.slane %v1081_v54, %v9686_v51  ;;  %v8489_v2 = vld [vmem:[%s12250_s1 + $0x5bc] ss:$12 sps:$4 sm:$0xff]   ;;  %v8491_v4 = vld [vmem:[%s12250_s1 + $0x138] ss:$12 sps:$4 sm:$0xff]   ;;  %v8493_v7 = vld [vmem:[%s12250_s1 + $0x154] ss:$12 sps:$4 sm:$0xff]  }
  0x14   :  { %5537 = vmatpush1.bf16.msra.mxu0 %v8438_v19  ;;  %5415 = vmatprep.subr.bf16.mxu1 %v8439_v20  ;;  %v8492_v6 = vld [vmem:[%s12250_s1 + $0x5b8] ss:$12 sps:$4 sm:$0xff]   ;;  %v8495_v8 = vld [vmem:[%s12250_s1 + $0x5d4] ss:$12 sps:$4 sm:$0xff]   ;;  %v8497_v9 = vld [vmem:[%s12250_s1 + $0x150] ss:$12 sps:$4 sm:$0xff]  }
  0x15   :  { %5538 = vmatprep.subr.bf16.mxu0 %v8441_v21  ;;  %v1096_v59 = vcombine.high %v1088_v55, %v1088_v55  ;;  %v1097_v63 = vcombine.high %v1095_v60, %v1095_v60  ;;  %v8498_v10 = vld [vmem:[%s12250_s1 + $0x5d0] ss:$12 sps:$4 sm:$0xff]   ;;  %v8499_v11 = vld [vmem:[%s12250_s1 + $0x16c] ss:$12 sps:$4 sm:$0xff]   ;;  %v8503_v13 = vld [vmem:[%s12250_s1 + $0x168] ss:$12 sps:$4 sm:$0xff]   ;;  %v9757_v14 = vrot.slane %v1095_v60, %v9686_v51  ;;  %v9772_v19 = vrot.slane %v1088_v55, %v9686_v51 }
  0x16   :  { %v8501_v12 = vld [vmem:[%s12250_s1 + $0x5ec] ss:$12 sps:$4 sm:$0xff]   ;;  %v8504_v15 = vld [vmem:[%s12250_s1 + $0x5e8] ss:$12 sps:$4 sm:$0xff]   ;;  %v8508_v16 = vld [vmem:[%s12250_s1 + $0x184] ss:$12 sps:$4 sm:$0xff]  }
  0x17   :  { %5416 = vmatpush1.bf16.msra.mxu1 %v8443_v22  ;;  %v9709_v62 = vrot.slane %v1096_v59, %v9686_v51  ;;  %v9721_v3 = vrot.slane %v1097_v63, %v9686_v51  ;;  %v8511_v17 = vld [vmem:[%s12250_s1 + $0x604] ss:$12 sps:$4 sm:$0xff]   ;;  %v8506_v18 = vld [vmem:[%s12250_s1 + $0x180] ss:$12 sps:$4 sm:$0xff]   ;;  %v9776_v20 = vcombine.high %v9757_v14, %v9757_v14  ;;  %v8514_v22 = vld [vmem:[%s12250_s1 + $0x19c] ss:$12 sps:$4 sm:$0xff]  }
  0x18   :  { %5539 = vmatpush1.bf16.msra.mxu0 %v8444_v23  ;;  %5417 = vmatprep.subr.bf16.mxu1 %v8445_v24  ;;  %v8509_v21 = vld [vmem:[%s12250_s1 + $0x600] ss:$12 sps:$4 sm:$0xff]   ;;  %v8517_v23 = vld [vmem:[%s12250_s1 + $0x61c] ss:$12 sps:$4 sm:$0xff]  }
  0x19   :  { %5540 = vmatprep.subr.bf16.mxu0 %v8447_v25  ;;  %5437 = vmatprep.mubr.bf16.mxu1 %v9709_v62  ;;  %v9729_v5 = vcombine.high %v9721_v3, %v9721_v3  ;;  %v9789_v24 = vcombine.high %v9709_v62, %v9709_v62  ;;  %v8512_v25 = vld [vmem:[%s12250_s1 + $0x198] ss:$12 sps:$4 sm:$0xff]   ;;  %v8533_v38 = vld [vmem:[%s12250_s1 + $0x660] ss:$12 sps:$4 sm:$0xff]   ;;  %v8538_v39 = vld [vmem:[%s12250_s1 + $0x1fc] ss:$12 sps:$4 sm:$0xff]  }
  0x1a   :  { %v8541_v40 = vld [vmem:[%s12250_s1 + $0x67c] ss:$12 sps:$4 sm:$0xff]   ;;  %v8553_v52 = vld [vmem:[%s12250_s1 + $0x6ac] ss:$12 sps:$4 sm:$0xff]  }
  0x1b   :  { %5418 = vmatpush1.bf16.msra.mxu1 %v8449_v26  ;;  %5560 = vmatprep.mubr.bf16.mxu0 %v9729_v5  ;;  %v8515_v26 = vld [vmem:[%s12250_s1 + $0x618] ss:$12 sps:$4 sm:$0xff]   ;;  %v9857_v46 = vld [vmem:[%s12249_s0 + $0x8] sm:$0xff] }
  0x1c   :  { %5541 = vmatpush1.bf16.msra.mxu0 %v8450_v27  ;;  %5419 = vmatprep.subr.bf16.mxu1 %v8451_v28  ;;  %v8520_v27 = vld [vmem:[%s12250_s1 + $0x1b4] ss:$12 sps:$4 sm:$0xff]   ;;  %v8565_v63 = vld [vmem:[%s12250_s1 + $0x6dc] ss:$12 sps:$4 sm:$0xff]  }
  0x1d   :  { %5542 = vmatprep.subr.bf16.mxu0 %v8453_v29  ;;  %v8523_v28 = vld [vmem:[%s12250_s1 + $0x634] ss:$12 sps:$4 sm:$0xff]   ;;  %v8518_v29 = vld [vmem:[%s12250_s1 + $0x1b0] ss:$12 sps:$4 sm:$0xff]  }
  0x1e   :  { %v8548_v54 = vld [vmem:[%s12250_s1 + $0x228] ss:$12 sps:$4 sm:$0xff]   ;;  %v8554_v59 = vld [vmem:[%s12250_s1 + $0x240] ss:$12 sps:$4 sm:$0xff]  }
  0x1f   :  { %5420 = vmatpush1.bf16.msra.mxu1 %v8455_v30  ;;  %v8521_v30 = vld [vmem:[%s12250_s1 + $0x630] ss:$12 sps:$4 sm:$0xff]   ;;  %v8551_v55 = vld [vmem:[%s12250_s1 + $0x6a8] ss:$12 sps:$4 sm:$0xff]   ;;  %v8557_v60 = vld [vmem:[%s12250_s1 + $0x6c0] ss:$12 sps:$4 sm:$0xff]  }
  0x20   :  { %5543 = vmatpush1.bf16.msra.mxu0 %v8456_v31  ;;  %5421 = vmatprep.subr.bf16.mxu1 %v8457_v32  ;;  %v8526_v31 = vld [vmem:[%s12250_s1 + $0x1cc] ss:$12 sps:$4 sm:$0xff]  }
  0x21   :  { %5544 = vmatprep.subr.bf16.mxu0 %v8459_v33  ;;  %v8529_v32 = vld [vmem:[%s12250_s1 + $0x64c] ss:$12 sps:$4 sm:$0xff]   ;;  %v8524_v33 = vld [vmem:[%s12250_s1 + $0x1c8] ss:$12 sps:$4 sm:$0xff]  }
  0x23   :  { %5422 = vmatpush1.bf16.msra.mxu1 %v8461_v34  ;;  %v8527_v34 = vld [vmem:[%s12250_s1 + $0x648] ss:$12 sps:$4 sm:$0xff]  }
  0x24   :  { %5545 = vmatpush1.bf16.msra.mxu0 %v8462_v35  ;;  %5423 = vmatprep.subr.bf16.mxu1 %v8463_v36  ;;  %v8532_v35 = vld [vmem:[%s12250_s1 + $0x1e4] ss:$12 sps:$4 sm:$0xff]  }
  0x25   :  { %5546 = vmatprep.subr.bf16.mxu0 %v8465_v37  ;;  %v8535_v36 = vld [vmem:[%s12250_s1 + $0x664] ss:$12 sps:$4 sm:$0xff]   ;;  %v8530_v37 = vld [vmem:[%s12250_s1 + $0x1e0] ss:$12 sps:$4 sm:$0xff]  }
  0x27   :  { %5424 = vmatpush1.bf16.msra.mxu1 %v8467_v41  ;;  %v8536_v41 = vld [vmem:[%s12250_s1 + $0x1f8] ss:$12 sps:$4 sm:$0xff]  }
  0x28   :  { %5547 = vmatpush1.bf16.msra.mxu0 %v8468_v42  ;;  %5425 = vmatprep.subr.bf16.mxu1 %v8469_v43  ;;  %v8539_v42 = vld [vmem:[%s12250_s1 + $0x678] ss:$12 sps:$4 sm:$0xff]   ;;  %v8544_v43 = vld [vmem:[%s12250_s1 + $0x214] ss:$12 sps:$4 sm:$0xff]  }
  0x29   :  { %5548 = vmatprep.subr.bf16.mxu0 %v8471_v44  ;;  %v8547_v44 = vld [vmem:[%s12250_s1 + $0x694] ss:$12 sps:$4 sm:$0xff]  }
  0x2b   :  { %5426 = vmatpush1.bf16.msra.mxu1 %v8473_v47  ;;  %v8542_v47 = vld [vmem:[%s12250_s1 + $0x210] ss:$12 sps:$4 sm:$0xff]  }
  0x2c   :  { %5549 = vmatpush1.bf16.msra.mxu0 %v8474_v48  ;;  %5427 = vmatprep.subr.bf16.mxu1 %v8475_v49  ;;  %v8545_v48 = vld [vmem:[%s12250_s1 + $0x690] ss:$12 sps:$4 sm:$0xff]   ;;  %v9867_v49 = vrot.slane %v9857_v46, %v9686_v51 }
  0x2d   :  { %5550 = vmatprep.subr.bf16.mxu0 %v8477_v50  ;;  %v8550_v50 = vld [vmem:[%s12250_s1 + $0x22c] ss:$12 sps:$4 sm:$0xff]  }
  0x2f   :  { %5428 = vmatpush1.bf16.msra.mxu1 %v8479_v53  ;;  %v1145_v53 = vcombine.high %v9867_v49, %v9867_v49 }
  0x30   :  { %5551 = vmatpush1.bf16.msra.mxu0 %v8480_v56  ;;  %5429 = vmatprep.subr.bf16.mxu1 %v8481_v57  ;;  %v8556_v57 = vld [vmem:[%s12250_s1 + $0x244] ss:$12 sps:$4 sm:$0xff]  }
  0x31   :  { %5552 = vmatprep.subr.bf16.mxu0 %v8483_v58  ;;  %v9884_v56 = vrot.slane %v1145_v53, %v9686_v51  ;;  %v8559_v58 = vld [vmem:[%s12250_s1 + $0x6c4] ss:$12 sps:$4 sm:$0xff]   ;;  %v8623_v53 = vld [vmem:[%s12250_s1 + $0x7c8] ss:$12 sps:$4 sm:$0xff]  }
  0x33   :  { %5430 = vmatpush1.bf16.msra.mxu1 %v8485_v61  ;;  %v8562_v61 = vld [vmem:[%s12250_s1 + $0x25c] ss:$12 sps:$4 sm:$0xff]  }
  0x34   :  { %5553 = vmatpush1.bf16.msra.mxu0 %v8486_v0  ;;  %5431 = vmatprep.subr.bf16.mxu1 %v8487_v1  ;;  %v8560_v0 = vld [vmem:[%s12250_s1 + $0x258] ss:$12 sps:$4 sm:$0xff]  }
  0x35   :  { %5554 = vmatprep.subr.bf16.mxu0 %v8489_v2  ;;  %v8563_v1 = vld [vmem:[%s12250_s1 + $0x6d8] ss:$12 sps:$4 sm:$0xff]   ;;  %v8568_v2 = vld [vmem:[%s12250_s1 + $0x274] ss:$12 sps:$4 sm:$0xff]  }
  0x37   :  { %5432 = vmatpush1.bf16.msra.mxu1 %v8491_v4  ;;  %v8571_v4 = vld [vmem:[%s12250_s1 + $0x6f4] ss:$12 sps:$4 sm:$0xff]  }
  0x38   :  { %5555 = vmatpush1.bf16.msra.mxu0 %v8492_v6  ;;  %5433 = vmatprep.subr.bf16.mxu1 %v8493_v7  ;;  %v8566_v6 = vld [vmem:[%s12250_s1 + $0x270] ss:$12 sps:$4 sm:$0xff]  }
  0x39   :  { %5556 = vmatprep.subr.bf16.mxu0 %v8495_v8  ;;  %v8569_v7 = vld [vmem:[%s12250_s1 + $0x6f0] ss:$12 sps:$4 sm:$0xff]   ;;  %v8574_v8 = vld [vmem:[%s12250_s1 + $0x28c] ss:$12 sps:$4 sm:$0xff]  }
  0x3b   :  { %5434 = vmatpush1.bf16.msra.mxu1 %v8497_v9  ;;  %v8577_v9 = vld [vmem:[%s12250_s1 + $0x70c] ss:$12 sps:$4 sm:$0xff]  }
  0x3c   :  { %5557 = vmatpush1.bf16.msra.mxu0 %v8498_v10  ;;  %5435 = vmatprep.subr.bf16.mxu1 %v8499_v11  ;;  %v8572_v10 = vld [vmem:[%s12250_s1 + $0x288] ss:$12 sps:$4 sm:$0xff]  }
  0x3d   :  { %5558 = vmatprep.subr.bf16.mxu0 %v8501_v12  ;;  %v8575_v11 = vld [vmem:[%s12250_s1 + $0x708] ss:$12 sps:$4 sm:$0xff]   ;;  %v8580_v12 = vld [vmem:[%s12250_s1 + $0x2a4] ss:$12 sps:$4 sm:$0xff]  }
  0x3f   :  { %5436 = vmatpush1.bf16.msra.mxu1 %v8503_v13  ;;  %v8583_v13 = vld [vmem:[%s12250_s1 + $0x724] ss:$12 sps:$4 sm:$0xff]  }
  0x40   :  { %5559 = vmatpush1.bf16.msra.mxu0 %v8504_v15  ;;  %5446 = vmatprep.subr.bf16.mxu1 %v8508_v16  ;;  %v8578_v15 = vld [vmem:[%s12250_s1 + $0x2a0] ss:$12 sps:$4 sm:$0xff]  }
  0x41   :  { %5569 = vmatprep.subr.bf16.mxu0 %v8511_v17  ;;  %v8581_v16 = vld [vmem:[%s12250_s1 + $0x720] ss:$12 sps:$4 sm:$0xff]   ;;  %v8586_v17 = vld [vmem:[%s12250_s1 + $0x2bc] ss:$12 sps:$4 sm:$0xff]  }
  0x42   :  { %5438 = vmatmul.mubr.bf16.vlgmr.msra.gmra.mrb[0].mxu1 %v9772_v19 }
  0x43   :  { %5561 = vmatmul.mubr.bf16.vlgmr.msra.gmra.mrb[0].mxu0 %v9776_v20  ;;  %5447 = vmatpush1.bf16.msra.mxu1 %v8506_v18  ;;  %v8589_v18 = vld [vmem:[%s12250_s1 + $0x73c] ss:$12 sps:$4 sm:$0xff]  }
  0x44   :  { %5570 = vmatpush1.bf16.msra.mxu0 %v8509_v21  ;;  %5448 = vmatprep.subr.bf16.mxu1 %v8514_v22  ;;  %v8584_v21 = vld [vmem:[%s12250_s1 + $0x2b8] ss:$12 sps:$4 sm:$0xff]  }
  0x45   :  { %5571 = vmatprep.subr.bf16.mxu0 %v8517_v23  ;;  %5478 = vmatprep.mubr.bf16.mxu1 %v9789_v24  ;;  %v8587_v22 = vld [vmem:[%s12250_s1 + $0x738] ss:$12 sps:$4 sm:$0xff]   ;;  %v8592_v23 = vld [vmem:[%s12250_s1 + $0x2d4] ss:$12 sps:$4 sm:$0xff]  }
  0x46   :  { %5601 = vmatprep.mubr.bf16.mxu0 %v9884_v56 }
  0x47   :  { %5449 = vmatpush1.bf16.msra.mxu1 %v8512_v25  ;;  %v8595_v25 = vld [vmem:[%s12250_s1 + $0x754] ss:$12 sps:$4 sm:$0xff]  }
  0x48   :  { %5572 = vmatpush1.bf16.msra.mxu0 %v8515_v26  ;;  %5450 = vmatprep.subr.bf16.mxu1 %v8520_v27  ;;  %v8590_v26 = vld [vmem:[%s12250_s1 + $0x2d0] ss:$12 sps:$4 sm:$0xff]  }
  0x49   :  { %5573 = vmatprep.subr.bf16.mxu0 %v8523_v28  ;;  %v8593_v27 = vld [vmem:[%s12250_s1 + $0x750] ss:$12 sps:$4 sm:$0xff]   ;;  %v8598_v28 = vld [vmem:[%s12250_s1 + $0x2ec] ss:$12 sps:$4 sm:$0xff]  }
  0x4b   :  { %5451 = vmatpush1.bf16.msra.mxu1 %v8518_v29  ;;  %v8601_v29 = vld [vmem:[%s12250_s1 + $0x76c] ss:$12 sps:$4 sm:$0xff]  }
  0x4c   :  { %5574 = vmatpush1.bf16.msra.mxu0 %v8521_v30  ;;  %5452 = vmatprep.subr.bf16.mxu1 %v8526_v31  ;;  %v8596_v30 = vld [vmem:[%s12250_s1 + $0x2e8] ss:$12 sps:$4 sm:$0xff]  }
  0x4d   :  { %5575 = vmatprep.subr.bf16.mxu0 %v8529_v32  ;;  %v8599_v31 = vld [vmem:[%s12250_s1 + $0x768] ss:$12 sps:$4 sm:$0xff]   ;;  %v8604_v32 = vld [vmem:[%s12250_s1 + $0x304] ss:$12 sps:$4 sm:$0xff]  }
  0x4f   :  { %5453 = vmatpush1.bf16.msra.mxu1 %v8524_v33  ;;  %v8607_v33 = vld [vmem:[%s12250_s1 + $0x784] ss:$12 sps:$4 sm:$0xff]  }
  0x50   :  { %5576 = vmatpush1.bf16.msra.mxu0 %v8527_v34  ;;  %5454 = vmatprep.subr.bf16.mxu1 %v8532_v35  ;;  %v9991_v34 = vcombine.high %v9772_v19, %v9772_v19  ;;  %v9995_v35 = vrot.slane %v9867_v49, %v9686_v51  ;;  %v8622_v49 = vld [vmem:[%s12250_s1 + $0x34c] ss:$12 sps:$4 sm:$0xff]  }
  0x51   :  { %5577 = vmatprep.subr.bf16.mxu0 %v8535_v36  ;;  %v8602_v36 = vld [vmem:[%s12250_s1 + $0x300] ss:$12 sps:$4 sm:$0xff]  }
  0x53   :  { %5455 = vmatpush1.bf16.msra.mxu1 %v8530_v37  ;;  %v8605_v37 = vld [vmem:[%s12250_s1 + $0x780] ss:$12 sps:$4 sm:$0xff]  }
  0x54   :  { %5578 = vmatpush1.bf16.msra.mxu0 %v8533_v38  ;;  %5456 = vmatprep.subr.bf16.mxu1 %v8538_v39  ;;  %v8610_v38 = vld [vmem:[%s12250_s1 + $0x31c] ss:$12 sps:$4 sm:$0xff]  }
  0x55   :  { %5579 = vmatprep.subr.bf16.mxu0 %v8541_v40  ;;  %v8613_v39 = vld [vmem:[%s12250_s1 + $0x79c] ss:$12 sps:$4 sm:$0xff]   ;;  %v8608_v40 = vld [vmem:[%s12250_s1 + $0x318] ss:$12 sps:$4 sm:$0xff]  }
  0x57   :  { %5457 = vmatpush1.bf16.msra.mxu1 %v8536_v41  ;;  %v10014_v41 = vcombine.high %v9884_v56, %v9884_v56 }
  0x58   :  { %5580 = vmatpush1.bf16.msra.mxu0 %v8539_v42  ;;  %5458 = vmatprep.subr.bf16.mxu1 %v8544_v43  ;;  %v8611_v42 = vld [vmem:[%s12250_s1 + $0x798] ss:$12 sps:$4 sm:$0xff]   ;;  %v8616_v43 = vld [vmem:[%s12250_s1 + $0x334] ss:$12 sps:$4 sm:$0xff]  }
  0x59   :  { %5581 = vmatprep.subr.bf16.mxu0 %v8547_v44  ;;  %v8619_v44 = vld [vmem:[%s12250_s1 + $0x7b4] ss:$12 sps:$4 sm:$0xff]  }
  0x5b   :  { %5459 = vmatpush1.bf16.msra.mxu1 %v8542_v47  ;;  %v8614_v47 = vld [vmem:[%s12250_s1 + $0x330] ss:$12 sps:$4 sm:$0xff]  }
  0x5c   :  { %5582 = vmatpush1.bf16.msra.mxu0 %v8545_v48  ;;  %5460 = vmatprep.subr.bf16.mxu1 %v8550_v50  ;;  %v8617_v48 = vld [vmem:[%s12250_s1 + $0x7b0] ss:$12 sps:$4 sm:$0xff]   ;;  %v8625_v50 = vld [vmem:[%s12250_s1 + $0x7cc] ss:$12 sps:$4 sm:$0xff]  }
  0x5d   :  { %5583 = vmatprep.subr.bf16.mxu0 %v8553_v52  ;;  %v8620_v52 = vld [vmem:[%s12250_s1 + $0x348] ss:$12 sps:$4 sm:$0xff]  }
  0x5f   :  { %5461 = vmatpush1.bf16.msra.mxu1 %v8548_v54  ;;  %v8628_v54 = vld [vmem:[%s12250_s1 + $0x364] ss:$12 sps:$4 sm:$0xff]  }
  0x60   :  { %5584 = vmatpush1.bf16.msra.mxu0 %v8551_v55  ;;  %5462 = vmatprep.subr.bf16.mxu1 %v8556_v57  ;;  %v8631_v55 = vld [vmem:[%s12250_s1 + $0x7e4] ss:$12 sps:$4 sm:$0xff]   ;;  %v8626_v57 = vld [vmem:[%s12250_s1 + $0x360] ss:$12 sps:$4 sm:$0xff]  }
  0x61   :  { %5585 = vmatprep.subr.bf16.mxu0 %v8559_v58  ;;  %v8629_v58 = vld [vmem:[%s12250_s1 + $0x7e0] ss:$12 sps:$4 sm:$0xff]  }
  0x63   :  { %5463 = vmatpush1.bf16.msra.mxu1 %v8554_v59  ;;  %v8634_v59 = vld [vmem:[%s12250_s1 + $0x37c] ss:$12 sps:$4 sm:$0xff]  }
  0x64   :  { %5586 = vmatpush1.bf16.msra.mxu0 %v8557_v60  ;;  %5464 = vmatprep.subr.bf16.mxu1 %v8562_v61  ;;  %v8637_v60 = vld [vmem:[%s12250_s1 + $0x7fc] ss:$12 sps:$4 sm:$0xff]   ;;  %v8632_v61 = vld [vmem:[%s12250_s1 + $0x378] ss:$12 sps:$4 sm:$0xff]  }
  0x65   :  { %5587 = vmatprep.subr.bf16.mxu0 %v8565_v63  ;;  %v8635_v63 = vld [vmem:[%s12250_s1 + $0x7f8] ss:$12 sps:$4 sm:$0xff]  }
  0x67   :  { %5465 = vmatpush1.bf16.msra.mxu1 %v8560_v0  ;;  %v8640_v0 = vld [vmem:[%s12250_s1 + $0x394] ss:$12 sps:$4 sm:$0xff]  }
  0x68   :  { %5588 = vmatpush1.bf16.msra.mxu0 %v8563_v1  ;;  %5466 = vmatprep.subr.bf16.mxu1 %v8568_v2  ;;  %v8643_v1 = vld [vmem:[%s12250_s1 + $0x814] ss:$12 sps:$4 sm:$0xff]   ;;  %v8638_v2 = vld [vmem:[%s12250_s1 + $0x390] ss:$12 sps:$4 sm:$0xff]  }
  0x69   :  { %5589 = vmatprep.subr.bf16.mxu0 %v8571_v4  ;;  %v8641_v4 = vld [vmem:[%s12250_s1 + $0x810] ss:$12 sps:$4 sm:$0xff]  }
  0x6b   :  { %5467 = vmatpush1.bf16.msra.mxu1 %v8566_v6  ;;  %v8646_v6 = vld [vmem:[%s12250_s1 + $0x3ac] ss:$12 sps:$4 sm:$0xff]  }
  0x6c   :  { %5590 = vmatpush1.bf16.msra.mxu0 %v8569_v7  ;;  %5468 = vmatprep.subr.bf16.mxu1 %v8574_v8  ;;  %v8649_v7 = vld [vmem:[%s12250_s1 + $0x82c] ss:$12 sps:$4 sm:$0xff]   ;;  %v8644_v8 = vld [vmem:[%s12250_s1 + $0x3a8] ss:$12 sps:$4 sm:$0xff]  }
  0x6d   :  { %5591 = vmatprep.subr.bf16.mxu0 %v8577_v9  ;;  %v8647_v9 = vld [vmem:[%s12250_s1 + $0x828] ss:$12 sps:$4 sm:$0xff]  }
  0x6f   :  { %5469 = vmatpush1.bf16.msra.mxu1 %v8572_v10  ;;  %v8652_v10 = vld [vmem:[%s12250_s1 + $0x3c4] ss:$12 sps:$4 sm:$0xff]  }
  0x70   :  { %5592 = vmatpush1.bf16.msra.mxu0 %v8575_v11  ;;  %5470 = vmatprep.subr.bf16.mxu1 %v8580_v12  ;;  %v8655_v11 = vld [vmem:[%s12250_s1 + $0x844] ss:$12 sps:$4 sm:$0xff]   ;;  %v8650_v12 = vld [vmem:[%s12250_s1 + $0x3c0] ss:$12 sps:$4 sm:$0xff]  }
  0x71   :  { %5593 = vmatprep.subr.bf16.mxu0 %v8583_v13  ;;  %v8653_v13 = vld [vmem:[%s12250_s1 + $0x840] ss:$12 sps:$4 sm:$0xff]  }
  0x73   :  { %5471 = vmatpush1.bf16.msra.mxu1 %v8578_v15  ;;  %v8658_v15 = vld [vmem:[%s12250_s1 + $0x3dc] ss:$12 sps:$4 sm:$0xff]  }
  0x74   :  { %5594 = vmatpush1.bf16.msra.mxu0 %v8581_v16  ;;  %5472 = vmatprep.subr.bf16.mxu1 %v8586_v17  ;;  %v8661_v16 = vld [vmem:[%s12250_s1 + $0x85c] ss:$12 sps:$4 sm:$0xff]   ;;  %v8656_v17 = vld [vmem:[%s12250_s1 + $0x3d8] ss:$12 sps:$4 sm:$0xff]  }
  0x75   :  { %5595 = vmatprep.subr.bf16.mxu0 %v8589_v18  ;;  %v8659_v18 = vld [vmem:[%s12250_s1 + $0x858] ss:$12 sps:$4 sm:$0xff]  }
  0x77   :  { %5473 = vmatpush1.bf16.msra.mxu1 %v8584_v21  ;;  %v8664_v21 = vld [vmem:[%s12250_s1 + $0x3f4] ss:$12 sps:$4 sm:$0xff]  }
  0x78   :  { %5596 = vmatpush1.bf16.msra.mxu0 %v8587_v22  ;;  %5474 = vmatprep.subr.bf16.mxu1 %v8592_v23  ;;  %v8667_v22 = vld [vmem:[%s12250_s1 + $0x874] ss:$12 sps:$4 sm:$0xff]   ;;  %v8662_v23 = vld [vmem:[%s12250_s1 + $0x3f0] ss:$12 sps:$4 sm:$0xff]  }
  0x79   :  { %5597 = vmatprep.subr.bf16.mxu0 %v8595_v25  ;;  %v8665_v25 = vld [vmem:[%s12250_s1 + $0x870] ss:$12 sps:$4 sm:$0xff]  }
  0x7b   :  { %5475 = vmatpush1.bf16.msra.mxu1 %v8590_v26  ;;  %v8670_v26 = vld [vmem:[%s12250_s1 + $0x40c] ss:$12 sps:$4 sm:$0xff]  }
  0x7c   :  { %5598 = vmatpush1.bf16.msra.mxu0 %v8593_v27  ;;  %5476 = vmatprep.subr.bf16.mxu1 %v8598_v28  ;;  %v8673_v27 = vld [vmem:[%s12250_s1 + $0x88c] ss:$12 sps:$4 sm:$0xff]   ;;  %v8668_v28 = vld [vmem:[%s12250_s1 + $0x408] ss:$12 sps:$4 sm:$0xff]  }
  0x7d   :  { %5599 = vmatprep.subr.bf16.mxu0 %v8601_v29  ;;  %v8671_v29 = vld [vmem:[%s12250_s1 + $0x888] ss:$12 sps:$4 sm:$0xff]  }
  0x7f   :  { %5477 = vmatpush1.bf16.msra.mxu1 %v8596_v30  ;;  %v8676_v30 = vld [vmem:[%s12250_s1 + $0x424] ss:$12 sps:$4 sm:$0xff]  }
  0x80   :  { %5600 = vmatpush1.bf16.msra.mxu0 %v8599_v31  ;;  %5487 = vmatprep.subr.bf16.mxu1 %v8604_v32  ;;  %v8679_v31 = vld [vmem:[%s12250_s1 + $0x8a4] ss:$12 sps:$4 sm:$0xff]   ;;  %v8674_v32 = vld [vmem:[%s12250_s1 + $0x420] ss:$12 sps:$4 sm:$0xff]  }
  0x81   :  { %5610 = vmatprep.subr.bf16.mxu0 %v8607_v33  ;;  %v8677_v33 = vld [vmem:[%s12250_s1 + $0x8a0] ss:$12 sps:$4 sm:$0xff]  }
  0x82   :  { %5479 = vmatmul.mubr.bf16.vlgmr.msra.gmra.mrb[0].mxu1 %v9991_v34 }
  0x83   :  { %5602 = vmatmul.mubr.bf16.vlgmr.msra.gmra.mrb[0].mxu0 %v9995_v35  ;;  %5488 = vmatpush1.bf16.msra.mxu1 %v8602_v36  ;;  %v8682_v36 = vld [vmem:[%s12250_s1 + $0x43c] ss:$12 sps:$4 sm:$0xff]  }
  0x84   :  { %5611 = vmatpush1.bf16.msra.mxu0 %v8605_v37  ;;  %5489 = vmatprep.subr.bf16.mxu1 %v8610_v38  ;;  %v8685_v37 = vld [vmem:[%s12250_s1 + $0x8bc] ss:$12 sps:$4 sm:$0xff]   ;;  %v8680_v38 = vld [vmem:[%s12250_s1 + $0x438] ss:$12 sps:$4 sm:$0xff]  }
  0x85   :  { %5612 = vmatprep.subr.bf16.mxu0 %v8613_v39  ;;  %5519 = vmatprep.mubr.bf16.mxu1 %v9721_v3  ;;  %v8683_v39 = vld [vmem:[%s12250_s1 + $0x8b8] ss:$12 sps:$4 sm:$0xff]  }
  0x86   :  { %5642 = vmatprep.mubr.bf16.mxu0 %v10014_v41 }
  0x87   :  { %5490 = vmatpush1.bf16.msra.mxu1 %v8608_v40  ;;  %v8688_v40 = vld [vmem:[%s12250_s1 + $0x454] ss:$12 sps:$4 sm:$0xff]  }
  0x88   :  { %5613 = vmatpush1.bf16.msra.mxu0 %v8611_v42  ;;  %5491 = vmatprep.subr.bf16.mxu1 %v8616_v43  ;;  %v8691_v42 = vld [vmem:[%s12250_s1 + $0x8d4] ss:$12 sps:$4 sm:$0xff]   ;;  %v8686_v43 = vld [vmem:[%s12250_s1 + $0x450] ss:$12 sps:$4 sm:$0xff]  }
  0x89   :  { %5614 = vmatprep.subr.bf16.mxu0 %v8619_v44  ;;  %v1130_v44 = vcombine.high %v9857_v46, %v9857_v46  ;;  %v8692_v46 = vld [vmem:[%s12250_s1 + $0x468] ss:$12 sps:$4 sm:$0xff]  }
  0x8b   :  { %5492 = vmatpush1.bf16.msra.mxu1 %v8614_v47  ;;  %v8689_v47 = vld [vmem:[%s12250_s1 + $0x8d0] ss:$12 sps:$4 sm:$0xff]  }
  0x8c   :  { %5615 = vmatpush1.bf16.msra.mxu0 %v8617_v48  ;;  %5493 = vmatprep.subr.bf16.mxu1 %v8622_v49  ;;  %v8694_v48 = vld [vmem:[%s12250_s1 + $0x46c] ss:$12 sps:$4 sm:$0xff]  }
  0x8d   :  { %5616 = vmatprep.subr.bf16.mxu0 %v8625_v50  ;;  %v8697_v49 = vld [vmem:[%s12250_s1 + $0x8ec] ss:$12 sps:$4 sm:$0xff]   ;;  %v10188_v50 = vrot.slane %v1130_v44, %v9686_v51 }
  0x8e   :  { %v8752_v44 = vld [vmem:[%s12250_s1 + $0x1b8] ss:$12 sps:$4 sm:$0xff]  }
  0x8f   :  { %5494 = vmatpush1.bf16.msra.mxu1 %v8620_v52  ;;  %v8695_v52 = vld [vmem:[%s12250_s1 + $0x8e8] ss:$12 sps:$4 sm:$0xff]  }
  0x90   :  { %5617 = vmatpush1.bf16.msra.mxu0 %v8623_v53  ;;  %5495 = vmatprep.subr.bf16.mxu1 %v8628_v54  ;;  %v8700_v53 = vld [vmem:[%s12250_s1 + $0x904] ss:$12 sps:$4 sm:$0xff]   ;;  %v8701_v54 = vld [vmem:[%s12250_s1 + $0xc8] ss:$12 sps:$4 sm:$0xff]  }
  0x91   :  { %5618 = vmatprep.subr.bf16.mxu0 %v8631_v55  ;;  %v8698_v55 = vld [vmem:[%s12250_s1 + $0x900] ss:$12 sps:$4 sm:$0xff]  }
  0x93   :  { %5496 = vmatpush1.bf16.msra.mxu1 %v8626_v57  ;;  %v1146_v57 = vcombine.high %v10188_v50, %v10188_v50 }
  0x94   :  { %5619 = vmatpush1.bf16.msra.mxu0 %v8629_v58  ;;  %5497 = vmatprep.subr.bf16.mxu1 %v8634_v59  ;;  %v10209_v58 = vcombine.high %v9995_v35, %v9995_v35  ;;  %v8702_v59 = vld [vmem:[%s12250_s1 + $0x8] ss:$12 sps:$4 sm:$0xff]  }
  0x95   :  { %5620 = vmatprep.subr.bf16.mxu0 %v8637_v60  ;;  %v8705_v60 = vld [vmem:[%s12250_s1 + $0x91c] ss:$12 sps:$4 sm:$0xff]  }
  0x97   :  { %5498 = vmatpush1.bf16.msra.mxu1 %v8632_v61  ;;  %v8706_v61 = vld [vmem:[%s12250_s1 + $0xe0] ss:$12 sps:$4 sm:$0xff]  }
  0x98   :  { %5621 = vmatpush1.bf16.msra.mxu0 %v8635_v63  ;;  %5499 = vmatprep.subr.bf16.mxu1 %v8640_v0  ;;  %v10221_v63 = vrot.slane %v1146_v57, %v9686_v51  ;;  %v8703_v0 = vld [vmem:[%s12250_s1 + $0x918] ss:$12 sps:$4 sm:$0xff]   ;;  %v8766_v57 = vld [vmem:[%s12250_s1 + $0x2c0] ss:$12 sps:$4 sm:$0xff]  }
  0x99   :  { %5622 = vmatprep.subr.bf16.mxu0 %v8643_v1  ;;  %v8707_v1 = vld [vmem:[%s12250_s1 + $0x20] ss:$12 sps:$4 sm:$0xff]  }
  0x9b   :  { %5500 = vmatpush1.bf16.msra.mxu1 %v8638_v2  ;;  %v8710_v2 = vld [vmem:[%s12250_s1 + $0x934] ss:$12 sps:$4 sm:$0xff]  }
  0x9c   :  { %5623 = vmatpush1.bf16.msra.mxu0 %v8641_v4  ;;  %5501 = vmatprep.subr.bf16.mxu1 %v8646_v6  ;;  %v8711_v4 = vld [vmem:[%s12250_s1 + $0xf8] ss:$12 sps:$4 sm:$0xff]   ;;  %v8708_v6 = vld [vmem:[%s12250_s1 + $0x930] ss:$12 sps:$4 sm:$0xff]  }
  0x9d   :  { %5624 = vmatprep.subr.bf16.mxu0 %v8649_v7  ;;  %v8712_v7 = vld [vmem:[%s12250_s1 + $0x38] ss:$12 sps:$4 sm:$0xff]  }
  0x9f   :  { %5502 = vmatpush1.bf16.msra.mxu1 %v8644_v8  ;;  %v8715_v8 = vld [vmem:[%s12250_s1 + $0x94c] ss:$12 sps:$4 sm:$0xff]  }
  0xa0   :  { %5625 = vmatpush1.bf16.msra.mxu0 %v8647_v9  ;;  %5503 = vmatprep.subr.bf16.mxu1 %v8652_v10  ;;  %v8713_v9 = vld [vmem:[%s12250_s1 + $0x948] ss:$12 sps:$4 sm:$0xff]   ;;  %v8717_v10 = vld [vmem:[%s12250_s1 + $0x50] ss:$12 sps:$4 sm:$0xff]  }
  0xa1   :  { %5626 = vmatprep.subr.bf16.mxu0 %v8655_v11  ;;  %v8720_v11 = vld [vmem:[%s12250_s1 + $0x964] ss:$12 sps:$4 sm:$0xff]  }
  0xa3   :  { %5504 = vmatpush1.bf16.msra.mxu1 %v8650_v12  ;;  %v8721_v12 = vld [vmem:[%s12250_s1 + $0x128] ss:$12 sps:$4 sm:$0xff]  }
  0xa4   :  { %5627 = vmatpush1.bf16.msra.mxu0 %v8653_v13  ;;  %5505 = vmatprep.subr.bf16.mxu1 %v8658_v15  ;;  %v8718_v13 = vld [vmem:[%s12250_s1 + $0x960] ss:$12 sps:$4 sm:$0xff]   ;;  %v8722_v15 = vld [vmem:[%s12250_s1 + $0x68] ss:$12 sps:$4 sm:$0xff]  }
  0xa5   :  { %5628 = vmatprep.subr.bf16.mxu0 %v8661_v16  ;;  %v8725_v16 = vld [vmem:[%s12250_s1 + $0x97c] ss:$12 sps:$4 sm:$0xff]  }
  0xa7   :  { %5506 = vmatpush1.bf16.msra.mxu1 %v8656_v17  ;;  %v8726_v17 = vld [vmem:[%s12250_s1 + $0x140] ss:$12 sps:$4 sm:$0xff]  }
  0xa8   :  { %5629 = vmatpush1.bf16.msra.mxu0 %v8659_v18  ;;  %5507 = vmatprep.subr.bf16.mxu1 %v8664_v21  ;;  %v8723_v18 = vld [vmem:[%s12250_s1 + $0x978] ss:$12 sps:$4 sm:$0xff]   ;;  %v8727_v21 = vld [vmem:[%s12250_s1 + $0x80] ss:$12 sps:$4 sm:$0xff]  }
  0xa9   :  { %5630 = vmatprep.subr.bf16.mxu0 %v8667_v22  ;;  %v8730_v22 = vld [vmem:[%s12250_s1 + $0x994] ss:$12 sps:$4 sm:$0xff]  }
  0xab   :  { %5508 = vmatpush1.bf16.msra.mxu1 %v8662_v23  ;;  %v8731_v23 = vld [vmem:[%s12250_s1 + $0x158] ss:$12 sps:$4 sm:$0xff]  }
  0xac   :  { %5631 = vmatpush1.bf16.msra.mxu0 %v8665_v25  ;;  %5509 = vmatprep.subr.bf16.mxu1 %v8670_v26  ;;  %v8728_v25 = vld [vmem:[%s12250_s1 + $0x990] ss:$12 sps:$4 sm:$0xff]   ;;  %v8732_v26 = vld [vmem:[%s12250_s1 + $0x98] ss:$12 sps:$4 sm:$0xff]  }
  0xad   :  { %5632 = vmatprep.subr.bf16.mxu0 %v8673_v27  ;;  %v8735_v27 = vld [vmem:[%s12250_s1 + $0x9ac] ss:$12 sps:$4 sm:$0xff]  }
  0xaf   :  { %5510 = vmatpush1.bf16.msra.mxu1 %v8668_v28  ;;  %v8736_v28 = vld [vmem:[%s12250_s1 + $0x170] ss:$12 sps:$4 sm:$0xff]  }
  0xb0   :  { %5633 = vmatpush1.bf16.msra.mxu0 %v8671_v29  ;;  %5511 = vmatprep.subr.bf16.mxu1 %v8676_v30  ;;  %v8733_v29 = vld [vmem:[%s12250_s1 + $0x9a8] ss:$12 sps:$4 sm:$0xff]   ;;  %v8737_v30 = vld [vmem:[%s12250_s1 + $0xb0] ss:$12 sps:$4 sm:$0xff]  }
  0xb1   :  { %5634 = vmatprep.subr.bf16.mxu0 %v8679_v31  ;;  %v8740_v31 = vld [vmem:[%s12250_s1 + $0x9c4] ss:$12 sps:$4 sm:$0xff]  }
  0xb3   :  { %5512 = vmatpush1.bf16.msra.mxu1 %v8674_v32  ;;  %v8741_v32 = vld [vmem:[%s12250_s1 + $0x248] ss:$12 sps:$4 sm:$0xff]  }
  0xb4   :  { %5635 = vmatpush1.bf16.msra.mxu0 %v8677_v33  ;;  %5513 = vmatprep.subr.bf16.mxu1 %v8682_v36  ;;  %v8738_v33 = vld [vmem:[%s12250_s1 + $0x9c0] ss:$12 sps:$4 sm:$0xff]   ;;  %v8742_v36 = vld [vmem:[%s12250_s1 + $0x188] ss:$12 sps:$4 sm:$0xff]  }
  0xb5   :  { %5636 = vmatprep.subr.bf16.mxu0 %v8685_v37  ;;  %v8745_v37 = vld [vmem:[%s12250_s1 + $0x9dc] ss:$12 sps:$4 sm:$0xff]  }
  0xb7   :  { %5514 = vmatpush1.bf16.msra.mxu1 %v8680_v38  ;;  %v8746_v38 = vld [vmem:[%s12250_s1 + $0x260] ss:$12 sps:$4 sm:$0xff]  }
  0xb8   :  { %5637 = vmatpush1.bf16.msra.mxu0 %v8683_v39  ;;  %5515 = vmatprep.subr.bf16.mxu1 %v8688_v40  ;;  %v8743_v39 = vld [vmem:[%s12250_s1 + $0x9d8] ss:$12 sps:$4 sm:$0xff]   ;;  %v8747_v40 = vld [vmem:[%s12250_s1 + $0x1a0] ss:$12 sps:$4 sm:$0xff]  }
  0xb9   :  { %5638 = vmatprep.subr.bf16.mxu0 %v8691_v42  ;;  %v8750_v42 = vld [vmem:[%s12250_s1 + $0x9f4] ss:$12 sps:$4 sm:$0xff]  }
  0xbb   :  { %5516 = vmatpush1.bf16.msra.mxu1 %v8686_v43  ;;  %v8748_v43 = vld [vmem:[%s12250_s1 + $0x9f0] ss:$12 sps:$4 sm:$0xff]  }
  0xbc   :  { %5639 = vmatpush1.bf16.msra.mxu0 %v8689_v47  ;;  %5517 = vmatprep.subr.bf16.mxu1 %v8694_v48  ;;  %v8755_v47 = vld [vmem:[%s12250_s1 + $0xa0c] ss:$12 sps:$4 sm:$0xff]   ;;  %v8756_v48 = vld [vmem:[%s12250_s1 + $0x290] ss:$12 sps:$4 sm:$0xff]  }
  0xbd   :  { %5640 = vmatprep.subr.bf16.mxu0 %v8697_v49  ;;  %v8757_v49 = vld [vmem:[%s12250_s1 + $0x1d0] ss:$12 sps:$4 sm:$0xff]  }
  0xbf   :  { %5518 = vmatpush1.bf16.msra.mxu1 %v8692_v46  ;;  %v8760_v46 = vld [vmem:[%s12250_s1 + $0xa24] ss:$12 sps:$4 sm:$0xff]  }
  0xc0   :  { %5641 = vmatpush1.bf16.msra.mxu0 %v8695_v52  ;;  %7942 = vmatprep.subr.bf16.mxu1 %v8701_v54  ;;  %v8761_v52 = vld [vmem:[%s12250_s1 + $0x2a8] ss:$12 sps:$4 sm:$0xff]  }
  0xc1   :  { %5651 = vmatprep.subr.bf16.mxu0 %v8700_v53  ;;  %v8758_v53 = vld [vmem:[%s12250_s1 + $0xa20] ss:$12 sps:$4 sm:$0xff]   ;;  %v8762_v54 = vld [vmem:[%s12250_s1 + $0x1e8] ss:$12 sps:$4 sm:$0xff]  }
  0xc2   :  { %5520 = vmatmul.mubr.bf16.vlgmr.msra.gmra.mrb[0].mxu1 %v9757_v14 }
  0xc3   :  { %5643 = vmatmul.mubr.bf16.vlgmr.msra.gmra.mrb[0].mxu0 %v10209_v58  ;;  %7943 = vmatpush3.bf16.msra.mxu1 %v8702_v59  ;;  %v8763_v59 = vld [vmem:[%s12250_s1 + $0xa38] ss:$12 sps:$4 sm:$0xff]  }
  0xc4   :  { %5652 = vmatpush1.bf16.msra.mxu0 %v8698_v55  ;;  %7944 = vmatprep.subr.bf16.mxu1 %v8706_v61  ;;  %v8765_v55 = vld [vmem:[%s12250_s1 + $0xa3c] ss:$12 sps:$4 sm:$0xff]   ;;  %v8770_v61 = vld [vmem:[%s12250_s1 + $0xa54] ss:$12 sps:$4 sm:$0xff]  }
  0xc5   :  { %5653 = vmatprep.subr.bf16.mxu0 %v8705_v60  ;;  %6093 = vmatprep.mubr.bf16.mxu1 %v9709_v62  ;;  %v8716_v62 = vld [vmem:[%s12250_s1 + $0x110] ss:$12 sps:$4 sm:$0xff]   ;;  %v8767_v60 = vld [vmem:[%s12250_s1 + $0x200] ss:$12 sps:$4 sm:$0xff]  }
  0xc6   :  { %5683 = vmatprep.mubr.bf16.mxu0 %v10221_v63 }
  0xc7   :  { %7945 = vmatpush3.bf16.msra.mxu1 %v8707_v1  ;;  %v8768_v1 = vld [vmem:[%s12250_s1 + $0xa50] ss:$12 sps:$4 sm:$0xff]  }
  0xc8   :  { %5654 = vmatpush1.bf16.msra.mxu0 %v8703_v0  ;;  %7946 = vmatprep.subr.bf16.mxu1 %v8711_v4  ;;  %v8771_v0 = vld [vmem:[%s12250_s1 + $0x2d8] ss:$12 sps:$4 sm:$0xff]  }
  0xc9   :  { %5655 = vmatprep.subr.bf16.mxu0 %v8710_v2  ;;  %v8772_v2 = vld [vmem:[%s12250_s1 + $0x218] ss:$12 sps:$4 sm:$0xff]  }
  0xca   :  { %v8775_v4 = vld [vmem:[%s12250_s1 + $0xa6c] ss:$12 sps:$4 sm:$0xff]  }
  0xcb   :  { %7947 = vmatpush3.bf16.msra.mxu1 %v8712_v7  ;;  %v8773_v7 = vld [vmem:[%s12250_s1 + $0xa68] ss:$12 sps:$4 sm:$0xff]  }
  0xcc   :  { %5656 = vmatpush1.bf16.msra.mxu0 %v8708_v6  ;;  %7948 = vmatprep.subr.bf16.mxu1 %v8716_v62  ;;  %v8776_v6 = vld [vmem:[%s12250_s1 + $0x2f0] ss:$12 sps:$4 sm:$0xff]  }
  0xcd   :  { %5657 = vmatprep.subr.bf16.mxu0 %v8715_v8  ;;  %v8777_v8 = vld [vmem:[%s12250_s1 + $0x230] ss:$12 sps:$4 sm:$0xff]  }
  0xce   :  { %v8781_v62 = vld [vmem:[%s12250_s1 + $0xa84] ss:$12 sps:$4 sm:$0xff]  }
  0xcf   :  { %7949 = vmatpush3.bf16.msra.mxu1 %v8717_v10  ;;  %v8779_v10 = vld [vmem:[%s12250_s1 + $0xa80] ss:$12 sps:$4 sm:$0xff]  }
  0xd0   :  { %5658 = vmatpush1.bf16.msra.mxu0 %v8713_v9  ;;  %7950 = vmatprep.subr.bf16.mxu1 %v8721_v12  ;;  %v8782_v9 = vld [vmem:[%s12250_s1 + $0x3c8] ss:$12 sps:$4 sm:$0xff]  }
  0xd1   :  { %5659 = vmatprep.subr.bf16.mxu0 %v8720_v11  ;;  %v10414_v11 = vrot.slane %v10188_v50, %v9686_v51  ;;  %v8783_v12 = vld [vmem:[%s12250_s1 + $0x308] ss:$12 sps:$4 sm:$0xff]   ;;  %v10427_v50 = vcombine.high %v10221_v63, %v10221_v63 }
  0xd3   :  { %7951 = vmatpush3.bf16.msra.mxu1 %v8722_v15  ;;  %v8787_v15 = vld [vmem:[%s12250_s1 + $0x3e0] ss:$12 sps:$4 sm:$0xff]  }
  0xd4   :  { %5660 = vmatpush1.bf16.msra.mxu0 %v8718_v13  ;;  %7952 = vmatprep.subr.bf16.mxu1 %v8726_v17  ;;  %v8786_v13 = vld [vmem:[%s12250_s1 + $0xa9c] ss:$12 sps:$4 sm:$0xff]   ;;  %v8788_v17 = vld [vmem:[%s12250_s1 + $0x320] ss:$12 sps:$4 sm:$0xff]  }
  0xd5   :  { %5661 = vmatprep.subr.bf16.mxu0 %v8725_v16  ;;  %v8784_v16 = vld [vmem:[%s12250_s1 + $0xa98] ss:$12 sps:$4 sm:$0xff]  }
  0xd7   :  { %7953 = vmatpush3.bf16.msra.mxu1 %v8727_v21  ;;  %v8789_v21 = vld [vmem:[%s12250_s1 + $0xab0] ss:$12 sps:$4 sm:$0xff]  }
  0xd8   :  { %5662 = vmatpush1.bf16.msra.mxu0 %v8723_v18  ;;  %7954 = vmatprep.subr.bf16.mxu1 %v8731_v23  ;;  %v8791_v18 = vld [vmem:[%s12250_s1 + $0xab4] ss:$12 sps:$4 sm:$0xff]   ;;  %v8796_v23 = vld [vmem:[%s12250_s1 + $0xacc] ss:$12 sps:$4 sm:$0xff]  }
  0xd9   :  { %5663 = vmatprep.subr.bf16.mxu0 %v8730_v22  ;;  %v8793_v22 = vld [vmem:[%s12250_s1 + $0x338] ss:$12 sps:$4 sm:$0xff]  }
  0xdb   :  { %7955 = vmatpush3.bf16.msra.mxu1 %v8732_v26  ;;  %v8798_v26 = vld [vmem:[%s12250_s1 + $0x350] ss:$12 sps:$4 sm:$0xff]  }
  0xdc   :  { %5664 = vmatpush1.bf16.msra.mxu0 %v8728_v25  ;;  %7956 = vmatprep.subr.bf16.mxu1 %v8736_v28  ;;  %v8797_v25 = vld [vmem:[%s12250_s1 + $0x410] ss:$12 sps:$4 sm:$0xff]   ;;  %v8802_v28 = vld [vmem:[%s12250_s1 + $0x428] ss:$12 sps:$4 sm:$0xff]  }
  0xdd   :  { %5665 = vmatprep.subr.bf16.mxu0 %v8735_v27  ;;  %v8801_v27 = vld [vmem:[%s12250_s1 + $0xae4] ss:$12 sps:$4 sm:$0xff]  }
  0xdf   :  { %7957 = vmatpush3.bf16.msra.mxu1 %v8737_v30  ;;  %v8803_v30 = vld [vmem:[%s12250_s1 + $0x368] ss:$12 sps:$4 sm:$0xff]  }
  0xe0   :  { %5666 = vmatpush1.bf16.msra.mxu0 %v8733_v29  ;;  %7964 = vmatprep.subr.bf16.mxu1 %v8741_v32  ;;  %v8799_v29 = vld [vmem:[%s12250_s1 + $0xae0] ss:$12 sps:$4 sm:$0xff]  }
  0xe1   :  { %5667 = vmatprep.subr.bf16.mxu0 %v8740_v31  ;;  %v8806_v31 = vld [vmem:[%s12250_s1 + $0xafc] ss:$12 sps:$4 sm:$0xff]   ;;  %v8807_v32 = vld [vmem:[%s12250_s1 + $0x440] ss:$12 sps:$4 sm:$0xff]  }
  0xe2   :  { %6094 = vmatmul.mubr.bf16.vlgmr.msra.gmra.mrb[4].mxu1 %v9772_v19  ;;  %v8751_v19 = vld [vmem:[%s12250_s1 + $0x278] ss:$12 sps:$4 sm:$0xff]  }
  0xe3   :  { %7965 = vmatpush3.bf16.msra.mxu1 %v8742_v36  ;;  %6133 = vmatprep.mubr.bf16.mxu1 %v9789_v24  ;;  %v8753_v24 = vld [vmem:[%s12250_s1 + $0xa08] ss:$12 sps:$4 sm:$0xff]   ;;  %v8808_v36 = vld [vmem:[%s12250_s1 + $0x380] ss:$12 sps:$4 sm:$0xff]  }
  0xe4   :  { %5668 = vmatpush1.bf16.msra.mxu0 %v8738_v33  ;;  %7966 = vmatprep.subr.bf16.mxu1 %v8746_v38  ;;  %v8804_v33 = vld [vmem:[%s12250_s1 + $0xaf8] ss:$12 sps:$4 sm:$0xff]  }
  0xe5   :  { %5669 = vmatprep.subr.bf16.mxu0 %v8745_v37  ;;  %v8811_v37 = vld [vmem:[%s12250_s1 + $0xb14] ss:$12 sps:$4 sm:$0xff]   ;;  %v8812_v38 = vld [vmem:[%s12250_s1 + $0x458] ss:$12 sps:$4 sm:$0xff]  }
  0xe7   :  { %7967 = vmatpush3.bf16.msra.mxu1 %v8747_v40  ;;  %v8813_v40 = vld [vmem:[%s12250_s1 + $0x398] ss:$12 sps:$4 sm:$0xff]  }
  0xe8   :  { %5670 = vmatpush1.bf16.msra.mxu0 %v8743_v39  ;;  %7968 = vmatprep.subr.bf16.mxu1 %v8751_v19  ;;  %v8809_v39 = vld [vmem:[%s12250_s1 + $0xb10] ss:$12 sps:$4 sm:$0xff]  }
  0xe9   :  { %5671 = vmatprep.subr.bf16.mxu0 %v8750_v42  ;;  %v8816_v42 = vld [vmem:[%s12250_s1 + $0xb2c] ss:$12 sps:$4 sm:$0xff]   ;;  %v8817_v19 = vld [vmem:[%s12250_s1 + $0x470] ss:$12 sps:$4 sm:$0xff]  }
  0xeb   :  { %7969 = vmatpush3.bf16.msra.mxu1 %v8752_v44  ;;  %v8818_v44 = vld [vmem:[%s12250_s1 + $0x3b0] ss:$12 sps:$4 sm:$0xff]  }
  0xec   :  { %5672 = vmatpush1.bf16.msra.mxu0 %v8748_v43  ;;  %7970 = vmatprep.subr.bf16.mxu1 %v8756_v48  ;;  %v8814_v43 = vld [vmem:[%s12250_s1 + $0xb28] ss:$12 sps:$4 sm:$0xff]  }
  0xed   :  { %5673 = vmatprep.subr.bf16.mxu0 %v8755_v47  ;;  %v8821_v47 = vld [vmem:[%s12250_s1 + $0xb44] ss:$12 sps:$4 sm:$0xff]   ;;  %v8822_v48 = vld [vmem:[%s12250_s1 + $0x548] ss:$12 sps:$4 sm:$0xff]  }
  0xef   :  { %7971 = vmatpush3.bf16.msra.mxu1 %v8757_v49  ;;  %v8823_v49 = vld [vmem:[%s12250_s1 + $0x488] ss:$12 sps:$4 sm:$0xff]  }
  0xf0   :  { %5674 = vmatpush1.bf16.msra.mxu0 %v8753_v24  ;;  %7972 = vmatprep.subr.bf16.mxu1 %v8761_v52  ;;  %v8819_v24 = vld [vmem:[%s12250_s1 + $0xb40] ss:$12 sps:$4 sm:$0xff]  }
  0xf1   :  { %5675 = vmatprep.subr.bf16.mxu0 %v8760_v46  ;;  %v8826_v46 = vld [vmem:[%s12250_s1 + $0xb5c] ss:$12 sps:$4 sm:$0xff]   ;;  %v8827_v52 = vld [vmem:[%s12250_s1 + $0x560] ss:$12 sps:$4 sm:$0xff]  }
  0xf3   :  { %7973 = vmatpush3.bf16.msra.mxu1 %v8762_v54  ;;  %v8828_v54 = vld [vmem:[%s12250_s1 + $0x4a0] ss:$12 sps:$4 sm:$0xff]  }
  0xf4   :  { %5676 = vmatpush1.bf16.msra.mxu0 %v8758_v53  ;;  %7974 = vmatprep.subr.bf16.mxu1 %v8766_v57  ;;  %v8824_v53 = vld [vmem:[%s12250_s1 + $0xb58] ss:$12 sps:$4 sm:$0xff]   ;;  %v8829_v57 = vld [vmem:[%s12250_s1 + $0xb70] ss:$12 sps:$4 sm:$0xff]  }
  0xf5   :  { %5677 = vmatprep.subr.bf16.mxu0 %v8765_v55  ;;  %v8831_v55 = vld [vmem:[%s12250_s1 + $0xb74] ss:$12 sps:$4 sm:$0xff]  }
  0xf7   :  { %7975 = vmatpush3.bf16.msra.mxu1 %v8767_v60  ;;  %v8836_v60 = vld [vmem:[%s12250_s1 + $0xb8c] ss:$12 sps:$4 sm:$0xff]  }
  0xf8   :  { %5678 = vmatpush1.bf16.msra.mxu0 %v8763_v59  ;;  %7976 = vmatprep.subr.bf16.mxu1 %v8771_v0  ;;  %v8833_v59 = vld [vmem:[%s12250_s1 + $0x4b8] ss:$12 sps:$4 sm:$0xff]   ;;  %v8838_v0 = vld [vmem:[%s12250_s1 + $0x4d0] ss:$12 sps:$4 sm:$0xff]  }
  0xf9   :  { %5679 = vmatprep.subr.bf16.mxu0 %v8770_v61  ;;  %v8834_v61 = vld [vmem:[%s12250_s1 + $0xb88] ss:$12 sps:$4 sm:$0xff]  }
  0xfb   :  { %7977 = vmatpush3.bf16.msra.mxu1 %v8772_v2  ;;  %v8842_v2 = vld [vmem:[%s12250_s1 + $0x5a8] ss:$12 sps:$4 sm:$0xff]  }
  0xfc   :  { %5680 = vmatpush1.bf16.msra.mxu0 %v8768_v1  ;;  %7978 = vmatprep.subr.bf16.mxu1 %v8776_v6  ;;  %v8841_v1 = vld [vmem:[%s12250_s1 + $0xba4] ss:$12 sps:$4 sm:$0xff]   ;;  %v8843_v6 = vld [vmem:[%s12250_s1 + $0x4e8] ss:$12 sps:$4 sm:$0xff]  }
  0xfd   :  { %5681 = vmatprep.subr.bf16.mxu0 %v8775_v4  ;;  %v8839_v4 = vld [vmem:[%s12250_s1 + $0xba0] ss:$12 sps:$4 sm:$0xff]  }
  0xff   :  { %7979 = vmatpush3.bf16.msra.mxu1 %v8777_v8  ;;  %v8847_v8 = vld [vmem:[%s12250_s1 + $0x5c0] ss:$12 sps:$4 sm:$0xff]  }
 0x100   :  { %5682 = vmatpush1.bf16.msra.mxu0 %v8773_v7  ;;  %7986 = vmatprep.subr.bf16.mxu1 %v8782_v9  ;;  %v8846_v7 = vld [vmem:[%s12250_s1 + $0xbbc] ss:$12 sps:$4 sm:$0xff]   ;;  %v8848_v9 = vld [vmem:[%s12250_s1 + $0x500] ss:$12 sps:$4 sm:$0xff]  }
 0x101   :  { %5692 = vmatprep.subr.bf16.mxu0 %v8781_v62  ;;  %v8844_v62 = vld [vmem:[%s12250_s1 + $0xbb8] ss:$12 sps:$4 sm:$0xff]  }
 0x102   :  { %6134 = vmatmul.mubr.bf16.vlgmr.msra.gmra.mrb[8].mxu1 %v9991_v34  ;;  %v8792_v34 = vld [vmem:[%s12250_s1 + $0x3f8] ss:$12 sps:$4 sm:$0xff]  }
 0x103   :  { %5684 = vmatmul.mubr.bf16.vlgmr.msra.gmra.mrb[0].mxu0 %v10414_v11  ;;  %7987 = vmatpush3.bf16.msra.mxu1 %v8783_v12  ;;  %v8852_v12 = vld [vmem:[%s12250_s1 + $0x5d8] ss:$12 sps:$4 sm:$0xff]  }
 0x104   :  { %5693 = vmatpush1.bf16.msra.mxu0 %v8779_v10  ;;  %7988 = vmatprep.subr.bf16.mxu1 %v8787_v15  ;;  %v8851_v10 = vld [vmem:[%s12250_s1 + $0xbd4] ss:$12 sps:$4 sm:$0xff]  }
 0x105   :  { %5694 = vmatprep.subr.bf16.mxu0 %v8786_v13  ;;  %6173 = vmatprep.mubr.bf16.mxu1 %v9721_v3  ;;  %v8794_v3 = vld [vmem:[%s12250_s1 + $0xac8] ss:$12 sps:$4 sm:$0xff]   ;;  %v8849_v13 = vld [vmem:[%s12250_s1 + $0xbd0] ss:$12 sps:$4 sm:$0xff]  }
 0x106   :  { %5724 = vmatprep.mubr.bf16.mxu0 %v10427_v50  ;;  %v10597_v15 = vld [vmem:[%s12249_s0 + $0x10] sm:$0xff] }
 0x107   :  { %7989 = vmatpush3.bf16.msra.mxu1 %v8788_v17  ;;  %v8856_v17 = vld [vmem:[%s12250_s1 + $0xbec] ss:$12 sps:$4 sm:$0xff]  }
 0x108   :  { %5695 = vmatpush1.bf16.msra.mxu0 %v8784_v16  ;;  %7990 = vmatprep.subr.bf16.mxu1 %v8792_v34  ;;  %v8853_v16 = vld [vmem:[%s12250_s1 + $0x518] ss:$12 sps:$4 sm:$0xff]   ;;  %v10610_v34 = vrot.slane %v10597_v15, %v9686_v51 }
 0x109   :  { %5696 = vmatprep.subr.bf16.mxu0 %v8791_v18  ;;  %v8857_v18 = vld [vmem:[%s12250_s1 + $0x5f0] ss:$12 sps:$4 sm:$0xff]  }
 0x10b   :  { %7991 = vmatpush3.bf16.msra.mxu1 %v8793_v22  ;;  %v8858_v22 = vld [vmem:[%s12250_s1 + $0x530] ss:$12 sps:$4 sm:$0xff]  }
 0x10c   :  { %5697 = vmatpush1.bf16.msra.mxu0 %v8789_v21  ;;  %7992 = vmatprep.subr.bf16.mxu1 %v8797_v25  ;;  %v8854_v21 = vld [vmem:[%s12250_s1 + $0xbe8] ss:$12 sps:$4 sm:$0xff]  }
 0x10d   :  { %5698 = vmatprep.subr.bf16.mxu0 %v8796_v23  ;;  %v8861_v23 = vld [vmem:[%s12250_s1 + $0xc04] ss:$12 sps:$4 sm:$0xff]   ;;  %v8862_v25 = vld [vmem:[%s12250_s1 + $0x6c8] ss:$12 sps:$4 sm:$0xff]  }
 0x10f   :  { %7993 = vmatpush3.bf16.msra.mxu1 %v8798_v26  ;;  %v1194_v26 = vcombine.high %v10610_v34, %v10610_v34 }
 0x110   :  { %5699 = vmatpush1.bf16.msra.mxu0 %v8794_v3  ;;  %7994 = vmatprep.subr.bf16.mxu1 %v8802_v28  ;;  %v8859_v3 = vld [vmem:[%s12250_s1 + $0xc00] ss:$12 sps:$4 sm:$0xff]   ;;  %v8863_v28 = vld [vmem:[%s12250_s1 + $0x608] ss:$12 sps:$4 sm:$0xff]  }
 0x111   :  { %5700 = vmatprep.subr.bf16.mxu0 %v8801_v27  ;;  %v10631_v27 = vcombine.high %v10414_v11, %v10414_v11 }
 0x113   :  { %7995 = vmatpush3.bf16.msra.mxu1 %v8803_v30  ;;  %v8867_v30 = vld [vmem:[%s12250_s1 + $0x6e0] ss:$12 sps:$4 sm:$0xff]  }
 0x114   :  { %5701 = vmatpush1.bf16.msra.mxu0 %v8799_v29  ;;  %7996 = vmatprep.subr.bf16.mxu1 %v8807_v32  ;;  %v8866_v29 = vld [vmem:[%s12250_s1 + $0xc1c] ss:$12 sps:$4 sm:$0xff]   ;;  %v8864_v32 = vld [vmem:[%s12250_s1 + $0xc18] ss:$12 sps:$4 sm:$0xff]  }
 0x115   :  { %5702 = vmatprep.subr.bf16.mxu0 %v8806_v31  ;;  %v10643_v31 = vrot.slane %v1194_v26, %v9686_v51  ;;  %v8931_v26 = vld [vmem:[%s12250_s1 + $0xd54] ss:$12 sps:$4 sm:$0xff]  }
 0x117   :  { %7997 = vmatpush3.bf16.msra.mxu1 %v8808_v36  ;;  %v8871_v36 = vld [vmem:[%s12250_s1 + $0xc34] ss:$12 sps:$4 sm:$0xff]  }
 0x118   :  { %5703 = vmatpush1.bf16.msra.mxu0 %v8804_v33  ;;  %7998 = vmatprep.subr.bf16.mxu1 %v8812_v38  ;;  %v8868_v33 = vld [vmem:[%s12250_s1 + $0x620] ss:$12 sps:$4 sm:$0xff]   ;;  %v8873_v38 = vld [vmem:[%s12250_s1 + $0x638] ss:$12 sps:$4 sm:$0xff]  }
 0x119   :  { %5704 = vmatprep.subr.bf16.mxu0 %v8811_v37  ;;  %v8869_v37 = vld [vmem:[%s12250_s1 + $0xc30] ss:$12 sps:$4 sm:$0xff]  }
 0x11b   :  { %7999 = vmatpush3.bf16.msra.mxu1 %v8813_v40  ;;  %v8877_v40 = vld [vmem:[%s12250_s1 + $0x710] ss:$12 sps:$4 sm:$0xff]  }
 0x11c   :  { %5705 = vmatpush1.bf16.msra.mxu0 %v8809_v39  ;;  %8000 = vmatprep.subr.bf16.mxu1 %v8817_v19  ;;  %v8876_v39 = vld [vmem:[%s12250_s1 + $0xc4c] ss:$12 sps:$4 sm:$0xff]   ;;  %v8881_v19 = vld [vmem:[%s12250_s1 + $0xc64] ss:$12 sps:$4 sm:$0xff]  }
 0x11d   :  { %5706 = vmatprep.subr.bf16.mxu0 %v8816_v42  ;;  %v8878_v42 = vld [vmem:[%s12250_s1 + $0x650] ss:$12 sps:$4 sm:$0xff]  }
 0x11f   :  { %8001 = vmatpush3.bf16.msra.mxu1 %v8818_v44  ;;  %v8879_v44 = vld [vmem:[%s12250_s1 + $0xc60] ss:$12 sps:$4 sm:$0xff]  }
 0x120   :  { %5707 = vmatpush1.bf16.msra.mxu0 %v8814_v43  ;;  %8008 = vmatprep.subr.bf16.mxu1 %v8822_v48  ;;  %v8882_v43 = vld [vmem:[%s12250_s1 + $0x728] ss:$12 sps:$4 sm:$0xff]  }
 0x121   :  { %5708 = vmatprep.subr.bf16.mxu0 %v8821_v47  ;;  %v8883_v47 = vld [vmem:[%s12250_s1 + $0x668] ss:$12 sps:$4 sm:$0xff]  }
 0x122   :  { %6174 = vmatmul.mubr.bf16.vlgmr.msra.gmra.mrb[12].mxu1 %v9757_v14  ;;  %v8832_v14 = vld [vmem:[%s12250_s1 + $0x578] ss:$12 sps:$4 sm:$0xff]   ;;  %v8886_v48 = vld [vmem:[%s12250_s1 + $0xc7c] ss:$12 sps:$4 sm:$0xff]  }
 0x123   :  { %8009 = vmatpush3.bf16.msra.mxu1 %v8823_v49  ;;  %6213 = vmatprep.mubr.bf16.mxu1 %v9729_v5  ;;  %v8837_v5 = vld [vmem:[%s12250_s1 + $0x590] ss:$12 sps:$4 sm:$0xff]   ;;  %v8884_v49 = vld [vmem:[%s12250_s1 + $0xc78] ss:$12 sps:$4 sm:$0xff]  }
 0x124   :  { %5709 = vmatpush1.bf16.msra.mxu0 %v8819_v24  ;;  %8010 = vmatprep.subr.bf16.mxu1 %v8827_v52  ;;  %v8887_v24 = vld [vmem:[%s12250_s1 + $0x740] ss:$12 sps:$4 sm:$0xff]  }
 0x125   :  { %5710 = vmatprep.subr.bf16.mxu0 %v8826_v46  ;;  %v8888_v46 = vld [vmem:[%s12250_s1 + $0x680] ss:$12 sps:$4 sm:$0xff]  }
 0x126   :  { %v8891_v52 = vld [vmem:[%s12250_s1 + $0xc94] ss:$12 sps:$4 sm:$0xff]  }
 0x127   :  { %8011 = vmatpush3.bf16.msra.mxu1 %v8828_v54  ;;  %v8889_v54 = vld [vmem:[%s12250_s1 + $0xc90] ss:$12 sps:$4 sm:$0xff]  }
 0x128   :  { %5711 = vmatpush1.bf16.msra.mxu0 %v8824_v53  ;;  %8012 = vmatprep.subr.bf16.mxu1 %v8832_v14  ;;  %v8892_v53 = vld [vmem:[%s12250_s1 + $0x758] ss:$12 sps:$4 sm:$0xff]  }
 0x129   :  { %5712 = vmatprep.subr.bf16.mxu0 %v8831_v55  ;;  %v8893_v55 = vld [vmem:[%s12250_s1 + $0x698] ss:$12 sps:$4 sm:$0xff]  }
 0x12a   :  { %v8896_v14 = vld [vmem:[%s12250_s1 + $0xcac] ss:$12 sps:$4 sm:$0xff]  }
 0x12b   :  { %8013 = vmatpush3.bf16.msra.mxu1 %v8833_v59  ;;  %v8894_v59 = vld [vmem:[%s12250_s1 + $0xca8] ss:$12 sps:$4 sm:$0xff]  }
 0x12c   :  { %5713 = vmatpush1.bf16.msra.mxu0 %v8829_v57  ;;  %8014 = vmatprep.subr.bf16.mxu1 %v8837_v5  ;;  %v8897_v57 = vld [vmem:[%s12250_s1 + $0x770] ss:$12 sps:$4 sm:$0xff]  }
 0x12d   :  { %5714 = vmatprep.subr.bf16.mxu0 %v8836_v60  ;;  %v8898_v60 = vld [vmem:[%s12250_s1 + $0x6b0] ss:$12 sps:$4 sm:$0xff]  }
 0x12e   :  { %v8901_v5 = vld [vmem:[%s12250_s1 + $0xcc4] ss:$12 sps:$4 sm:$0xff]  }
 0x12f   :  { %8015 = vmatpush3.bf16.msra.mxu1 %v8838_v0  ;;  %v8899_v0 = vld [vmem:[%s12250_s1 + $0xcc0] ss:$12 sps:$4 sm:$0xff]  }
 0x130   :  { %5715 = vmatpush1.bf16.msra.mxu0 %v8834_v61  ;;  %8016 = vmatprep.subr.bf16.mxu1 %v8842_v2  ;;  %v8902_v61 = vld [vmem:[%s12250_s1 + $0x848] ss:$12 sps:$4 sm:$0xff]  }
 0x131   :  { %5716 = vmatprep.subr.bf16.mxu0 %v8841_v1  ;;  %v8903_v1 = vld [vmem:[%s12250_s1 + $0x788] ss:$12 sps:$4 sm:$0xff]  }
 0x132   :  { %v8906_v2 = vld [vmem:[%s12250_s1 + $0xcdc] ss:$12 sps:$4 sm:$0xff]  }
 0x133   :  { %8017 = vmatpush3.bf16.msra.mxu1 %v8843_v6  ;;  %v8904_v6 = vld [vmem:[%s12250_s1 + $0xcd8] ss:$12 sps:$4 sm:$0xff]  }
 0x134   :  { %5717 = vmatpush1.bf16.msra.mxu0 %v8839_v4  ;;  %8018 = vmatprep.subr.bf16.mxu1 %v8847_v8  ;;  %v8907_v4 = vld [vmem:[%s12250_s1 + $0x860] ss:$12 sps:$4 sm:$0xff]  }
 0x135   :  { %5718 = vmatprep.subr.bf16.mxu0 %v8846_v7  ;;  %v8908_v7 = vld [vmem:[%s12250_s1 + $0x7a0] ss:$12 sps:$4 sm:$0xff]  }
 0x136   :  { %v8911_v8 = vld [vmem:[%s12250_s1 + $0xcf4] ss:$12 sps:$4 sm:$0xff]  }
 0x137   :  { %8019 = vmatpush3.bf16.msra.mxu1 %v8848_v9  ;;  %v8913_v9 = vld [vmem:[%s12250_s1 + $0x7b8] ss:$12 sps:$4 sm:$0xff]  }
 0x138   :  { %5719 = vmatpush1.bf16.msra.mxu0 %v8844_v62  ;;  %8020 = vmatprep.subr.bf16.mxu1 %v8852_v12  ;;  %v8912_v62 = vld [vmem:[%s12250_s1 + $0x878] ss:$12 sps:$4 sm:$0xff]   ;;  %v8914_v12 = vld [vmem:[%s12250_s1 + $0xd08] ss:$12 sps:$4 sm:$0xff]  }
 0x139   :  { %5720 = vmatprep.subr.bf16.mxu0 %v8851_v10  ;;  %v8916_v10 = vld [vmem:[%s12250_s1 + $0xd0c] ss:$12 sps:$4 sm:$0xff]  }
 0x13b   :  { %8021 = vmatpush3.bf16.msra.mxu1 %v8853_v16  ;;  %v8921_v16 = vld [vmem:[%s12250_s1 + $0xd24] ss:$12 sps:$4 sm:$0xff]  }
 0x13c   :  { %5721 = vmatpush1.bf16.msra.mxu0 %v8849_v13  ;;  %8022 = vmatprep.subr.bf16.mxu1 %v8857_v18  ;;  %v8918_v13 = vld [vmem:[%s12250_s1 + $0x7d0] ss:$12 sps:$4 sm:$0xff]   ;;  %v8919_v18 = vld [vmem:[%s12250_s1 + $0xd20] ss:$12 sps:$4 sm:$0xff]  }
 0x13d   :  { %5722 = vmatprep.subr.bf16.mxu0 %v8856_v17  ;;  %v8922_v17 = vld [vmem:[%s12250_s1 + $0x8a8] ss:$12 sps:$4 sm:$0xff]  }
 0x13f   :  { %8023 = vmatpush3.bf16.msra.mxu1 %v8858_v22  ;;  %v8926_v22 = vld [vmem:[%s12250_s1 + $0xd3c] ss:$12 sps:$4 sm:$0xff]  }
 0x140   :  { %5723 = vmatpush1.bf16.msra.mxu0 %v8854_v21  ;;  %8030 = vmatprep.subr.bf16.mxu1 %v8862_v25  ;;  %v8923_v21 = vld [vmem:[%s12250_s1 + $0x7e8] ss:$12 sps:$4 sm:$0xff]   ;;  %v8924_v25 = vld [vmem:[%s12250_s1 + $0xd38] ss:$12 sps:$4 sm:$0xff]  }
 0x141   :  { %5733 = vmatprep.subr.bf16.mxu0 %v8861_v23  ;;  %v8927_v23 = vld [vmem:[%s12250_s1 + $0x8c0] ss:$12 sps:$4 sm:$0xff]  }
 0x142   :  { %6214 = vmatmul.mubr.bf16.vlgmr.msra.gmra.mrb[16].mxu1 %v9776_v20  ;;  %v8872_v20 = vld [vmem:[%s12250_s1 + $0x6f8] ss:$12 sps:$4 sm:$0xff]  }
 0x143   :  { %5725 = vmatmul.mubr.bf16.vlgmr.msra.gmra.mrb[0].mxu0 %v10631_v27  ;;  %8031 = vmatpush3.bf16.msra.mxu1 %v8863_v28  ;;  %v8932_v28 = vld [vmem:[%s12250_s1 + $0x8d8] ss:$12 sps:$4 sm:$0xff]  }
 0x144   :  { %5734 = vmatpush1.bf16.msra.mxu0 %v8859_v3  ;;  %8032 = vmatprep.subr.bf16.mxu1 %v8867_v30  ;;  %v8928_v3 = vld [vmem:[%s12250_s1 + $0x800] ss:$12 sps:$4 sm:$0xff]   ;;  %v8933_v30 = vld [vmem:[%s12250_s1 + $0x818] ss:$12 sps:$4 sm:$0xff]  }
 0x145   :  { %5735 = vmatprep.subr.bf16.mxu0 %v8866_v29  ;;  %6253 = vmatprep.mubr.bf16.mxu1 %v9884_v56  ;;  %v8874_v56 = vld [vmem:[%s12250_s1 + $0xc48] ss:$12 sps:$4 sm:$0xff]   ;;  %v8929_v29 = vld [vmem:[%s12250_s1 + $0xd50] ss:$12 sps:$4 sm:$0xff]  }
 0x146   :  { %5765 = vmatprep.mubr.bf16.mxu0 %v10643_v31 }
 0x147   :  { %8033 = vmatpush3.bf16.msra.mxu1 %v8868_v33  ;;  %v8937_v33 = vld [vmem:[%s12250_s1 + $0x8f0] ss:$12 sps:$4 sm:$0xff]  }
 0x148   :  { %5736 = vmatpush1.bf16.msra.mxu0 %v8864_v32  ;;  %8034 = vmatprep.subr.bf16.mxu1 %v8872_v20  ;;  %v8936_v32 = vld [vmem:[%s12250_s1 + $0xd6c] ss:$12 sps:$4 sm:$0xff]   ;;  %v8938_v20 = vld [vmem:[%s12250_s1 + $0x830] ss:$12 sps:$4 sm:$0xff]  }
 0x149   :  { %5737 = vmatprep.subr.bf16.mxu0 %v8871_v36  ;;  %v8934_v36 = vld [vmem:[%s12250_s1 + $0xd68] ss:$12 sps:$4 sm:$0xff]  }
 0x14b   :  { %8035 = vmatpush3.bf16.msra.mxu1 %v8873_v38  ;;  %v8942_v38 = vld [vmem:[%s12250_s1 + $0x9c8] ss:$12 sps:$4 sm:$0xff]  }
 0x14c   :  { %5738 = vmatpush1.bf16.msra.mxu0 %v8869_v37  ;;  %8036 = vmatprep.subr.bf16.mxu1 %v8877_v40  ;;  %v8941_v37 = vld [vmem:[%s12250_s1 + $0xd84] ss:$12 sps:$4 sm:$0xff]   ;;  %v10836_v40 = vrot.slane %v10610_v34, %v9686_v51 }
 0x14d   :  { %5739 = vmatprep.subr.bf16.mxu0 %v8876_v39  ;;  %v8939_v39 = vld [vmem:[%s12250_s1 + $0xd80] ss:$12 sps:$4 sm:$0xff]   ;;  %v8944_v34 = vld [vmem:[%s12250_s1 + $0xd98] ss:$12 sps:$4 sm:$0xff]  }
 0x14f   :  { %8037 = vmatpush3.bf16.msra.mxu1 %v8878_v42  ;;  %v8946_v42 = vld [vmem:[%s12250_s1 + $0xd9c] ss:$12 sps:$4 sm:$0xff]  }
 0x150   :  { %5740 = vmatpush1.bf16.msra.mxu0 %v8874_v56  ;;  %8038 = vmatprep.subr.bf16.mxu1 %v8882_v43  ;;  %v8943_v56 = vld [vmem:[%s12250_s1 + $0x908] ss:$12 sps:$4 sm:$0xff]   ;;  %v10852_v43 = vcombine.high %v10643_v31, %v10643_v31 }
 0x151   :  { %5741 = vmatprep.subr.bf16.mxu0 %v8881_v19  ;;  %v8947_v19 = vld [vmem:[%s12250_s1 + $0x9e0] ss:$12 sps:$4 sm:$0xff]  }
 0x153   :  { %8039 = vmatpush3.bf16.msra.mxu1 %v8883_v47  ;;  %v8951_v47 = vld [vmem:[%s12250_s1 + $0xdb4] ss:$12 sps:$4 sm:$0xff]  }
 0x154   :  { %5742 = vmatpush1.bf16.msra.mxu0 %v8879_v44  ;;  %8040 = vmatprep.subr.bf16.mxu1 %v8887_v24  ;;  %v8948_v44 = vld [vmem:[%s12250_s1 + $0x920] ss:$12 sps:$4 sm:$0xff]   ;;  %v8953_v24 = vld [vmem:[%s12250_s1 + $0x938] ss:$12 sps:$4 sm:$0xff]  }
 0x155   :  { %5743 = vmatprep.subr.bf16.mxu0 %v8886_v48  ;;  %v8952_v48 = vld [vmem:[%s12250_s1 + $0x9f8] ss:$12 sps:$4 sm:$0xff]  }
 0x157   :  { %8041 = vmatpush3.bf16.msra.mxu1 %v8888_v46  ;;  %v8954_v46 = vld [vmem:[%s12250_s1 + $0xdc8] ss:$12 sps:$4 sm:$0xff]  }
 0x158   :  { %5744 = vmatpush1.bf16.msra.mxu0 %v8884_v49  ;;  %8042 = vmatprep.subr.bf16.mxu1 %v8892_v53  ;;  %v8956_v49 = vld [vmem:[%s12250_s1 + $0xdcc] ss:$12 sps:$4 sm:$0xff]   ;;  %v8961_v53 = vld [vmem:[%s12250_s1 + $0xde4] ss:$12 sps:$4 sm:$0xff]  }
 0x159   :  { %5745 = vmatprep.subr.bf16.mxu0 %v8891_v52  ;;  %v8958_v52 = vld [vmem:[%s12250_s1 + $0x950] ss:$12 sps:$4 sm:$0xff]  }
 0x15b   :  { %8043 = vmatpush3.bf16.msra.mxu1 %v8893_v55  ;;  %v8959_v55 = vld [vmem:[%s12250_s1 + $0xde0] ss:$12 sps:$4 sm:$0xff]  }
 0x15c   :  { %5746 = vmatpush1.bf16.msra.mxu0 %v8889_v54  ;;  %8044 = vmatprep.subr.bf16.mxu1 %v8897_v57  ;;  %v8962_v54 = vld [vmem:[%s12250_s1 + $0xa28] ss:$12 sps:$4 sm:$0xff]  }
 0x15d   :  { %5747 = vmatprep.subr.bf16.mxu0 %v8896_v14  ;;  %v8963_v14 = vld [vmem:[%s12250_s1 + $0x968] ss:$12 sps:$4 sm:$0xff]  }
 0x15e   :  { %v8966_v57 = vld [vmem:[%s12250_s1 + $0xdfc] ss:$12 sps:$4 sm:$0xff]  }
 0x15f   :  { %8045 = vmatpush3.bf16.msra.mxu1 %v8898_v60  ;;  %v8964_v60 = vld [vmem:[%s12250_s1 + $0xdf8] ss:$12 sps:$4 sm:$0xff]  }
 0x160   :  { %5748 = vmatpush1.bf16.msra.mxu0 %v8894_v59  ;;  %8052 = vmatprep.subr.bf16.mxu1 %v8902_v61  ;;  %v8967_v59 = vld [vmem:[%s12250_s1 + $0xa40] ss:$12 sps:$4 sm:$0xff]  }
 0x161   :  { %5749 = vmatprep.subr.bf16.mxu0 %v8901_v5  ;;  %v8968_v5 = vld [vmem:[%s12250_s1 + $0x980] ss:$12 sps:$4 sm:$0xff]  }
 0x162   :  { %6254 = vmatmul.mubr.bf16.vlgmr.msra.gmra.mrb[20].mxu1 %v9995_v35  ;;  %v8909_v35 = vld [vmem:[%s12250_s1 + $0xcf0] ss:$12 sps:$4 sm:$0xff]   ;;  %v8971_v61 = vld [vmem:[%s12250_s1 + $0xe14] ss:$12 sps:$4 sm:$0xff]  }
 0x163   :  { %8053 = vmatpush3.bf16.msra.mxu1 %v8903_v1  ;;  %6293 = vmatprep.mubr.bf16.mxu1 %v10014_v41  ;;  %v8917_v41 = vld [vmem:[%s12250_s1 + $0x890] ss:$12 sps:$4 sm:$0xff]  }
 0x164   :  { %5750 = vmatpush1.bf16.msra.mxu0 %v8899_v0  ;;  %8054 = vmatprep.subr.bf16.mxu1 %v8907_v4  ;;  %v8972_v0 = vld [vmem:[%s12250_s1 + $0xa58] ss:$12 sps:$4 sm:$0xff]   ;;  %v8969_v1 = vld [vmem:[%s12250_s1 + $0xe10] ss:$12 sps:$4 sm:$0xff]  }
 0x165   :  { %5751 = vmatprep.subr.bf16.mxu0 %v8906_v2  ;;  %v8973_v2 = vld [vmem:[%s12250_s1 + $0x998] ss:$12 sps:$4 sm:$0xff]  }
 0x167   :  { %8055 = vmatpush3.bf16.msra.mxu1 %v8908_v7 }
 0x168   :  { %5752 = vmatpush1.bf16.msra.mxu0 %v8904_v6  ;;  %8056 = vmatprep.subr.bf16.mxu1 %v8912_v62  ;;  %v8976_v6 = vld [vmem:[%s12250_s1 + $0xe2c] ss:$12 sps:$4 sm:$0xff]  }
 0x169   :  { %5753 = vmatprep.subr.bf16.mxu0 %v8911_v8  ;;  %v8977_v8 = vld [vmem:[%s12250_s1 + $0xa70] ss:$12 sps:$4 sm:$0xff]  }
 0x16b   :  { %8057 = vmatpush3.bf16.msra.mxu1 %v8913_v9  ;;  %v8974_v9 = vld [vmem:[%s12250_s1 + $0xe28] ss:$12 sps:$4 sm:$0xff]  }
 0x16c   :  { %5754 = vmatpush1.bf16.msra.mxu0 %v8909_v35  ;;  %8058 = vmatprep.subr.bf16.mxu1 %v8917_v41  ;;  %v8981_v41 = vld [vmem:[%s12250_s1 + $0xe44] ss:$12 sps:$4 sm:$0xff]  }
 0x16d   :  { %5755 = vmatprep.subr.bf16.mxu0 %v8916_v10  ;;  %v8978_v10 = vld [vmem:[%s12250_s1 + $0x9b0] ss:$12 sps:$4 sm:$0xff]  }
 0x16f   :  { %8059 = vmatpush3.bf16.msra.mxu1 %v8918_v13  ;;  %v8979_v13 = vld [vmem:[%s12250_s1 + $0xe40] ss:$12 sps:$4 sm:$0xff]  }
 0x170   :  { %5756 = vmatpush1.bf16.msra.mxu0 %v8914_v12  ;;  %8060 = vmatprep.subr.bf16.mxu1 %v8922_v17  ;;  %v8982_v12 = vld [vmem:[%s12250_s1 + $0xb48] ss:$12 sps:$4 sm:$0xff]  }
 0x171   :  { %5757 = vmatprep.subr.bf16.mxu0 %v8921_v16  ;;  %v8983_v16 = vld [vmem:[%s12250_s1 + $0xa88] ss:$12 sps:$4 sm:$0xff]  }
 0x172   :  { %v8986_v17 = vld [vmem:[%s12250_s1 + $0xe5c] ss:$12 sps:$4 sm:$0xff]  }
 0x173   :  { %8061 = vmatpush3.bf16.msra.mxu1 %v8923_v21  ;;  %v8984_v21 = vld [vmem:[%s12250_s1 + $0xe58] ss:$12 sps:$4 sm:$0xff]  }
 0x174   :  { %5758 = vmatpush1.bf16.msra.mxu0 %v8919_v18  ;;  %8062 = vmatprep.subr.bf16.mxu1 %v8927_v23  ;;  %v8987_v18 = vld [vmem:[%s12250_s1 + $0xb60] ss:$12 sps:$4 sm:$0xff]  }
 0x175   :  { %5759 = vmatprep.subr.bf16.mxu0 %v8926_v22  ;;  %v8988_v22 = vld [vmem:[%s12250_s1 + $0xaa0] ss:$12 sps:$4 sm:$0xff]  }
 0x176   :  { %v8991_v23 = vld [vmem:[%s12250_s1 + $0xe74] ss:$12 sps:$4 sm:$0xff]  }
 0x177   :  { %8063 = vmatpush3.bf16.msra.mxu1 %v8928_v3  ;;  %v8993_v3 = vld [vmem:[%s12250_s1 + $0xab8] ss:$12 sps:$4 sm:$0xff]  }
 0x178   :  { %5760 = vmatpush1.bf16.msra.mxu0 %v8924_v25  ;;  %8064 = vmatprep.subr.bf16.mxu1 %v8932_v28  ;;  %v8989_v25 = vld [vmem:[%s12250_s1 + $0xe70] ss:$12 sps:$4 sm:$0xff]   ;;  %v8994_v28 = vld [vmem:[%s12250_s1 + $0xe88] ss:$12 sps:$4 sm:$0xff]  }
 0x179   :  { %5761 = vmatprep.subr.bf16.mxu0 %v8931_v26  ;;  %v8996_v26 = vld [vmem:[%s12250_s1 + $0xe8c] ss:$12 sps:$4 sm:$0xff]  }
 0x17b   :  { %8065 = vmatpush3.bf16.msra.mxu1 %v8933_v30  ;;  %v9001_v30 = vld [vmem:[%s12250_s1 + $0xea4] ss:$12 sps:$4 sm:$0xff]  }
 0x17c   :  { %5762 = vmatpush1.bf16.msra.mxu0 %v8929_v29  ;;  %8066 = vmatprep.subr.bf16.mxu1 %v8937_v33  ;;  %v8998_v29 = vld [vmem:[%s12250_s1 + $0xad0] ss:$12 sps:$4 sm:$0xff]   ;;  %v8999_v33 = vld [vmem:[%s12250_s1 + $0xea0] ss:$12 sps:$4 sm:$0xff]  }
 0x17d   :  { %5763 = vmatprep.subr.bf16.mxu0 %v8936_v32  ;;  %v9002_v32 = vld [vmem:[%s12250_s1 + $0xba8] ss:$12 sps:$4 sm:$0xff]  }
 0x17f   :  { %8067 = vmatpush3.bf16.msra.mxu1 %v8938_v20  ;;  %v9006_v20 = vld [vmem:[%s12250_s1 + $0xebc] ss:$12 sps:$4 sm:$0xff]  }
 0x180   :  { %5764 = vmatpush1.bf16.msra.mxu0 %v8934_v36  ;;  %8074 = vmatprep.subr.bf16.mxu1 %v8942_v38  ;;  %v9003_v36 = vld [vmem:[%s12250_s1 + $0xae8] ss:$12 sps:$4 sm:$0xff]   ;;  %v9004_v38 = vld [vmem:[%s12250_s1 + $0xeb8] ss:$12 sps:$4 sm:$0xff]  }
 0x181   :  { %5774 = vmatprep.subr.bf16.mxu0 %v8941_v37  ;;  %v9007_v37 = vld [vmem:[%s12250_s1 + $0xbc0] ss:$12 sps:$4 sm:$0xff]  }
 0x182   :  { %6294 = vmatmul.mubr.bf16.vlgmr.msra.gmra.mrb[24].mxu1 %v10209_v58  ;;  %v8949_v58 = vld [vmem:[%s12250_s1 + $0xdb0] ss:$12 sps:$4 sm:$0xff]  }
 0x183   :  { %5766 = vmatmul.mubr.bf16.vlgmr.msra.gmra.mrb[0].mxu0 %v10836_v40  ;;  %8075 = vmatpush3.bf16.msra.mxu1 %v8943_v56  ;;  %v9011_v56 = vld [vmem:[%s12250_s1 + $0xed4] ss:$12 sps:$4 sm:$0xff]  }
 0x184   :  { %5775 = vmatpush1.bf16.msra.mxu0 %v8939_v39  ;;  %8076 = vmatprep.subr.bf16.mxu1 %v8947_v19  ;;  %v9008_v39 = vld [vmem:[%s12250_s1 + $0xb00] ss:$12 sps:$4 sm:$0xff]   ;;  %v1179_v19 = vcombine.high %v10597_v15, %v10597_v15  ;;  %v9017_v15 = vld [vmem:[%s12250_s1 + $0xbf0] ss:$12 sps:$4 sm:$0xff]  }
 0x185   :  { %5776 = vmatprep.subr.bf16.mxu0 %v8946_v42  ;;  %6333 = vmatprep.mubr.bf16.mxu1 %v10221_v63  ;;  %v8957_v63 = vld [vmem:[%s12250_s1 + $0xa10] ss:$12 sps:$4 sm:$0xff]   ;;  %v9012_v42 = vld [vmem:[%s12250_s1 + $0xbd8] ss:$12 sps:$4 sm:$0xff]  }
 0x186   :  { %5806 = vmatprep.mubr.bf16.mxu0 %v10852_v43 }
 0x187   :  { %8077 = vmatpush3.bf16.msra.mxu1 %v8948_v44  ;;  %v9013_v44 = vld [vmem:[%s12250_s1 + $0xb18] ss:$12 sps:$4 sm:$0xff]  }
 0x188   :  { %5777 = vmatpush1.bf16.msra.mxu0 %v8944_v34  ;;  %8078 = vmatprep.subr.bf16.mxu1 %v8952_v48  ;;  %v9009_v34 = vld [vmem:[%s12250_s1 + $0xed0] ss:$12 sps:$4 sm:$0xff]   ;;  %v11032_v48 = vrot.slane %v1179_v19, %v9686_v51 }
 0x189   :  { %5778 = vmatprep.subr.bf16.mxu0 %v8951_v47  ;;  %v9016_v47 = vld [vmem:[%s12250_s1 + $0xeec] ss:$12 sps:$4 sm:$0xff]   ;;  %v9061_v19 = vld [vmem:[%s12250_s1 + $0xfc4] ss:$12 sps:$4 sm:$0xff]  }
 0x18b   :  { %8079 = vmatpush3.bf16.msra.mxu1 %v8953_v24  ;;  %v9018_v24 = vld [vmem:[%s12250_s1 + $0xb30] ss:$12 sps:$4 sm:$0xff]  }
 0x18c   :  { %5779 = vmatpush1.bf16.msra.mxu0 %v8949_v58  ;;  %8080 = vmatprep.subr.bf16.mxu1 %v8957_v63  ;;  %v9014_v58 = vld [vmem:[%s12250_s1 + $0xee8] ss:$12 sps:$4 sm:$0xff]  }
 0x18d   :  { %5780 = vmatprep.subr.bf16.mxu0 %v8956_v49  ;;  %v9021_v49 = vld [vmem:[%s12250_s1 + $0xf04] ss:$12 sps:$4 sm:$0xff]   ;;  %v9022_v63 = vld [vmem:[%s12250_s1 + $0xcc8] ss:$12 sps:$4 sm:$0xff]  }
 0x18f   :  { %8081 = vmatpush3.bf16.msra.mxu1 %v8958_v52  ;;  %v1195_v52 = vcombine.high %v11032_v48, %v11032_v48 }
 0x190   :  { %5781 = vmatpush1.bf16.msra.mxu0 %v8954_v46  ;;  %8082 = vmatprep.subr.bf16.mxu1 %v8962_v54  ;;  %v9019_v46 = vld [vmem:[%s12250_s1 + $0xf00] ss:$12 sps:$4 sm:$0xff]   ;;  %v9023_v54 = vld [vmem:[%s12250_s1 + $0xc08] ss:$12 sps:$4 sm:$0xff]  }
 0x191   :  { %5782 = vmatprep.subr.bf16.mxu0 %v8961_v53  ;;  %v11053_v53 = vcombine.high %v10836_v40, %v10836_v40 }
 0x193   :  { %8083 = vmatpush3.bf16.msra.mxu1 %v8963_v14  ;;  %v9027_v14 = vld [vmem:[%s12250_s1 + $0xce0] ss:$12 sps:$4 sm:$0xff]  }
 0x194   :  { %5783 = vmatpush1.bf16.msra.mxu0 %v8959_v55  ;;  %8084 = vmatprep.subr.bf16.mxu1 %v8967_v59  ;;  %v9026_v55 = vld [vmem:[%s12250_s1 + $0xf1c] ss:$12 sps:$4 sm:$0xff]   ;;  %v9024_v59 = vld [vmem:[%s12250_s1 + $0xf18] ss:$12 sps:$4 sm:$0xff]  }
 0x195   :  { %5784 = vmatprep.subr.bf16.mxu0 %v8966_v57  ;;  %v10921_v4 = vpop.f32.mrb[0].mxu1  ;;  %v11065_v57 = vrot.slane %v1195_v52, %v9686_v51  ;;  %v9073_v52 = vld [vmem:[%s12250_s1 + $0xdb8] ss:$12 sps:$4 sm:$0xff]  }
 0x196   :  { %v10926_v7 = vpop.f32.mrb[1].mxu1 }
 0x197   :  { %8085 = vmatpush3.bf16.msra.mxu1 %v8968_v5  ;;  %v5525_v62 = vpop.f32.mrb[2].mxu1  ;;  %v9031_v5 = vld [vmem:[%s12250_s1 + $0xf34] ss:$12 sps:$4 sm:$0xff]  }
 0x198   :  { %5785 = vmatpush1.bf16.msra.mxu0 %v8964_v60  ;;  %8086 = vmatprep.subr.bf16.mxu1 %v8972_v0  ;;  %v5526_v35 = vpop.f32.mrb[3].mxu1  ;;  %v9028_v60 = vld [vmem:[%s12250_s1 + $0xc20] ss:$12 sps:$4 sm:$0xff]   ;;  %v9033_v0 = vld [vmem:[%s12250_s1 + $0xc38] ss:$12 sps:$4 sm:$0xff]  }
 0x199   :  { %5786 = vmatprep.subr.bf16.mxu0 %v8971_v61  ;;  %v9029_v61 = vld [vmem:[%s12250_s1 + $0xf30] ss:$12 sps:$4 sm:$0xff]   ;;  %v9034_v35 = vld [vmem:[%s12250_s1 + $0xf48] ss:$12 sps:$4 sm:$0xff]  }
 0x19b   :  { %8087 = vmatpush3.bf16.msra.mxu1 %v8973_v2 }
 0x19c   :  { %5787 = vmatpush1.bf16.msra.mxu0 %v8969_v1  ;;  %8088 = vmatprep.subr.bf16.mxu1 %v8977_v8  ;;  %v9036_v1 = vld [vmem:[%s12250_s1 + $0xf4c] ss:$12 sps:$4 sm:$0xff]  }
 0x19d   :  { %5788 = vmatprep.subr.bf16.mxu0 %v8976_v6  ;;  %v9037_v6 = vld [vmem:[%s12250_s1 + $0xd10] ss:$12 sps:$4 sm:$0xff]  }
 0x19f   :  { %8089 = vmatpush3.bf16.msra.mxu1 %v8978_v10  ;;  %v9041_v10 = vld [vmem:[%s12250_s1 + $0xf64] ss:$12 sps:$4 sm:$0xff]  }
 0x1a0   :  { %5789 = vmatpush1.bf16.msra.mxu0 %v8974_v9  ;;  %8096 = vmatprep.subr.bf16.mxu1 %v8982_v12  ;;  %v9038_v9 = vld [vmem:[%s12250_s1 + $0xc50] ss:$12 sps:$4 sm:$0xff]   ;;  %v9042_v12 = vld [vmem:[%s12250_s1 + $0xd28] ss:$12 sps:$4 sm:$0xff]  }
 0x1a1   :  { %5790 = vmatprep.subr.bf16.mxu0 %v8981_v41 }
 0x1a2   :  { %6334 = vmatmul.mubr.bf16.vlgmr.msra.gmra.mrb[28].mxu1 %v10414_v11  ;;  %v8992_v11 = vld [vmem:[%s12250_s1 + $0xb78] ss:$12 sps:$4 sm:$0xff]  }
 0x1a3   :  { %8097 = vmatpush3.bf16.msra.mxu1 %v8983_v16  ;;  %6373 = vmatprep.mubr.bf16.mxu1 %v10427_v50  ;;  %v8997_v50 = vld [vmem:[%s12250_s1 + $0xb90] ss:$12 sps:$4 sm:$0xff]   ;;  %v11111_v16 = vsub.s32 2, %v9671_v45 }
 0x1a4   :  { %5791 = vmatpush1.bf16.msra.mxu0 %v8979_v13  ;;  %8098 = vmatprep.subr.bf16.mxu1 %v8987_v18  ;;  %v9039_v13 = vld [vmem:[%s12250_s1 + $0xf60] ss:$12 sps:$4 sm:$0xff]   ;;  %v9043_v18 = vld [vmem:[%s12250_s1 + $0xc68] ss:$12 sps:$4 sm:$0xff]  }
 0x1a5   :  { %5792 = vmatprep.subr.bf16.mxu0 %v8986_v17  ;;  %v1060_v17 = vld [vmem:[%s12251_s2] sm:$0x7] }
 0x1a7   :  { %8099 = vmatpush3.bf16.msra.mxu1 %v8988_v22  ;;  %v9047_v22 = vld [vmem:[%s12250_s1 + $0xd40] ss:$12 sps:$4 sm:$0xff]  }
 0x1a8   :  { %5793 = vmatpush1.bf16.msra.mxu0 %v8984_v21  ;;  %8100 = vmatprep.subr.bf16.mxu1 %v8992_v11  ;;  %v9046_v21 = vld [vmem:[%s12250_s1 + $0xf7c] ss:$12 sps:$4 sm:$0xff]   ;;  %v1073_v11 = vrot.slane %v1060_v17, %v11111_v16 }
 0x1a9   :  { %5794 = vmatprep.subr.bf16.mxu0 %v8991_v23  ;;  %v9044_v23 = vld [vmem:[%s12250_s1 + $0xf78] ss:$12 sps:$4 sm:$0xff]  }
 0x1ab   :  { %8101 = vmatpush3.bf16.msra.mxu1 %v8993_v3  ;;  %v9051_v3 = vld [vmem:[%s12250_s1 + $0xf94] ss:$12 sps:$4 sm:$0xff]  }
 0x1ac   :  { %5795 = vmatpush1.bf16.msra.mxu0 %v8989_v25  ;;  %8102 = vmatprep.subr.bf16.mxu1 %v8997_v50  ;;  %v9048_v25 = vld [vmem:[%s12250_s1 + $0xc80] ss:$12 sps:$4 sm:$0xff]   ;;  %v9049_v50 = vld [vmem:[%s12250_s1 + $0xf90] ss:$12 sps:$4 sm:$0xff]  }
 0x1ad   :  { %5796 = vmatprep.subr.bf16.mxu0 %v8996_v26  ;;  %v9052_v26 = vld [vmem:[%s12250_s1 + $0xd58] ss:$12 sps:$4 sm:$0xff]  }
 0x1af   :  { %8103 = vmatpush3.bf16.msra.mxu1 %v8998_v29 }
 0x1b0   :  { %5797 = vmatpush1.bf16.msra.mxu0 %v8994_v28  ;;  %8104 = vmatprep.subr.bf16.mxu1 %v9002_v32  ;;  %v9053_v32 = vld [vmem:[%s12250_s1 + $0xc98] ss:$12 sps:$4 sm:$0xff]  }
 0x1b1   :  { %5798 = vmatprep.subr.bf16.mxu0 %v9001_v30 }
 0x1b3   :  { %8105 = vmatpush3.bf16.msra.mxu1 %v9003_v36 }
 0x1b4   :  { %5799 = vmatpush1.bf16.msra.mxu0 %v8999_v33  ;;  %8106 = vmatprep.subr.bf16.mxu1 %v9007_v37  ;;  %v9056_v33 = vld [vmem:[%s12250_s1 + $0xfac] ss:$12 sps:$4 sm:$0xff]   ;;  %v9057_v37 = vld [vmem:[%s12250_s1 + $0xd70] ss:$12 sps:$4 sm:$0xff]  }
 0x1b5   :  { %5800 = vmatprep.subr.bf16.mxu0 %v9006_v20  ;;  %v7958_v2 = vpop.f32.mrb[4].mxu1 }
 0x1b7   :  { %8107 = vmatpush3.bf16.msra.mxu1 %v9008_v39 }
 0x1b8   :  { %5801 = vmatpush1.bf16.msra.mxu0 %v9004_v38  ;;  %8108 = vmatprep.subr.bf16.mxu1 %v9012_v42  ;;  %v9058_v42 = vld [vmem:[%s12250_s1 + $0xcb0] ss:$12 sps:$4 sm:$0xff]  }
 0x1b9   :  { %5802 = vmatprep.subr.bf16.mxu0 %v9011_v56  ;;  %v9054_v56 = vld [vmem:[%s12250_s1 + $0xfa8] ss:$12 sps:$4 sm:$0xff]  }
 0x1bb   :  { %8109 = vmatpush3.bf16.msra.mxu1 %v9013_v44  ;;  %v9059_v44 = vld [vmem:[%s12250_s1 + $0xfc0] ss:$12 sps:$4 sm:$0xff]  }
 0x1bc   :  { %5803 = vmatpush1.bf16.msra.mxu0 %v9009_v34  ;;  %8110 = vmatprep.subr.bf16.mxu1 %v9017_v15  ;;  %v9062_v34 = vld [vmem:[%s12250_s1 + $0xe48] ss:$12 sps:$4 sm:$0xff]  }
 0x1bd   :  { %5804 = vmatprep.subr.bf16.mxu0 %v9016_v47  ;;  %v9063_v47 = vld [vmem:[%s12250_s1 + $0xd88] ss:$12 sps:$4 sm:$0xff]  }
 0x1be   :  { %v9066_v15 = vld [vmem:[%s12250_s1 + $0xfdc] ss:$12 sps:$4 sm:$0xff]  }
 0x1bf   :  { %8111 = vmatpush3.bf16.msra.mxu1 %v9018_v24  ;;  %v9064_v24 = vld [vmem:[%s12250_s1 + $0xfd8] ss:$12 sps:$4 sm:$0xff]  }
 0x1c0   :  { %5805 = vmatpush1.bf16.msra.mxu0 %v9014_v58  ;;  %8118 = vmatprep.subr.bf16.mxu1 %v9022_v63  ;;  %v9067_v58 = vld [vmem:[%s12250_s1 + $0xe60] ss:$12 sps:$4 sm:$0xff]  }
 0x1c1   :  { %5815 = vmatprep.subr.bf16.mxu0 %v9021_v49  ;;  %v9068_v49 = vld [vmem:[%s12250_s1 + $0xda0] ss:$12 sps:$4 sm:$0xff]  }
 0x1c2   :  { %6374 = vmatmul.mubr.bf16.vlgmr.msra.gmra.mrb[32].mxu1 %v10631_v27  ;;  %v9032_v27 = vld [vmem:[%s12250_s1 + $0xcf8] ss:$12 sps:$4 sm:$0xff]   ;;  %v9071_v63 = vld [vmem:[%s12250_s1 + $0xff4] ss:$12 sps:$4 sm:$0xff]  }
 0x1c3   :  { %5807 = vmatmul.mubr.bf16.vlgmr.msra.gmra.mrb[0].mxu0 %v11053_v53  ;;  %8119 = vmatpush3.bf16.msra.mxu1 %v9023_v54  ;;  %v9076_v54 = vld [vmem:[%s12250_s1 + $0x100c] ss:$12 sps:$4 sm:$0xff]  }
 0x1c4   :  { %5816 = vmatpush1.bf16.msra.mxu0 %v9019_v46  ;;  %8120 = vmatprep.subr.bf16.mxu1 %v9027_v14  ;;  %v9072_v46 = vld [vmem:[%s12250_s1 + $0xe78] ss:$12 sps:$4 sm:$0xff]   ;;  %v9078_v14 = vld [vmem:[%s12250_s1 + $0xdd0] ss:$12 sps:$4 sm:$0xff]  }
 0x1c5   :  { %5817 = vmatprep.subr.bf16.mxu0 %v9026_v55  ;;  %6413 = vmatprep.mubr.bf16.mxu1 %v10643_v31  ;;  %v7959_v31 = vpop.f32.mrb[5].mxu1  ;;  %v9077_v55 = vld [vmem:[%s12250_s1 + $0xe90] ss:$12 sps:$4 sm:$0xff]  }
 0x1c6   :  { %5847 = vmatprep.mubr.bf16.mxu0 %v11065_v57  ;;  %v7960_v8 = vadd.f32 %v7959_v31, %v7958_v2  ;;  %v7961_v62 = vpop.f32.mrb[6].mxu1  ;;  %v9088_v2 = vld [vmem:[%s12250_s1 + $0xe00] ss:$12 sps:$4 sm:$0xff]   ;;  %v9092_v31 = vld [vmem:[%s12250_s1 + $0xed8] ss:$12 sps:$4 sm:$0xff]  }
 0x1c7   :  { %8121 = vmatpush3.bf16.msra.mxu1 %v9028_v60  ;;  %v7962_v41 = vpop.f32.mrb[7].mxu1  ;;  %v9082_v60 = vld [vmem:[%s12250_s1 + $0xea8] ss:$12 sps:$4 sm:$0xff]   ;;  %v9093_v62 = vld [vmem:[%s12250_s1 + $0xe18] ss:$12 sps:$4 sm:$0xff]  }
 0x1c8   :  { %5818 = vmatpush1.bf16.msra.mxu0 %v9024_v59  ;;  %8122 = vmatprep.subr.bf16.mxu1 %v9032_v27  ;;  %v6096_v28 = vadd.f32 %v7960_v8, %v1073_v11  ;;  %v9081_v59 = vld [vmem:[%s12250_s1 + $0x1024] ss:$12 sps:$4 sm:$0xff]   ;;  %v9083_v27 = vld [vmem:[%s12250_s1 + $0xde8] ss:$12 sps:$4 sm:$0xff]  }
 0x1c9   :  { %5819 = vmatprep.subr.bf16.mxu0 %v9031_v5  ;;  %v9079_v5 = vld [vmem:[%s12250_s1 + $0x1020] ss:$12 sps:$4 sm:$0xff]   ;;  %v9089_v8 = vld [vmem:[%s12250_s1 + $0x1050] ss:$12 sps:$4 sm:$0xff]   ;;  %v9103_v11 = vld [vmem:[%s12250_s1 + $0xfc8] ss:$12 sps:$4 sm:$0xff]  }
 0x1cb   :  { %8123 = vmatpush3.bf16.msra.mxu1 %v9033_v0  ;;  %v9087_v0 = vld [vmem:[%s12250_s1 + $0xec0] ss:$12 sps:$4 sm:$0xff]  }
 0x1cc   :  { %5820 = vmatpush1.bf16.msra.mxu0 %v9029_v61  ;;  %8124 = vmatprep.subr.bf16.mxu1 %v9037_v6  ;;  %v9086_v61 = vld [vmem:[%s12250_s1 + $0x103c] ss:$12 sps:$4 sm:$0xff]   ;;  %v9091_v6 = vld [vmem:[%s12250_s1 + $0x1054] ss:$12 sps:$4 sm:$0xff]  }
 0x1cd   :  { %5821 = vmatprep.subr.bf16.mxu0 %v9036_v1  ;;  %v9084_v1 = vld [vmem:[%s12250_s1 + $0x1038] ss:$12 sps:$4 sm:$0xff]  }
 0x1cf   :  { %8125 = vmatpush3.bf16.msra.mxu1 %v9038_v9 }
 0x1d0   :  { %5822 = vmatpush1.bf16.msra.mxu0 %v9034_v35  ;;  %8126 = vmatprep.subr.bf16.mxu1 %v9042_v12  ;;  %v9096_v12 = vld [vmem:[%s12250_s1 + $0x106c] ss:$12 sps:$4 sm:$0xff]  }
 0x1d1   :  { %5823 = vmatprep.subr.bf16.mxu0 %v9041_v10 }
 0x1d3   :  { %8127 = vmatpush3.bf16.msra.mxu1 %v9043_v18  ;;  %v9094_v18 = vld [vmem:[%s12250_s1 + $0x1068] ss:$12 sps:$4 sm:$0xff]  }
 0x1d4   :  { %5824 = vmatpush1.bf16.msra.mxu0 %v9039_v13  ;;  %8128 = vmatprep.subr.bf16.mxu1 %v9047_v22  ;;  %v9097_v13 = vld [vmem:[%s12250_s1 + $0xef0] ss:$12 sps:$4 sm:$0xff]  }
 0x1d5   :  { %5825 = vmatprep.subr.bf16.mxu0 %v9046_v21  ;;  %v7980_v29 = vpop.f32.mrb[8].mxu1  ;;  %v9098_v22 = vld [vmem:[%s12250_s1 + $0xe30] ss:$12 sps:$4 sm:$0xff]  }
 0x1d6   :  { %v7981_v30 = vpop.f32.mrb[9].mxu1 }
 0x1d7   :  { %8129 = vmatpush3.bf16.msra.mxu1 %v9048_v25  ;;  %v7982_v36 = vadd.f32 %v7981_v30, %v7980_v29  ;;  %v7983_v20 = vpop.f32.mrb[10].mxu1  ;;  %v9100_v25 = vld [vmem:[%s12250_s1 + $0x1080] ss:$12 sps:$4 sm:$0xff]   ;;  %v11286_v29 = vcombine.high %v11065_v57, %v11065_v57 }
 0x1d8   :  { %5826 = vmatpush1.bf16.msra.mxu0 %v9044_v23  ;;  %8130 = vmatprep.subr.bf16.mxu1 %v9052_v26  ;;  %v7984_v38 = vpop.f32.mrb[11].mxu1  ;;  %v9102_v23 = vld [vmem:[%s12250_s1 + $0x1084] ss:$12 sps:$4 sm:$0xff]   ;;  %v9104_v26 = vld [vmem:[%s12250_s1 + $0xf08] ss:$12 sps:$4 sm:$0xff]  }
 0x1d9   :  { %5827 = vmatprep.subr.bf16.mxu0 %v9051_v3  ;;  %v11150_v39 = vadd.f32 %v7982_v36, %v6096_v28  ;;  %v11270_v3 = vrot.slane %v11032_v48, %v9686_v51  ;;  %v9108_v28 = vld [vmem:[%s12250_s1 + $0xfe0] ss:$12 sps:$4 sm:$0xff]   ;;  %v9105_v48 = vld [vmem:[%s12250_s1 + $0x1098] ss:$12 sps:$4 sm:$0xff]   ;;  %v9119_v38 = vld [vmem:[%s12250_s1 + $0xf50] ss:$12 sps:$4 sm:$0xff]  }
 0x1da   :  { %v9109_v30 = vld [vmem:[%s12250_s1 + $0xf20] ss:$12 sps:$4 sm:$0xff]   ;;  %v9114_v36 = vld [vmem:[%s12250_s1 + $0xf38] ss:$12 sps:$4 sm:$0xff]  }
 0x1db   :  { %8131 = vmatpush3.bf16.msra.mxu1 %v9053_v32  ;;  %v9112_v32 = vld [vmem:[%s12250_s1 + $0x10b4] ss:$12 sps:$4 sm:$0xff]   ;;  %v9117_v20 = vld [vmem:[%s12250_s1 + $0x10cc] ss:$12 sps:$4 sm:$0xff]  }
 0x1dc   :  { %5828 = vmatpush1.bf16.msra.mxu0 %v9049_v50  ;;  %8132 = vmatprep.subr.bf16.mxu1 %v9057_v37  ;;  %v9107_v50 = vld [vmem:[%s12250_s1 + $0x109c] ss:$12 sps:$4 sm:$0xff]  }
 0x1dd   :  { %5829 = vmatprep.subr.bf16.mxu0 %v9056_v33  ;;  %v9113_v33 = vld [vmem:[%s12250_s1 + $0xff8] ss:$12 sps:$4 sm:$0xff]   ;;  %v9118_v37 = vld [vmem:[%s12250_s1 + $0x1010] ss:$12 sps:$4 sm:$0xff]  }
 0x1df   :  { %8133 = vmatpush3.bf16.msra.mxu1 %v9058_v42  ;;  %v9120_v42 = vld [vmem:[%s12250_s1 + $0x10e0] ss:$12 sps:$4 sm:$0xff]  }
 0x1e0   :  { %5830 = vmatpush1.bf16.msra.mxu0 %v9054_v56  ;;  %8140 = vmatprep.subr.bf16.mxu1 %v9062_v34  ;;  %v9123_v56 = vld [vmem:[%s12250_s1 + $0x1028] ss:$12 sps:$4 sm:$0xff]  }
 0x1e1   :  { %5831 = vmatprep.subr.bf16.mxu0 %v9061_v19  ;;  %v9124_v19 = vld [vmem:[%s12250_s1 + $0xf68] ss:$12 sps:$4 sm:$0xff]  }
 0x1e2   :  { %6414 = vmatmul.mubr.bf16.vlgmr.msra.gmra.mrb[36].mxu1 %v10836_v40  ;;  %v9069_v40 = vld [vmem:[%s12250_s1 + $0xff0] ss:$12 sps:$4 sm:$0xff]  }
 0x1e3   :  { %8141 = vmatpush3.bf16.msra.mxu1 %v9063_v47  ;;  %6453 = vmatprep.mubr.bf16.mxu1 %v10852_v43  ;;  %v9074_v43 = vld [vmem:[%s12250_s1 + $0x1008] ss:$12 sps:$4 sm:$0xff]   ;;  %v9125_v47 = vld [vmem:[%s12250_s1 + $0x10f8] ss:$12 sps:$4 sm:$0xff]  }
 0x1e4   :  { %5832 = vmatpush1.bf16.msra.mxu0 %v9059_v44  ;;  %8142 = vmatprep.subr.bf16.mxu1 %v9067_v58  ;;  %v9127_v34 = vld [vmem:[%s12250_s1 + $0x10fc] ss:$12 sps:$4 sm:$0xff]   ;;  %v9128_v44 = vld [vmem:[%s12250_s1 + $0x1040] ss:$12 sps:$4 sm:$0xff]  }
 0x1e5   :  { %5833 = vmatprep.subr.bf16.mxu0 %v9066_v15  ;;  %v9129_v15 = vld [vmem:[%s12250_s1 + $0xf80] ss:$12 sps:$4 sm:$0xff]  }
 0x1e6   :  { %v9132_v58 = vld [vmem:[%s12250_s1 + $0x1114] ss:$12 sps:$4 sm:$0xff]  }
 0x1e7   :  { %8143 = vmatpush3.bf16.msra.mxu1 %v9068_v49  ;;  %v9130_v49 = vld [vmem:[%s12250_s1 + $0x1110] ss:$12 sps:$4 sm:$0xff]  }
 0x1e8   :  { %5834 = vmatpush1.bf16.msra.mxu0 %v9064_v24  ;;  %8144 = vmatprep.subr.bf16.mxu1 %v9072_v46  ;;  %v9133_v24 = vld [vmem:[%s12250_s1 + $0x1058] ss:$12 sps:$4 sm:$0xff]  }
 0x1e9   :  { %5835 = vmatprep.subr.bf16.mxu0 %v9071_v63  ;;  %v9134_v63 = vld [vmem:[%s12250_s1 + $0xf98] ss:$12 sps:$4 sm:$0xff]  }
 0x1eb   :  { %8145 = vmatpush3.bf16.msra.mxu1 %v9073_v52 }
 0x1ec   :  { %5836 = vmatpush1.bf16.msra.mxu0 %v9069_v40  ;;  %8146 = vmatprep.subr.bf16.mxu1 %v9077_v55  ;;  %v9137_v55 = vld [vmem:[%s12250_s1 + $0x112c] ss:$12 sps:$4 sm:$0xff]  }
 0x1ed   :  { %5837 = vmatprep.subr.bf16.mxu0 %v9076_v54 }
 0x1ef   :  { %8147 = vmatpush3.bf16.msra.mxu1 %v9078_v14 }
 0x1f0   :  { %5838 = vmatpush1.bf16.msra.mxu0 %v9074_v43  ;;  %8148 = vmatprep.subr.bf16.mxu1 %v9082_v60  ;;  %v9138_v43 = vld [vmem:[%s12250_s1 + $0x1070] ss:$12 sps:$4 sm:$0xff]  }
 0x1f1   :  { %5839 = vmatprep.subr.bf16.mxu0 %v9081_v59  ;;  %v9135_v59 = vld [vmem:[%s12250_s1 + $0x1128] ss:$12 sps:$4 sm:$0xff]  }
 0x1f3   :  { %8149 = vmatpush3.bf16.msra.mxu1 %v9083_v27  ;;  %v9142_v27 = vld [vmem:[%s12250_s1 + $0x1144] ss:$12 sps:$4 sm:$0xff]  }
 0x1f4   :  { %5840 = vmatpush1.bf16.msra.mxu0 %v9079_v5  ;;  %8150 = vmatprep.subr.bf16.mxu1 %v9087_v0  ;;  %v9139_v5 = vld [vmem:[%s12250_s1 + $0xfb0] ss:$12 sps:$4 sm:$0xff]   ;;  %v9140_v0 = vld [vmem:[%s12250_s1 + $0x1140] ss:$12 sps:$4 sm:$0xff]  }
 0x1f5   :  { %5841 = vmatprep.subr.bf16.mxu0 %v9086_v61  ;;  %v8002_v35 = vpop.f32.mrb[12].mxu1  ;;  %v9143_v61 = vld [vmem:[%s12250_s1 + $0x1148] ss:$12 sps:$4 sm:$0xff]  }
 0x1f6   :  { %v8003_v9 = vpop.f32.mrb[13].mxu1 }
 0x1f7   :  { %8151 = vmatpush3.bf16.msra.mxu1 %v9088_v2  ;;  %v8004_v10 = vadd.f32 %v8003_v9, %v8002_v35  ;;  %v8005_v41 = vpop.f32.mrb[14].mxu1  ;;  %v9147_v2 = vld [vmem:[%s12250_s1 + $0x115c] ss:$12 sps:$4 sm:$0xff]   ;;  %v9153_v35 = vld [vmem:[%s12250_s1 + $0x1178] ss:$12 sps:$4 sm:$0xff]  }
 0x1f8   :  { %5842 = vmatpush1.bf16.msra.mxu0 %v9084_v1  ;;  %8152 = vmatprep.subr.bf16.mxu1 %v9092_v31  ;;  %v8006_v17 = vpop.f32.mrb[15].mxu1  ;;  %v9144_v1 = vld [vmem:[%s12250_s1 + $0x1088] ss:$12 sps:$4 sm:$0xff]   ;;  %v9145_v31 = vld [vmem:[%s12250_s1 + $0x1158] ss:$12 sps:$4 sm:$0xff]  }
 0x1f9   :  { %5843 = vmatprep.subr.bf16.mxu0 %v9091_v6  ;;  %v11254_v21 = vadd.f32 %v8004_v10, %v11150_v39  ;;  %v9122_v39 = vld [vmem:[%s12250_s1 + $0x10e4] ss:$12 sps:$4 sm:$0xff]   ;;  %v9148_v6 = vld [vmem:[%s12250_s1 + $0x1160] ss:$12 sps:$4 sm:$0xff]  }
 0x1fa   :  { %v9150_v9 = vld [vmem:[%s12250_s1 + $0x1170] ss:$12 sps:$4 sm:$0xff]   ;;  %v9154_v10 = vld [vmem:[%s12250_s1 + $0x10b8] ss:$12 sps:$4 sm:$0xff]  }
 0x1fb   :  { %8153 = vmatpush3.bf16.msra.mxu1 %v9093_v62  ;;  %v9152_v62 = vld [vmem:[%s12250_s1 + $0x1174] ss:$12 sps:$4 sm:$0xff]   ;;  %v9157_v41 = vld [vmem:[%s12250_s1 + $0x118c] ss:$12 sps:$4 sm:$0xff]   ;;  %v9159_v17 = vld [vmem:[%s12250_s1 + $0x10d0] ss:$12 sps:$4 sm:$0xff]  }
 0x1fc   :  { %5844 = vmatpush1.bf16.msra.mxu0 %v9089_v8  ;;  %8154 = vmatprep.subr.bf16.mxu1 %v9097_v13  ;;  %v9149_v8 = vld [vmem:[%s12250_s1 + $0x10a0] ss:$12 sps:$4 sm:$0xff]   ;;  %v9155_v13 = vld [vmem:[%s12250_s1 + $0x1188] ss:$12 sps:$4 sm:$0xff]  }
 0x1fd   :  { %5845 = vmatprep.subr.bf16.mxu0 %v9096_v12  ;;  %v9158_v12 = vld [vmem:[%s12250_s1 + $0x1190] ss:$12 sps:$4 sm:$0xff]  }
 0x1ff   :  { %8155 = vmatpush3.bf16.msra.mxu1 %v9098_v22  ;;  %v9160_v22 = vld [vmem:[%s12250_s1 + $0x11a0] ss:$12 sps:$4 sm:$0xff]  }
 0x200   :  { %5846 = vmatpush1.bf16.msra.mxu0 %v9094_v18  ;;  %8162 = vmatprep.subr.bf16.mxu1 %v9103_v11  ;;  %v9162_v18 = vld [vmem:[%s12250_s1 + $0x11a4] ss:$12 sps:$4 sm:$0xff]   ;;  %v9167_v11 = vld [vmem:[%s12250_s1 + $0x11bc] ss:$12 sps:$4 sm:$0xff]  }
 0x201   :  { %5856 = vmatprep.subr.bf16.mxu0 %v9102_v23  ;;  %v9164_v23 = vld [vmem:[%s12250_s1 + $0x10e8] ss:$12 sps:$4 sm:$0xff]  }
 0x202   :  { %6454 = vmatmul.mubr.bf16.vlgmr.msra.gmra.mrb[40].mxu1 %v11053_v53  ;;  %v9110_v53 = vld [vmem:[%s12250_s1 + $0x10b0] ss:$12 sps:$4 sm:$0xff]  }
 0x203   :  { %5848 = vmatmul.mubr.bf16.vlgmr.msra.gmra.mrb[0].mxu0 %v11270_v3  ;;  %8163 = vmatpush3.bf16.msra.mxu1 %v9104_v26  ;;  %v9165_v26 = vld [vmem:[%s12250_s1 + $0x11b8] ss:$12 sps:$4 sm:$0xff]  }
 0x204   :  { %5857 = vmatpush1.bf16.msra.mxu0 %v9100_v25  ;;  %8164 = vmatprep.subr.bf16.mxu1 %v9108_v28  ;;  %v9168_v25 = vld [vmem:[%s12250_s1 + $0x11c0] ss:$12 sps:$4 sm:$0xff]  }
 0x205   :  { %5858 = vmatprep.subr.bf16.mxu0 %v9107_v50  ;;  %6493 = vmatprep.mubr.bf16.mxu1 %v11065_v57  ;;  %v9115_v57 = vld [vmem:[%s12250_s1 + $0x10c8] ss:$12 sps:$4 sm:$0xff]   ;;  %v9169_v50 = vld [vmem:[%s12250_s1 + $0x1100] ss:$12 sps:$4 sm:$0xff]  }
 0x206   :  { %5888 = vmatprep.mubr.bf16.mxu0 %v11286_v29  ;;  %v9172_v28 = vld [vmem:[%s12250_s1 + $0x11d4] ss:$12 sps:$4 sm:$0xff]  }
 0x207   :  { %8165 = vmatpush3.bf16.msra.mxu1 %v9109_v30  ;;  %v9174_v30 = vld [vmem:[%s12250_s1 + $0x1118] ss:$12 sps:$4 sm:$0xff]  }
 0x208   :  { %5859 = vmatpush1.bf16.msra.mxu0 %v9105_v48  ;;  %8166 = vmatprep.subr.bf16.mxu1 %v9113_v33  ;;  %v9173_v48 = vld [vmem:[%s12250_s1 + $0x11d8] ss:$12 sps:$4 sm:$0xff]  }
 0x209   :  { %5860 = vmatprep.subr.bf16.mxu0 %v9112_v32  ;;  %v11459_v33 = vld [vmem:[%s12249_s0 + $0x18] sm:$0xff] }
 0x20b   :  { %8167 = vmatpush3.bf16.msra.mxu1 %v9114_v36 }
 0x20c   :  { %5861 = vmatpush1.bf16.msra.mxu0 %v9110_v53  ;;  %8168 = vmatprep.subr.bf16.mxu1 %v9118_v37  ;;  %v9177_v37 = vld [vmem:[%s12250_s1 + $0x11ec] ss:$12 sps:$4 sm:$0xff]  }
 0x20d   :  { %5862 = vmatprep.subr.bf16.mxu0 %v9117_v20 }
 0x20f   :  { %8169 = vmatpush3.bf16.msra.mxu1 %v9119_v38 }
 0x210   :  { %5863 = vmatpush1.bf16.msra.mxu0 %v9115_v57  ;;  %8170 = vmatprep.subr.bf16.mxu1 %v9123_v56  ;;  %v9178_v57 = vld [vmem:[%s12250_s1 + $0x11f0] ss:$12 sps:$4 sm:$0xff]  }
 0x211   :  { %5864 = vmatprep.subr.bf16.mxu0 %v9122_v39  ;;  %v9175_v39 = vld [vmem:[%s12250_s1 + $0x11e8] ss:$12 sps:$4 sm:$0xff]  }
 0x213   :  { %8171 = vmatpush3.bf16.msra.mxu1 %v9124_v19  ;;  %v9179_v19 = vld [vmem:[%s12250_s1 + $0x1130] ss:$12 sps:$4 sm:$0xff]  }
 0x214   :  { %5865 = vmatpush1.bf16.msra.mxu0 %v9120_v42  ;;  %8172 = vmatprep.subr.bf16.mxu1 %v9128_v44  ;;  %v11475_v42 = vrot.slane %v11459_v33, %v9686_v51  ;;  %v9183_v44 = vld [vmem:[%s12250_s1 + $0x12c8] ss:$12 sps:$4 sm:$0xff]  }
 0x215   :  { %5866 = vmatprep.subr.bf16.mxu0 %v9127_v34  ;;  %v8024_v46 = vpop.f32.mrb[16].mxu1  ;;  %v9182_v34 = vld [vmem:[%s12250_s1 + $0x1204] ss:$12 sps:$4 sm:$0xff]  }
 0x216   :  { %v8025_v40 = vpop.f32.mrb[17].mxu1 }
 0x217   :  { %8173 = vmatpush3.bf16.msra.mxu1 %v9129_v15  ;;  %v8026_v52 = vadd.f32 %v8025_v40, %v8024_v46  ;;  %v8027_v54 = vpop.f32.mrb[18].mxu1  ;;  %v9184_v15 = vld [vmem:[%s12250_s1 + $0x1208] ss:$12 sps:$4 sm:$0xff]   ;;  %v9185_v46 = vld [vmem:[%s12250_s1 + $0x1218] ss:$12 sps:$4 sm:$0xff]  }
 0x218   :  { %5867 = vmatpush1.bf16.msra.mxu0 %v9125_v47  ;;  %8174 = vmatprep.subr.bf16.mxu1 %v9133_v24  ;;  %v8028_v14 = vpop.f32.mrb[19].mxu1  ;;  %v9180_v47 = vld [vmem:[%s12250_s1 + $0x1200] ss:$12 sps:$4 sm:$0xff]   ;;  %v1225_v24 = vcombine.high %v11270_v3, %v11270_v3  ;;  %v9193_v54 = vld [vmem:[%s12250_s1 + $0x12f8] ss:$12 sps:$4 sm:$0xff]  }
 0x219   :  { %5868 = vmatprep.subr.bf16.mxu0 %v9132_v58  ;;  %v11365_v60 = vadd.f32 %v8026_v52, %v11254_v21  ;;  %v9163_v21 = vld [vmem:[%s12250_s1 + $0x11a8] ss:$12 sps:$4 sm:$0xff]   ;;  %v1243_v58 = vcombine.high %v11475_v42, %v11475_v42  ;;  %v9197_v14 = vld [vmem:[%s12250_s1 + $0x124c] ss:$12 sps:$4 sm:$0xff]  }
 0x21a   :  { %v9192_v52 = vld [vmem:[%s12250_s1 + $0x1234] ss:$12 sps:$4 sm:$0xff]  }
 0x21b   :  { %8175 = vmatpush3.bf16.msra.mxu1 %v9134_v63  ;;  %v9188_v63 = vld [vmem:[%s12250_s1 + $0x12e0] ss:$12 sps:$4 sm:$0xff]   ;;  %v11509_v40 = vrot.slane %v1243_v58, %v9686_v51 }
 0x21c   :  { %5869 = vmatpush1.bf16.msra.mxu0 %v9130_v49  ;;  %8176 = vmatprep.subr.bf16.mxu1 %v9138_v43  ;;  %v9187_v49 = vld [vmem:[%s12250_s1 + $0x121c] ss:$12 sps:$4 sm:$0xff]   ;;  %v9194_v43 = vld [vmem:[%s12250_s1 + $0x1238] ss:$12 sps:$4 sm:$0xff]  }
 0x21d   :  { %5870 = vmatprep.subr.bf16.mxu0 %v9137_v55  ;;  %v9190_v55 = vld [vmem:[%s12250_s1 + $0x1230] ss:$12 sps:$4 sm:$0xff]  }
 0x21f   :  { %8177 = vmatpush3.bf16.msra.mxu1 %v9139_v5  ;;  %v9199_v5 = vld [vmem:[%s12250_s1 + $0x1250] ss:$12 sps:$4 sm:$0xff]  }
 0x220   :  { %5871 = vmatpush1.bf16.msra.mxu0 %v9135_v59  ;;  %8184 = vmatprep.subr.bf16.mxu1 %v9143_v61  ;;  %v9198_v59 = vld [vmem:[%s12250_s1 + $0x1310] ss:$12 sps:$4 sm:$0xff]   ;;  %v9203_v61 = vld [vmem:[%s12250_s1 + $0x1328] ss:$12 sps:$4 sm:$0xff]  }
 0x221   :  { %5872 = vmatprep.subr.bf16.mxu0 %v9142_v27  ;;  %v9202_v27 = vld [vmem:[%s12250_s1 + $0x1264] ss:$12 sps:$4 sm:$0xff]  }
 0x222   :  { %6494 = vmatmul.mubr.bf16.vlgmr.msra.gmra.mrb[44].mxu1 %v11270_v3  ;;  %v9189_v3 = vld [vmem:[%s12250_s1 + $0x1220] ss:$12 sps:$4 sm:$0xff]  }
 0x223   :  { %8185 = vmatpush3.bf16.msra.mxu1 %v9144_v1  ;;  %6533 = vmatprep.mubr.bf16.mxu1 %v11286_v29  ;;  %v9170_v29 = vld [vmem:[%s12250_s1 + $0x11d0] ss:$12 sps:$4 sm:$0xff]   ;;  %v9204_v1 = vld [vmem:[%s12250_s1 + $0x1268] ss:$12 sps:$4 sm:$0xff]  }
 0x224   :  { %5873 = vmatpush1.bf16.msra.mxu0 %v9140_v0  ;;  %8186 = vmatprep.subr.bf16.mxu1 %v9148_v6  ;;  %v9200_v0 = vld [vmem:[%s12250_s1 + $0x1260] ss:$12 sps:$4 sm:$0xff]  }
 0x225   :  { %5874 = vmatprep.subr.bf16.mxu0 %v9147_v2  ;;  %v9207_v2 = vld [vmem:[%s12250_s1 + $0x127c] ss:$12 sps:$4 sm:$0xff]   ;;  %v9208_v6 = vld [vmem:[%s12250_s1 + $0x1340] ss:$12 sps:$4 sm:$0xff]  }
 0x227   :  { %8187 = vmatpush3.bf16.msra.mxu1 %v9149_v8  ;;  %v9209_v8 = vld [vmem:[%s12250_s1 + $0x1280] ss:$12 sps:$4 sm:$0xff]  }
 0x228   :  { %5875 = vmatpush1.bf16.msra.mxu0 %v9145_v31  ;;  %8188 = vmatprep.subr.bf16.mxu1 %v9153_v35  ;;  %v9205_v31 = vld [vmem:[%s12250_s1 + $0x1278] ss:$12 sps:$4 sm:$0xff]  }
 0x229   :  { %5876 = vmatprep.subr.bf16.mxu0 %v9152_v62  ;;  %v9212_v62 = vld [vmem:[%s12250_s1 + $0x1294] ss:$12 sps:$4 sm:$0xff]   ;;  %v9213_v35 = vld [vmem:[%s12250_s1 + $0x1358] ss:$12 sps:$4 sm:$0xff]  }
 0x22b   :  { %8189 = vmatpush3.bf16.msra.mxu1 %v9154_v10 }
 0x22c   :  { %5877 = vmatpush1.bf16.msra.mxu0 %v9150_v9  ;;  %8190 = vmatprep.subr.bf16.mxu1 %v9158_v12 }
 0x22d   :  { %5878 = vmatprep.subr.bf16.mxu0 %v9157_v41 }
 0x22f   :  { %8191 = vmatpush3.bf16.msra.mxu1 %v9159_v17 }
 0x230   :  { %5879 = vmatpush1.bf16.msra.mxu0 %v9155_v13  ;;  %8192 = vmatprep.subr.bf16.mxu1 %v9163_v21 }
 0x231   :  { %5880 = vmatprep.subr.bf16.mxu0 %v9162_v18 }
 0x233   :  { %8193 = vmatpush3.bf16.msra.mxu1 %v9164_v23 }
 0x234   :  { %5881 = vmatpush1.bf16.msra.mxu0 %v9160_v22  ;;  %8194 = vmatprep.subr.bf16.mxu1 %v9168_v25 }
 0x235   :  { %5882 = vmatprep.subr.bf16.mxu0 %v9167_v11  ;;  %v8046_v32 = vpop.f32.mrb[20].mxu1 }
 0x236   :  { %v8047_v53 = vpop.f32.mrb[21].mxu1 }
 0x237   :  { %8195 = vmatpush3.bf16.msra.mxu1 %v9169_v50  ;;  %v8048_v36 = vadd.f32 %v8047_v53, %v8046_v32  ;;  %v8049_v20 = vpop.f32.mrb[22].mxu1 }
 0x238   :  { %5883 = vmatpush1.bf16.msra.mxu0 %v9165_v26  ;;  %8196 = vmatprep.subr.bf16.mxu1 %v9173_v48  ;;  %v8050_v38 = vpop.f32.mrb[23].mxu1 }
 0x239   :  { %5884 = vmatprep.subr.bf16.mxu0 %v9172_v28  ;;  %v11471_v56 = vadd.f32 %v8048_v36, %v11365_v60  ;;  %v9195_v60 = vld [vmem:[%s12250_s1 + $0x1248] ss:$12 sps:$4 sm:$0xff]  }
 0x23b   :  { %8197 = vmatpush3.bf16.msra.mxu1 %v9174_v30 }
 0x23c   :  { %5885 = vmatpush1.bf16.msra.mxu0 %v9170_v29  ;;  %8198 = vmatprep.subr.bf16.mxu1 %v9178_v57 }
 0x23d   :  { %5886 = vmatprep.subr.bf16.mxu0 %v9177_v37 }
 0x23f   :  { %8199 = vmatpush3.bf16.msra.mxu1 %v9179_v19 }
 0x240   :  { %5887 = vmatpush1.bf16.msra.mxu0 %v9175_v39  ;;  %8206 = vmatprep.subr.bf16.mxu1 %v9183_v44 }
 0x241   :  { %5897 = vmatprep.subr.bf16.mxu0 %v9182_v34 }
 0x242   :  { %6534 = vmatmul.mubr.bf16.vlgmr.msra.gmra.mrb[48].mxu1 %v1225_v24 }
 0x243   :  { %5889 = vmatmul.mubr.bf16.vlgmr.msra.gmra.mrb[0].mxu0 %v1225_v24  ;;  %8207 = vmatpush3.bf16.msra.mxu1 %v9184_v15 }
 0x244   :  { %5898 = vmatpush1.bf16.msra.mxu0 %v9180_v47  ;;  %8208 = vmatprep.subr.bf16.mxu1 %v9188_v63 }
 0x245   :  { %5899 = vmatprep.subr.bf16.mxu0 %v9187_v49  ;;  %6573 = vmatprep.mubr.bf16.mxu1 %v11509_v40 }
 0x246   :  { %5929 = vmatprep.mubr.bf16.mxu0 %v11509_v40 }
 0x247   :  { %8209 = vmatpush3.bf16.msra.mxu1 %v9189_v3 }
 0x248   :  { %5900 = vmatpush1.bf16.msra.mxu0 %v9185_v46  ;;  %8210 = vmatprep.subr.bf16.mxu1 %v9193_v54 }
 0x249   :  { %5901 = vmatprep.subr.bf16.mxu0 %v9192_v52 }
 0x24b   :  { %8211 = vmatpush3.bf16.msra.mxu1 %v9194_v43 }
 0x24c   :  { %5902 = vmatpush1.bf16.msra.mxu0 %v9190_v55  ;;  %8212 = vmatprep.subr.bf16.mxu1 %v9198_v59 }
 0x24d   :  { %5903 = vmatprep.subr.bf16.mxu0 %v9197_v14 }
 0x24f   :  { %8213 = vmatpush3.bf16.msra.mxu1 %v9199_v5 }
 0x250   :  { %5904 = vmatpush1.bf16.msra.mxu0 %v9195_v60  ;;  %8214 = vmatprep.subr.bf16.mxu1 %v9203_v61 }
 0x251   :  { %5905 = vmatprep.subr.bf16.mxu0 %v9202_v27 }
 0x253   :  { %8215 = vmatpush3.bf16.msra.mxu1 %v9204_v1 }
 0x254   :  { %5906 = vmatpush1.bf16.msra.mxu0 %v9200_v0  ;;  %8216 = vmatprep.subr.bf16.mxu1 %v9208_v6 }
 0x255   :  { %5907 = vmatprep.subr.bf16.mxu0 %v9207_v2 }
 0x256   :  { %16 = vsyncpa [#allocation3], 0  ;;  %v8068_v9 = vpop.f32.mrb[24].mxu1  ;;  %v9210_v41 = vld [vmem:[%s12250_s1 + $0x1290] ss:$12 sps:$4 sm:$0xff]   ;;  %v11596_v28 = vrot.slane %v11475_v42, %v9686_v51  ;;  %v11612_v53 = vcombine.high %v11509_v40, %v11509_v40  ;;  %v1228_v54 = vcombine.high %v11459_v33, %v11459_v33  ;;  %vm9488_vm0 = vmmov 0  }
 0x257   :  { %v8069_v10 = vpop.f32.mrb[25].mxu1  ;;  %8217 = vmatpush3.bf16.msra.mxu1 %v9209_v8  ;;  %v9214_v12 = vld [vmem:[%s12250_s1 + $0x1298] ss:$12 sps:$4 sm:$0xff]   ;;  %v9218_v21 = vld [vmem:[%s12250_s1 + $0x1370] ss:$12 sps:$4 sm:$0xff]   ;;  %s9489_s12 = smov [#allocation2]  }
 0x258   :  { %5908 = vmatpush1.bf16.msra.mxu0 %v9205_v31  ;;  %v8070_v13 = vadd.f32 %v8069_v10, %v8068_v9  ;;  %v8071_v17 = vpop.f32.mrb[26].mxu1  ;;  %8218 = vmatprep.subr.bf16.mxu1 %v9213_v35  ;;  %v9217_v18 = vld [vmem:[%s12250_s1 + $0x12ac] ss:$12 sps:$4 sm:$0xff]   ;;  %v9215_v11 = vld [vmem:[%s12250_s1 + $0x12a8] ss:$12 sps:$4 sm:$0xff]   ;;  %v11694_v0 = vrot.slane %v1228_v54, %v9686_v51  ;;  %s7129_s0 = sshll.u32 %s9489_s12, 4  ;;  %s7130_s0 = int_to_ptr.vmem [resolvable:$true] %s7129_s0 }
 0x259   :  { %5909 = vmatprep.subr.bf16.mxu0 %v9212_v62  ;;  %v8072_v22 = vpop.f32.mrb[27].mxu1  ;;  %v9219_v25 = vld [vmem:[%s12250_s1 + $0x12b0] ss:$12 sps:$4 sm:$0xff]   ;;  %v9223_v50 = vld [vmem:[%s12250_s1 + $0x1448] ss:$12 sps:$4 sm:$0xff]   ;;  %v11712_v62 = vcombine.high %v11596_v28, %v11596_v28  ;;  %p9467_p1 = scmp.lt.s32.totalorder %s7130_s0, %s7130_s0 }
 0x25a   :  { %v11580_v23 = vadd.f32 %v8070_v13, %v11471_v56  ;;  %v9222_v26 = vld [vmem:[%s12250_s1 + $0x12c4] ss:$12 sps:$4 sm:$0xff]   ;;  %v9220_v48 = vld [vmem:[%s12250_s1 + $0x12c0] ss:$12 sps:$4 sm:$0xff]   ;;  %v9224_v29 = vld [vmem:[%s12250_s1 + $0x1388] ss:$12 sps:$4 sm:$0xff]   ;;  %v1244_v8 = vcombine.high %v11694_v0, %v11694_v0 }
 0x25b   :  { %8219 = vmatpush3.bf16.msra.mxu1 %v9214_v12  ;;  %v9227_v30 = vld [vmem:[%s12250_s1 + $0x12dc] ss:$12 sps:$4 sm:$0xff]   ;;  %v9228_v32 = vld [vmem:[%s12250_s1 + $0x1460] ss:$12 sps:$4 sm:$0xff]   ;;  %v9225_v36 = vld [vmem:[%s12250_s1 + $0x12d8] ss:$12 sps:$4 sm:$0xff]  }
 0x25c   :  { %5910 = vmatpush1.bf16.msra.mxu0 %v9210_v41  ;;  %8220 = vmatprep.subr.bf16.mxu1 %v9218_v21  ;;  %v9229_v20 = vld [vmem:[%s12250_s1 + $0x13a0] ss:$12 sps:$4 sm:$0xff]   ;;  %v9233_v57 = vld [vmem:[%s12250_s1 + $0x1478] ss:$12 sps:$4 sm:$0xff]   ;;  %v9230_v38 = vld [vmem:[%s12250_s1 + $0x12f0] ss:$12 sps:$4 sm:$0xff]   ;;  %v11727_v12 = vrot.slane %v1244_v8, %v9686_v51 }
 0x25d   :  { %5911 = vmatprep.subr.bf16.mxu0 %v9217_v18  ;;  %v9232_v37 = vld [vmem:[%s12250_s1 + $0x12f4] ss:$12 sps:$4 sm:$0xff]   ;;  %v9234_v39 = vld [vmem:[%s12250_s1 + $0x13b8] ss:$12 sps:$4 sm:$0xff]   ;;  %v9238_v42 = vld [vmem:[%s12250_s1 + $0x1490] ss:$12 sps:$4 sm:$0xff]  }
 0x25e   :  { %v9237_v56 = vld [vmem:[%s12250_s1 + $0x130c] ss:$12 sps:$4 sm:$0xff]   ;;  %v9235_v19 = vld [vmem:[%s12250_s1 + $0x1308] ss:$12 sps:$4 sm:$0xff]   ;;  %v9239_v34 = vld [vmem:[%s12250_s1 + $0x13d0] ss:$12 sps:$4 sm:$0xff]  }
 0x25f   :  { %8221 = vmatpush3.bf16.msra.mxu1 %v9219_v25  ;;  %v9242_v44 = vld [vmem:[%s12250_s1 + $0x1324] ss:$12 sps:$4 sm:$0xff]   ;;  %v9243_v47 = vld [vmem:[%s12250_s1 + $0x14a8] ss:$12 sps:$4 sm:$0xff]   ;;  %v9240_v15 = vld [vmem:[%s12250_s1 + $0x1320] ss:$12 sps:$4 sm:$0xff]  }
 0x260   :  { %5912 = vmatpush1.bf16.msra.mxu0 %v9215_v11  ;;  %8228 = vmatprep.subr.bf16.mxu1 %v9223_v50  ;;  %v9244_v58 = vld [vmem:[%s12250_s1 + $0x13e8] ss:$12 sps:$4 sm:$0xff]   ;;  %v9248_v49 = vld [vmem:[%s12250_s1 + $0x14c0] ss:$12 sps:$4 sm:$0xff]   ;;  %v9245_v63 = vld [vmem:[%s12250_s1 + $0x1338] ss:$12 sps:$4 sm:$0xff]  }
 0x261   :  { %5913 = vmatprep.subr.bf16.mxu0 %v9222_v26  ;;  %v9247_v24 = vld [vmem:[%s12250_s1 + $0x133c] ss:$12 sps:$4 sm:$0xff]   ;;  %v9249_v46 = vld [vmem:[%s12250_s1 + $0x1400] ss:$12 sps:$4 sm:$0xff]   ;;  %v9253_v40 = vld [vmem:[%s12250_s1 + $0x14d8] ss:$12 sps:$4 sm:$0xff]  }
 0x262   :  { %6574 = vmatmul.mubr.bf16.vlgmr.msra.gmra.mrb[52].mxu1 %v11596_v28  ;;  %v9252_v3 = vld [vmem:[%s12250_s1 + $0x1354] ss:$12 sps:$4 sm:$0xff]   ;;  %v9250_v14 = vld [vmem:[%s12250_s1 + $0x1350] ss:$12 sps:$4 sm:$0xff]   ;;  %v9254_v59 = vld [vmem:[%s12250_s1 + $0x1418] ss:$12 sps:$4 sm:$0xff]  }
 0x263   :  { %8229 = vmatpush3.bf16.msra.mxu1 %v9224_v29  ;;  %6613 = vmatprep.mubr.bf16.mxu1 %v11612_v53  ;;  %v9257_v5 = vld [vmem:[%s12250_s1 + $0x136c] ss:$12 sps:$4 sm:$0xff]   ;;  %v9258_v33 = vld [vmem:[%s12250_s1 + $0x14f0] ss:$12 sps:$4 sm:$0xff]   ;;  %v9255_v1 = vld [vmem:[%s12250_s1 + $0x1368] ss:$12 sps:$4 sm:$0xff]  }
 0x264   :  { %5914 = vmatpush1.bf16.msra.mxu0 %v9220_v48  ;;  %8230 = vmatprep.subr.bf16.mxu1 %v9228_v32  ;;  %v9259_v2 = vld [vmem:[%s12250_s1 + $0x1430] ss:$12 sps:$4 sm:$0xff]   ;;  %v9263_v31 = vld [vmem:[%s12250_s1 + $0x15c8] ss:$12 sps:$4 sm:$0xff]   ;;  %v9260_v35 = vld [vmem:[%s12250_s1 + $0x1380] ss:$12 sps:$4 sm:$0xff]  }
 0x265   :  { %5915 = vmatprep.subr.bf16.mxu0 %v9227_v30  ;;  %v9262_v6 = vld [vmem:[%s12250_s1 + $0x1384] ss:$12 sps:$4 sm:$0xff]   ;;  %v9264_v9 = vld [vmem:[%s12250_s1 + $0x1508] ss:$12 sps:$4 sm:$0xff]   ;;  %v9268_v41 = vld [vmem:[%s12250_s1 + $0x15e0] ss:$12 sps:$4 sm:$0xff]  }
 0x266   :  { %v9267_v10 = vld [vmem:[%s12250_s1 + $0x139c] ss:$12 sps:$4 sm:$0xff]   ;;  %v9265_v13 = vld [vmem:[%s12250_s1 + $0x1398] ss:$12 sps:$4 sm:$0xff]   ;;  %v9269_v17 = vld [vmem:[%s12250_s1 + $0x1520] ss:$12 sps:$4 sm:$0xff]  }
 0x267   :  { %8231 = vmatpush3.bf16.msra.mxu1 %v9229_v20  ;;  %v9272_v18 = vld [vmem:[%s12250_s1 + $0x13b4] ss:$12 sps:$4 sm:$0xff]   ;;  %v9273_v21 = vld [vmem:[%s12250_s1 + $0x15f8] ss:$12 sps:$4 sm:$0xff]   ;;  %v9270_v22 = vld [vmem:[%s12250_s1 + $0x13b0] ss:$12 sps:$4 sm:$0xff]  }
 0x268   :  { %5916 = vmatpush1.bf16.msra.mxu0 %v9225_v36  ;;  %8232 = vmatprep.subr.bf16.mxu1 %v9233_v57  ;;  %v9277_v11 = vld [vmem:[%s12250_s1 + $0x13cc] ss:$12 sps:$4 sm:$0xff]   ;;  %v9278_v25 = vld [vmem:[%s12250_s1 + $0x1610] ss:$12 sps:$4 sm:$0xff]   ;;  %v9275_v26 = vld [vmem:[%s12250_s1 + $0x13c8] ss:$12 sps:$4 sm:$0xff]  }
 0x269   :  { %5917 = vmatprep.subr.bf16.mxu0 %v9232_v37  ;;  %v9279_v50 = vld [vmem:[%s12250_s1 + $0x1550] ss:$12 sps:$4 sm:$0xff]   ;;  %v9283_v48 = vld [vmem:[%s12250_s1 + $0x1628] ss:$12 sps:$4 sm:$0xff]   ;;  %v9280_v29 = vld [vmem:[%s12250_s1 + $0x13e0] ss:$12 sps:$4 sm:$0xff]  }
 0x26a   :  { %v9284_v30 = vld [vmem:[%s12250_s1 + $0x1568] ss:$12 sps:$4 sm:$0xff]   ;;  %v9285_v36 = vld [vmem:[%s12250_s1 + $0x13f8] ss:$12 sps:$4 sm:$0xff]   ;;  %v9289_v20 = vld [vmem:[%s12250_s1 + $0x1580] ss:$12 sps:$4 sm:$0xff]  }
 0x26b   :  { %8233 = vmatpush3.bf16.msra.mxu1 %v9234_v39  ;;  %v9287_v32 = vld [vmem:[%s12250_s1 + $0x13fc] ss:$12 sps:$4 sm:$0xff]   ;;  %v9292_v37 = vld [vmem:[%s12250_s1 + $0x1414] ss:$12 sps:$4 sm:$0xff]   ;;  %v9293_v57 = vld [vmem:[%s12250_s1 + $0x1658] ss:$12 sps:$4 sm:$0xff]  }
 0x26c   :  { %5918 = vmatpush1.bf16.msra.mxu0 %v9230_v38  ;;  %8234 = vmatprep.subr.bf16.mxu1 %v9238_v42  ;;  %v9290_v42 = vld [vmem:[%s12250_s1 + $0x1410] ss:$12 sps:$4 sm:$0xff]   ;;  %v9321_v8 = vld [vmem:[%s12250_s1 + $0x14a0] ss:$12 sps:$4 sm:$0xff]  }
 0x26d   :  { %5919 = vmatprep.subr.bf16.mxu0 %v9237_v56  ;;  %v9308_v54 = vld [vmem:[%s12250_s1 + $0x145c] ss:$12 sps:$4 sm:$0xff]  }
 0x26f   :  { %8235 = vmatpush3.bf16.msra.mxu1 %v9239_v34 }
 0x270   :  { %5920 = vmatpush1.bf16.msra.mxu0 %v9235_v19  ;;  %8236 = vmatprep.subr.bf16.mxu1 %v9243_v47  ;;  %v9294_v19 = vld [vmem:[%s12250_s1 + $0x1598] ss:$12 sps:$4 sm:$0xff]   ;;  %v9298_v47 = vld [vmem:[%s12250_s1 + $0x1670] ss:$12 sps:$4 sm:$0xff]  }
 0x271   :  { %5921 = vmatprep.subr.bf16.mxu0 %v9242_v44  ;;  %v9297_v44 = vld [vmem:[%s12250_s1 + $0x142c] ss:$12 sps:$4 sm:$0xff]  }
 0x273   :  { %8237 = vmatpush3.bf16.msra.mxu1 %v9244_v58 }
 0x274   :  { %5922 = vmatpush1.bf16.msra.mxu0 %v9240_v15  ;;  %8238 = vmatprep.subr.bf16.mxu1 %v9248_v49  ;;  %v9299_v49 = vld [vmem:[%s12250_s1 + $0x15b0] ss:$12 sps:$4 sm:$0xff]  }
 0x275   :  { %5923 = vmatprep.subr.bf16.mxu0 %v9247_v24  ;;  %v8090_v52 = vpop.f32.mrb[28].mxu1  ;;  %v9295_v24 = vld [vmem:[%s12250_s1 + $0x1428] ss:$12 sps:$4 sm:$0xff]  }
 0x276   :  { %v8091_v55 = vpop.f32.mrb[29].mxu1 }
 0x277   :  { %v8092_v43 = vadd.f32 %v8091_v55, %v8090_v52  ;;  %8239 = vmatpush3.bf16.msra.mxu1 %v9249_v46  ;;  %v8093_v60 = vpop.f32.mrb[30].mxu1  ;;  %v9304_v46 = vld [vmem:[%s12250_s1 + $0x1748] ss:$12 sps:$4 sm:$0xff]   ;;  %v9309_v55 = vld [vmem:[%s12250_s1 + $0x1760] ss:$12 sps:$4 sm:$0xff]  }
 0x278   :  { %5924 = vmatpush1.bf16.msra.mxu0 %v9245_v63  ;;  %8240 = vmatprep.subr.bf16.mxu1 %v9253_v40  ;;  %v8094_v27 = vpop.f32.mrb[31].mxu1  ;;  %v9303_v63 = vld [vmem:[%s12250_s1 + $0x1444] ss:$12 sps:$4 sm:$0xff]   ;;  %v9301_v40 = vld [vmem:[%s12250_s1 + $0x1440] ss:$12 sps:$4 sm:$0xff]  }
 0x279   :  { %5925 = vmatprep.subr.bf16.mxu0 %v9252_v3  ;;  %v11691_v61 = vadd.f32 %v8092_v43, %v11580_v23  ;;  %v9274_v23 = vld [vmem:[%s12250_s1 + $0x1538] ss:$12 sps:$4 sm:$0xff]   ;;  %v11822_v3 = vrot.slane %v11694_v0, %v9686_v51  ;;  %v9305_v52 = vld [vmem:[%s12250_s1 + $0x1688] ss:$12 sps:$4 sm:$0xff]   ;;  %v11838_v43 = vcombine.high %v11727_v12, %v11727_v12  ;;  %v9319_v0 = vld [vmem:[%s12250_s1 + $0x1790] ss:$12 sps:$4 sm:$0xff]  }
 0x27a   :  { %v9313_v60 = vld [vmem:[%s12250_s1 + $0x1474] ss:$12 sps:$4 sm:$0xff]   ;;  %v9315_v27 = vld [vmem:[%s12250_s1 + $0x16b8] ss:$12 sps:$4 sm:$0xff]  }
 0x27b   :  { %8241 = vmatpush3.bf16.msra.mxu1 %v9254_v59  ;;  %v9310_v59 = vld [vmem:[%s12250_s1 + $0x16a0] ss:$12 sps:$4 sm:$0xff]  }
 0x27c   :  { %5926 = vmatpush1.bf16.msra.mxu0 %v9250_v14  ;;  %8242 = vmatprep.subr.bf16.mxu1 %v9258_v33  ;;  %v9306_v14 = vld [vmem:[%s12250_s1 + $0x1458] ss:$12 sps:$4 sm:$0xff]   ;;  %v9311_v33 = vld [vmem:[%s12250_s1 + $0x1470] ss:$12 sps:$4 sm:$0xff]  }
 0x27d   :  { %5927 = vmatprep.subr.bf16.mxu0 %v9257_v5  ;;  %v9314_v5 = vld [vmem:[%s12250_s1 + $0x1778] ss:$12 sps:$4 sm:$0xff]  }
 0x27f   :  { %8243 = vmatpush3.bf16.msra.mxu1 %v9259_v2  ;;  %v9320_v2 = vld [vmem:[%s12250_s1 + $0x16d0] ss:$12 sps:$4 sm:$0xff]  }
 0x280   :  { %5928 = vmatpush1.bf16.msra.mxu0 %v9255_v1  ;;  %8250 = vmatprep.subr.bf16.mxu1 %v9263_v31  ;;  %v9316_v1 = vld [vmem:[%s12250_s1 + $0x1488] ss:$12 sps:$4 sm:$0xff]  }
 0x281   :  { %5938 = vmatprep.subr.bf16.mxu0 %v9262_v6  ;;  %v9323_v6 = vld [vmem:[%s12250_s1 + $0x14a4] ss:$12 sps:$4 sm:$0xff]   ;;  %v9324_v31 = vld [vmem:[%s12250_s1 + $0x17a8] ss:$12 sps:$4 sm:$0xff]  }
 0x282   :  { %6614 = vmatmul.mubr.bf16.vlgmr.msra.gmra.mrb[56].mxu1 %v11712_v62 }
 0x283   :  { %5930 = vmatmul.mubr.bf16.vlgmr.msra.gmra.mrb[0].mxu0 %v11596_v28  ;;  %8251 = vmatpush3.bf16.msra.mxu1 %v9264_v9  ;;  %v9282_v28 = vld [vmem:[%s12250_s1 + $0x13e4] ss:$12 sps:$4 sm:$0xff]   ;;  %v9328_v9 = vld [vmem:[%s12250_s1 + $0x14bc] ss:$12 sps:$4 sm:$0xff]  }
 0x284   :  { %5939 = vmatpush1.bf16.msra.mxu0 %v9260_v35  ;;  %8252 = vmatprep.subr.bf16.mxu1 %v9268_v41  ;;  %v9325_v35 = vld [vmem:[%s12250_s1 + $0x16e8] ss:$12 sps:$4 sm:$0xff]   ;;  %v9326_v41 = vld [vmem:[%s12250_s1 + $0x14b8] ss:$12 sps:$4 sm:$0xff]  }
 0x285   :  { %5940 = vmatprep.subr.bf16.mxu0 %v9267_v10  ;;  %6653 = vmatprep.mubr.bf16.mxu1 %v11727_v12  ;;  %v9329_v10 = vld [vmem:[%s12250_s1 + $0x17c0] ss:$12 sps:$4 sm:$0xff]  }
 0x286   :  { %5970 = vmatprep.mubr.bf16.mxu0 %v11612_v53  ;;  %v9288_v53 = vld [vmem:[%s12250_s1 + $0x1640] ss:$12 sps:$4 sm:$0xff]  }
 0x287   :  { %8253 = vmatpush3.bf16.msra.mxu1 %v9269_v17  ;;  %v9333_v17 = vld [vmem:[%s12250_s1 + $0x14d4] ss:$12 sps:$4 sm:$0xff]  }
 0x288   :  { %5941 = vmatpush1.bf16.msra.mxu0 %v9265_v13  ;;  %8254 = vmatprep.subr.bf16.mxu1 %v9273_v21  ;;  %v9330_v13 = vld [vmem:[%s12250_s1 + $0x1700] ss:$12 sps:$4 sm:$0xff]  }
 0x289   :  { %5942 = vmatprep.subr.bf16.mxu0 %v9272_v18  ;;  %v9334_v18 = vld [vmem:[%s12250_s1 + $0x17d8] ss:$12 sps:$4 sm:$0xff]  }
 0x28b   :  { %8255 = vmatpush3.bf16.msra.mxu1 %v9274_v23 }
 0x28c   :  { %5943 = vmatpush1.bf16.msra.mxu0 %v9270_v22  ;;  %8256 = vmatprep.subr.bf16.mxu1 %v9278_v25  ;;  %v9335_v25 = vld [vmem:[%s12250_s1 + $0x1718] ss:$12 sps:$4 sm:$0xff]  }
 0x28d   :  { %5944 = vmatprep.subr.bf16.mxu0 %v9277_v11  ;;  %v9331_v11 = vld [vmem:[%s12250_s1 + $0x14d0] ss:$12 sps:$4 sm:$0xff]  }
 0x28f   :  { %8257 = vmatpush3.bf16.msra.mxu1 %v9279_v50  ;;  %v9338_v50 = vld [vmem:[%s12250_s1 + $0x14ec] ss:$12 sps:$4 sm:$0xff]  }
 0x290   :  { %5945 = vmatpush1.bf16.msra.mxu0 %v9275_v26  ;;  %8258 = vmatprep.subr.bf16.mxu1 %v9283_v48 }
 0x291   :  { %5946 = vmatprep.subr.bf16.mxu0 %v9282_v28  ;;  %v9339_v28 = vld [vmem:[%s12250_s1 + $0x17f0] ss:$12 sps:$4 sm:$0xff]  }
 0x293   :  { %8259 = vmatpush3.bf16.msra.mxu1 %v9284_v30  ;;  %v9336_v30 = vld [vmem:[%s12250_s1 + $0x14e8] ss:$12 sps:$4 sm:$0xff]  }
 0x294   :  { %5947 = vmatpush1.bf16.msra.mxu0 %v9280_v29  ;;  %8260 = vmatprep.subr.bf16.mxu1 %v9288_v53  ;;  %v9343_v53 = vld [vmem:[%s12250_s1 + $0x1504] ss:$12 sps:$4 sm:$0xff]  }
 0x295   :  { %5948 = vmatprep.subr.bf16.mxu0 %v9287_v32  ;;  %v8112_v38 = vpop.f32.mrb[32].mxu1  ;;  %v9340_v32 = vld [vmem:[%s12250_s1 + $0x1730] ss:$12 sps:$4 sm:$0xff]  }
 0x296   :  { %v8113_v39 = vpop.f32.mrb[33].mxu1 }
 0x297   :  { %v8114_v56 = vadd.f32 %v8113_v39, %v8112_v38  ;;  %8261 = vmatpush3.bf16.msra.mxu1 %v9289_v20  ;;  %v8115_v34 = vpop.f32.mrb[34].mxu1  ;;  %v9341_v20 = vld [vmem:[%s12250_s1 + $0x1500] ss:$12 sps:$4 sm:$0xff]   ;;  %v9347_v39 = vld [vmem:[%s12250_s1 + $0x1530] ss:$12 sps:$4 sm:$0xff]  }
 0x298   :  { %5949 = vmatpush1.bf16.msra.mxu0 %v9285_v36  ;;  %8262 = vmatprep.subr.bf16.mxu1 %v9293_v57  ;;  %v8116_v15 = vpop.f32.mrb[35].mxu1  ;;  %v11926_v36 = vcombine.high %v11822_v3, %v11822_v3  ;;  %v9344_v57 = vld [vmem:[%s12250_s1 + $0x1518] ss:$12 sps:$4 sm:$0xff]   ;;  %v9349_v38 = vld [vmem:[%s12250_s1 + $0x1534] ss:$12 sps:$4 sm:$0xff]  }
 0x299   :  { %5950 = vmatprep.subr.bf16.mxu0 %v9292_v37  ;;  %v11806_v58 = vadd.f32 %v8114_v56, %v11691_v61  ;;  %v9318_v61 = vld [vmem:[%s12250_s1 + $0x148c] ss:$12 sps:$4 sm:$0xff]   ;;  %v9346_v37 = vld [vmem:[%s12250_s1 + $0x151c] ss:$12 sps:$4 sm:$0xff]   ;;  %v9355_v56 = vld [vmem:[%s12250_s1 + $0x1564] ss:$12 sps:$4 sm:$0xff]  }
 0x29a   :  { %v9356_v34 = vld [vmem:[%s12250_s1 + $0x1578] ss:$12 sps:$4 sm:$0xff]  }
 0x29b   :  { %8263 = vmatpush3.bf16.msra.mxu1 %v9294_v19  ;;  %v9358_v19 = vld [vmem:[%s12250_s1 + $0x157c] ss:$12 sps:$4 sm:$0xff]  }
 0x29c   :  { %5951 = vmatpush1.bf16.msra.mxu0 %v9290_v42  ;;  %8264 = vmatprep.subr.bf16.mxu1 %v9298_v47  ;;  %v9353_v42 = vld [vmem:[%s12250_s1 + $0x1560] ss:$12 sps:$4 sm:$0xff]  }
 0x29d   :  { %5952 = vmatprep.subr.bf16.mxu0 %v9297_v44  ;;  %v9361_v44 = vld [vmem:[%s12250_s1 + $0x1594] ss:$12 sps:$4 sm:$0xff]  }
 0x29f   :  { %8265 = vmatpush3.bf16.msra.mxu1 %v9299_v49 }
 0x2a0   :  { %5953 = vmatpush1.bf16.msra.mxu0 %v9295_v24  ;;  %8272 = vmatprep.subr.bf16.mxu1 %v9304_v46  ;;  %v9359_v24 = vld [vmem:[%s12250_s1 + $0x1590] ss:$12 sps:$4 sm:$0xff]  }
 0x2a1   :  { %5954 = vmatprep.subr.bf16.mxu0 %v9303_v63  ;;  %v9364_v63 = vld [vmem:[%s12250_s1 + $0x15ac] ss:$12 sps:$4 sm:$0xff]  }
 0x2a2   :  { %6654 = vmatmul.mubr.bf16.vlgmr.msra.gmra.mrb[60].mxu1 %v11822_v3 }
 0x2a3   :  { %8273 = vmatpush3.bf16.msra.mxu1 %v9305_v52  ;;  %6693 = vmatprep.mubr.bf16.mxu1 %v11838_v43  ;;  %v9362_v52 = vld [vmem:[%s12250_s1 + $0x15a8] ss:$12 sps:$4 sm:$0xff]  }
 0x2a4   :  { %5955 = vmatpush1.bf16.msra.mxu0 %v9301_v40  ;;  %8274 = vmatprep.subr.bf16.mxu1 %v9309_v55  ;;  %v9365_v55 = vld [vmem:[%s12250_s1 + $0x15c0] ss:$12 sps:$4 sm:$0xff]  }
 0x2a5   :  { %5956 = vmatprep.subr.bf16.mxu0 %v9308_v54  ;;  %v9367_v54 = vld [vmem:[%s12250_s1 + $0x15c4] ss:$12 sps:$4 sm:$0xff]  }
 0x2a7   :  { %8275 = vmatpush3.bf16.msra.mxu1 %v9310_v59  ;;  %v9368_v59 = vld [vmem:[%s12250_s1 + $0x15d8] ss:$12 sps:$4 sm:$0xff]  }
 0x2a8   :  { %5957 = vmatpush1.bf16.msra.mxu0 %v9306_v14  ;;  %8276 = vmatprep.subr.bf16.mxu1 %v9314_v5  ;;  %v9370_v14 = vld [vmem:[%s12250_s1 + $0x15dc] ss:$12 sps:$4 sm:$0xff]  }
 0x2a9   :  { %5958 = vmatprep.subr.bf16.mxu0 %v9313_v60  ;;  %v9373_v60 = vld [vmem:[%s12250_s1 + $0x15f4] ss:$12 sps:$4 sm:$0xff]   ;;  %v9371_v5 = vld [vmem:[%s12250_s1 + $0x15f0] ss:$12 sps:$4 sm:$0xff]  }
 0x2ab   :  { %8277 = vmatpush3.bf16.msra.mxu1 %v9315_v27  ;;  %v9374_v27 = vld [vmem:[%s12250_s1 + $0x1608] ss:$12 sps:$4 sm:$0xff]  }
 0x2ac   :  { %5959 = vmatpush1.bf16.msra.mxu0 %v9311_v33  ;;  %8278 = vmatprep.subr.bf16.mxu1 %v9319_v0  ;;  %v9376_v33 = vld [vmem:[%s12250_s1 + $0x160c] ss:$12 sps:$4 sm:$0xff]  }
 0x2ad   :  { %5960 = vmatprep.subr.bf16.mxu0 %v9318_v61  ;;  %v9379_v61 = vld [vmem:[%s12250_s1 + $0x1624] ss:$12 sps:$4 sm:$0xff]   ;;  %v9377_v0 = vld [vmem:[%s12250_s1 + $0x1620] ss:$12 sps:$4 sm:$0xff]  }
 0x2af   :  { %8279 = vmatpush3.bf16.msra.mxu1 %v9320_v2  ;;  %v9380_v2 = vld [vmem:[%s12250_s1 + $0x1638] ss:$12 sps:$4 sm:$0xff]  }
 0x2b0   :  { %5961 = vmatpush1.bf16.msra.mxu0 %v9316_v1  ;;  %8280 = vmatprep.subr.bf16.mxu1 %v9324_v31  ;;  %v9382_v1 = vld [vmem:[%s12250_s1 + $0x163c] ss:$12 sps:$4 sm:$0xff]  }
 0x2b1   :  { %5962 = vmatprep.subr.bf16.mxu0 %v9323_v6  ;;  %v9385_v6 = vld [vmem:[%s12250_s1 + $0x1654] ss:$12 sps:$4 sm:$0xff]  }
 0x2b3   :  { %8281 = vmatpush3.bf16.msra.mxu1 %v9325_v35 }
 0x2b4   :  { %5963 = vmatpush1.bf16.msra.mxu0 %v9321_v8  ;;  %8282 = vmatprep.subr.bf16.mxu1 %v9329_v10 }
 0x2b5   :  { %5964 = vmatprep.subr.bf16.mxu0 %v9328_v9  ;;  %v8134_v21 = vpop.f32.mrb[36].mxu1  ;;  %v9383_v9 = vld [vmem:[%s12250_s1 + $0x1650] ss:$12 sps:$4 sm:$0xff]  }
 0x2b6   :  { %v8135_v22 = vpop.f32.mrb[37].mxu1 }
 0x2b7   :  { %v8136_v23 = vadd.f32 %v8135_v22, %v8134_v21  ;;  %8283 = vmatpush3.bf16.msra.mxu1 %v9330_v13  ;;  %v8137_v26 = vpop.f32.mrb[38].mxu1  ;;  %v9391_v21 = vld [vmem:[%s12250_s1 + $0x1684] ss:$12 sps:$4 sm:$0xff]   ;;  %v9389_v22 = vld [vmem:[%s12250_s1 + $0x1680] ss:$12 sps:$4 sm:$0xff]  }
 0x2b8   :  { %5965 = vmatpush1.bf16.msra.mxu0 %v9326_v41  ;;  %8284 = vmatprep.subr.bf16.mxu1 %v9334_v18  ;;  %v8138_v48 = vpop.f32.mrb[39].mxu1  ;;  %v9388_v41 = vld [vmem:[%s12250_s1 + $0x166c] ss:$12 sps:$4 sm:$0xff]   ;;  %v9386_v18 = vld [vmem:[%s12250_s1 + $0x1668] ss:$12 sps:$4 sm:$0xff]  }
 0x2b9   :  { %5966 = vmatprep.subr.bf16.mxu0 %v9333_v17  ;;  %v6416_v29 = vadd.f32 %v8136_v23, %v11806_v58  ;;  %v9394_v23 = vld [vmem:[%s12250_s1 + $0x169c] ss:$12 sps:$4 sm:$0xff]  }
 0x2ba   :  { %v9395_v26 = vld [vmem:[%s12250_s1 + $0x16b0] ss:$12 sps:$4 sm:$0xff]  }
 0x2bb   :  { %8285 = vmatpush3.bf16.msra.mxu1 %v9335_v25  ;;  %v9397_v25 = vld [vmem:[%s12250_s1 + $0x16b4] ss:$12 sps:$4 sm:$0xff]   ;;  %v9406_v48 = vld [vmem:[%s12250_s1 + $0x16fc] ss:$12 sps:$4 sm:$0xff]  }
 0x2bc   :  { %5967 = vmatpush1.bf16.msra.mxu0 %v9331_v11  ;;  %8286 = vmatprep.subr.bf16.mxu1 %v9339_v28  ;;  %v9392_v11 = vld [vmem:[%s12250_s1 + $0x1698] ss:$12 sps:$4 sm:$0xff]   ;;  %v9401_v28 = vld [vmem:[%s12250_s1 + $0x16e0] ss:$12 sps:$4 sm:$0xff]  }
 0x2bd   :  { %5968 = vmatprep.subr.bf16.mxu0 %v9338_v50  ;;  %v9403_v50 = vld [vmem:[%s12250_s1 + $0x16e4] ss:$12 sps:$4 sm:$0xff]  }
 0x2bf   :  { %8287 = vmatpush3.bf16.msra.mxu1 %v9340_v32 }
 0x2c0   :  { %5969 = vmatpush1.bf16.msra.mxu0 %v9336_v30  ;;  %v9409_v30 = vld [vmem:[%s12250_s1 + $0x1714] ss:$12 sps:$4 sm:$0xff]  }
 0x2c1   :  { %5979 = vmatprep.subr.bf16.mxu0 %v9343_v53 }
 0x2c2   :  { %6694 = vmatmul.mubr.bf16.vlgmr.msra.gmra.mrb[64].mxu1 %v11926_v36 }
 0x2c3   :  { %5971 = vmatmul.mubr.bf16.vlgmr.msra.gmra.mrb[0].mxu0 %v11712_v62  ;;  %v9352_v62 = vld [vmem:[%s12250_s1 + $0x154c] ss:$12 sps:$4 sm:$0xff]  }
 0x2c4   :  { %5980 = vmatpush1.bf16.msra.mxu0 %v9341_v20  ;;  %6011 = vmatprep.mubr.bf16.mxu0 %v11727_v12  ;;  %v9350_v12 = vld [vmem:[%s12250_s1 + $0x1548] ss:$12 sps:$4 sm:$0xff]  }
 0x2c5   :  { %5981 = vmatprep.subr.bf16.mxu0 %v9346_v37  ;;  %v9407_v37 = vld [vmem:[%s12250_s1 + $0x1710] ss:$12 sps:$4 sm:$0xff]  }
 0x2c8   :  { %5982 = vmatpush1.bf16.msra.mxu0 %v9344_v57 }
 0x2c9   :  { %5983 = vmatprep.subr.bf16.mxu0 %v9349_v38  ;;  %v9412_v38 = vld [vmem:[%s12250_s1 + $0x172c] ss:$12 sps:$4 sm:$0xff]  }
 0x2cc   :  { %5984 = vmatpush1.bf16.msra.mxu0 %v9347_v39 }
 0x2cd   :  { %5985 = vmatprep.subr.bf16.mxu0 %v9352_v62 }
 0x2d0   :  { %5986 = vmatpush1.bf16.msra.mxu0 %v9350_v12  ;;  %v9410_v12 = vld [vmem:[%s12250_s1 + $0x1728] ss:$12 sps:$4 sm:$0xff]  }
 0x2d1   :  { %5987 = vmatprep.subr.bf16.mxu0 %v9355_v56  ;;  %v9415_v56 = vld [vmem:[%s12250_s1 + $0x1744] ss:$12 sps:$4 sm:$0xff]  }
 0x2d4   :  { %5988 = vmatpush1.bf16.msra.mxu0 %v9353_v42  ;;  %v9413_v42 = vld [vmem:[%s12250_s1 + $0x1740] ss:$12 sps:$4 sm:$0xff]  }
 0x2d5   :  { %5989 = vmatprep.subr.bf16.mxu0 %v9358_v19  ;;  %v8156_v47 = vpop.f32.mrb[40].mxu1  ;;  %v9437_v19 = vld [vmem:[%s12254_s5 + $0x40] sm:$0xff]  }
 0x2d6   :  { %v8157_v15 = vpop.f32.mrb[41].mxu1  ;;  %8294 = vmatprep.subr.bf16.mxu1 %v9437_v19 }
 0x2d7   :  { %v8158_v58 = vadd.f32 %v8157_v15, %v8156_v47  ;;  %v8159_v49 = vpop.f32.mrb[42].mxu1  ;;  %v9418_v47 = vld [vmem:[%s12250_s1 + $0x175c] ss:$12 sps:$4 sm:$0xff]  }
 0x2d8   :  { %5990 = vmatpush1.bf16.msra.mxu0 %v9356_v34  ;;  %v8160_v46 = vpop.f32.mrb[43].mxu1  ;;  %v9438_v34 = vld [vmem:[%s12254_s5] sm:$0xff]   ;;  %v9440_v15 = vld [vmem:[%s12254_s5 + $0x8] sm:$0xff]  }
 0x2d9   :  { %5991 = vmatprep.subr.bf16.mxu0 %v9361_v44  ;;  %v6456_v40 = vadd.f32 %v8158_v58, %v6416_v29  ;;  %v9404_v29 = vld [vmem:[%s12250_s1 + $0x16f8] ss:$12 sps:$4 sm:$0xff]   ;;  %v9439_v44 = vld [vmem:[%s12254_s5 + $0x48] sm:$0xff]   ;;  %8295 = vmatpush3.bf16.msra.mxu1 %v9438_v34  ;;  %v9421_v49 = vld [vmem:[%s12250_s1 + $0x1774] ss:$12 sps:$4 sm:$0xff]  }
 0x2da   :  { %v9416_v58 = vld [vmem:[%s12250_s1 + $0x1758] ss:$12 sps:$4 sm:$0xff]   ;;  %8296 = vmatprep.subr.bf16.mxu1 %v9439_v44  ;;  %v9419_v46 = vld [vmem:[%s12250_s1 + $0x1770] ss:$12 sps:$4 sm:$0xff]  }
 0x2dc   :  { %5992 = vmatpush1.bf16.msra.mxu0 %v9359_v24  ;;  %v9441_v24 = vld [vmem:[%s12254_s5 + $0x50] sm:$0xff]  }
 0x2dd   :  { %5993 = vmatprep.subr.bf16.mxu0 %v9364_v63  ;;  %8297 = vmatpush3.bf16.msra.mxu1 %v9440_v15  ;;  %v9442_v63 = vld [vmem:[%s12254_s5 + $0x10] sm:$0xff]   ;;  %v6724_v15 = vld [vmem:[%s12253_s4] sm:$0x7] }
 0x2de   :  { %8298 = vmatprep.subr.bf16.mxu1 %v9441_v24 }
 0x2e0   :  { %5994 = vmatpush1.bf16.msra.mxu0 %v9362_v52  ;;  %v9424_v52 = vld [vmem:[%s12250_s1 + $0x178c] ss:$12 sps:$4 sm:$0xff]  }
 0x2e1   :  { %5995 = vmatprep.subr.bf16.mxu0 %v9367_v54  ;;  %8299 = vmatpush3.bf16.msra.mxu1 %v9442_v63  ;;  %v9444_v54 = vld [vmem:[%s12254_s5 + $0x18] sm:$0xff]   ;;  %v6737_v63 = vrot.slane %v6724_v15, %v11111_v16 }
 0x2e4   :  { %5996 = vmatpush1.bf16.msra.mxu0 %v9365_v55  ;;  %v9422_v55 = vld [vmem:[%s12250_s1 + $0x1788] ss:$12 sps:$4 sm:$0xff]  }
 0x2e5   :  { %5997 = vmatprep.subr.bf16.mxu0 %v9370_v14  ;;  %v9445_v14 = vld [vmem:[%s12254_s5 + $0x60] sm:$0xff]  }
 0x2e8   :  { %5998 = vmatpush1.bf16.msra.mxu0 %v9368_v59  ;;  %v9427_v59 = vld [vmem:[%s12250_s1 + $0x17a4] ss:$12 sps:$4 sm:$0xff]  }
 0x2e9   :  { %5999 = vmatprep.subr.bf16.mxu0 %v9373_v60  ;;  %v9446_v60 = vld [vmem:[%s12254_s5 + $0x20] sm:$0xff]  }
 0x2ec   :  { %6000 = vmatpush1.bf16.msra.mxu0 %v9371_v5  ;;  %v9425_v5 = vld [vmem:[%s12250_s1 + $0x17a0] ss:$12 sps:$4 sm:$0xff]  }
 0x2ed   :  { %6001 = vmatprep.subr.bf16.mxu0 %v9376_v33  ;;  %v9430_v33 = vld [vmem:[%s12250_s1 + $0x17bc] ss:$12 sps:$4 sm:$0xff]  }
 0x2f0   :  { %6002 = vmatpush1.bf16.msra.mxu0 %v9374_v27  ;;  %v9428_v27 = vld [vmem:[%s12250_s1 + $0x17b8] ss:$12 sps:$4 sm:$0xff]  }
 0x2f1   :  { %6003 = vmatprep.subr.bf16.mxu0 %v9379_v61  ;;  %v9433_v61 = vld [vmem:[%s12250_s1 + $0x17d4] ss:$12 sps:$4 sm:$0xff]  }
 0x2f4   :  { %6004 = vmatpush1.bf16.msra.mxu0 %v9377_v0 }
 0x2f5   :  { %6005 = vmatprep.subr.bf16.mxu0 %v9382_v1  ;;  %v8178_v31 = vpop.f32.mrb[44].mxu1 }
 0x2f6   :  { %v8179_v8 = vpop.f32.mrb[45].mxu1 }
 0x2f7   :  { %v8180_v35 = vadd.f32 %v8179_v8, %v8178_v31  ;;  %v8181_v10 = vpop.f32.mrb[46].mxu1  ;;  %v9436_v8 = vld [vmem:[%s12250_s1 + $0x17ec] ss:$12 sps:$4 sm:$0xff]  }
 0x2f8   :  { %6006 = vmatpush1.bf16.msra.mxu0 %v9380_v2  ;;  %v8182_v13 = vpop.f32.mrb[47].mxu1  ;;  %v9434_v10 = vld [vmem:[%s12250_s1 + $0x17e8] ss:$12 sps:$4 sm:$0xff]  }
 0x2f9   :  { %6007 = vmatprep.subr.bf16.mxu0 %v9385_v6  ;;  %v6496_v17 = vadd.f32 %v8180_v35, %v6456_v40  ;;  %v9443_v40 = vld [vmem:[%s12254_s5 + $0x58] sm:$0xff]  }
 0x2fa   :  { %8300 = vmatprep.subr.bf16.mxu1 %v9443_v40  ;;  %v9431_v6 = vld [vmem:[%s12250_s1 + $0x17d0] ss:$12 sps:$4 sm:$0xff]  }
 0x2fb   :  { %8301 = vmatpush3.bf16.msra.mxu1 %v9444_v54 }
 0x2fc   :  { %6008 = vmatpush1.bf16.msra.mxu0 %v9383_v9  ;;  %8302 = vmatprep.subr.bf16.mxu1 %v9445_v14 }
 0x2fd   :  { %6009 = vmatprep.subr.bf16.mxu0 %v9388_v41 }
 0x2ff   :  { %8303 = vmatpush3.bf16.msra.mxu1 %v9446_v60 }
 0x300   :  { %6010 = vmatpush1.bf16.msra.mxu0 %v9386_v18 }
 0x301   :  { %6020 = vmatprep.subr.bf16.mxu0 %v9391_v21 }
 0x303   :  { %6012 = vmatmul.mubr.bf16.vlgmr.msra.gmra.mrb[0].mxu0 %v11822_v3  ;;  %v9400_v3 = vld [vmem:[%s12250_s1 + $0x16cc] ss:$12 sps:$4 sm:$0xff]  }
 0x304   :  { %6021 = vmatpush1.bf16.msra.mxu0 %v9389_v22  ;;  %6052 = vmatprep.mubr.bf16.mxu0 %v11838_v43  ;;  %v9398_v43 = vld [vmem:[%s12250_s1 + $0x16c8] ss:$12 sps:$4 sm:$0xff]  }
 0x305   :  { %6022 = vmatprep.subr.bf16.mxu0 %v9394_v23 }
 0x308   :  { %6023 = vmatpush1.bf16.msra.mxu0 %v9392_v11 }
 0x309   :  { %6024 = vmatprep.subr.bf16.mxu0 %v9397_v25 }
 0x30c   :  { %6025 = vmatpush1.bf16.msra.mxu0 %v9395_v26 }
 0x30d   :  { %6026 = vmatprep.subr.bf16.mxu0 %v9400_v3 }
 0x310   :  { %6027 = vmatpush1.bf16.msra.mxu0 %v9398_v43 }
 0x311   :  { %6028 = vmatprep.subr.bf16.mxu0 %v9403_v50  ;;  %v9447_v50 = vld [vmem:[%s12254_s5 + $0x68] sm:$0xff]  }
 0x312   :  { %8304 = vmatprep.subr.bf16.mxu1 %v9447_v50  ;;  %v9457_v50 = vld [vmem:[%s12254_s5 + $0xa0] sm:$0xff]  }
 0x314   :  { %6029 = vmatpush1.bf16.msra.mxu0 %v9401_v28 }
 0x315   :  { %6030 = vmatprep.subr.bf16.mxu0 %v9406_v48  ;;  %v8200_v32 = vpop.f32.mrb[48].mxu1 }
 0x316   :  { %v8201_v53 = vpop.f32.mrb[49].mxu1 }
 0x317   :  { %v8202_v20 = vadd.f32 %v8201_v53, %v8200_v32  ;;  %v8203_v57 = vpop.f32.mrb[50].mxu1  ;;  %v9450_v53 = vld [vmem:[%s12254_s5 + $0x30] sm:$0xff]  }
 0x318   :  { %6031 = vmatpush1.bf16.msra.mxu0 %v9404_v29  ;;  %v8204_v39 = vpop.f32.mrb[51].mxu1  ;;  %v9451_v57 = vld [vmem:[%s12254_s5 + $0x78] sm:$0xff]  }
 0x319   :  { %6032 = vmatprep.subr.bf16.mxu0 %v9409_v30  ;;  %v6536_v62 = vadd.f32 %v8202_v20, %v6496_v17  ;;  %v9449_v30 = vld [vmem:[%s12254_s5 + $0x70] sm:$0xff]   ;;  %v9487_v39 = vmov 0.0  }
 0x31c   :  { %6033 = vmatpush1.bf16.msra.mxu0 %v9407_v37 }
 0x31d   :  { %6034 = vmatprep.subr.bf16.mxu0 %v9412_v38  ;;  %v9452_v38 = vld [vmem:[%s12254_s5 + $0x38] sm:$0xff]  }
 0x320   :  { %6035 = vmatpush1.bf16.msra.mxu0 %v9410_v12  ;;  %v1068_v12 = vsub.s32 1, %v9671_v45 }
 0x321   :  { %6036 = vmatprep.subr.bf16.mxu0 %v9415_v56  ;;  %v6704_v56 = vld [vmem:[%s12252_s3] sm:$0x7] }
 0x322   :  { %v6713_v14 = vrot.slane %v6704_v56, %v1068_v12 }
 0x324   :  { %6037 = vmatpush1.bf16.msra.mxu0 %v9413_v42  ;;  %v9461_v42 = vld [vmem:[%s12251_s2] sm:$0x7] }
 0x325   :  { %6038 = vmatprep.subr.bf16.mxu0 %v9418_v47  ;;  %v1069_v34 = vrot.slane %v9461_v42, %v1068_v12  ;;  %v6717_v47 = vrot.slane %v6704_v56, %v11111_v16 }
 0x328   :  { %6039 = vmatpush1.bf16.msra.mxu0 %v9416_v58 }
 0x329   :  { %6040 = vmatprep.subr.bf16.mxu0 %v9421_v49 }
 0x32c   :  { %6041 = vmatpush1.bf16.msra.mxu0 %v9419_v46 }
 0x32d   :  { %6042 = vmatprep.subr.bf16.mxu0 %v9424_v52 }
 0x330   :  { %6043 = vmatpush1.bf16.msra.mxu0 %v9422_v55 }
 0x331   :  { %6044 = vmatprep.subr.bf16.mxu0 %v9427_v59 }
 0x334   :  { %6045 = vmatpush1.bf16.msra.mxu0 %v9425_v5 }
 0x335   :  { %6046 = vmatprep.subr.bf16.mxu0 %v9430_v33  ;;  %v8222_v0 = vpop.f32.mrb[52].mxu1 }
 0x336   :  { %v8223_v1 = vpop.f32.mrb[53].mxu1 }
 0x337   :  { %v8224_v2 = vadd.f32 %v8223_v1, %v8222_v0  ;;  %v8225_v31 = vpop.f32.mrb[54].mxu1 }
 0x338   :  { %6047 = vmatpush1.bf16.msra.mxu0 %v9428_v27  ;;  %v8226_v35 = vpop.f32.mrb[55].mxu1 }
 0x339   :  { %6048 = vmatprep.subr.bf16.mxu0 %v9433_v61  ;;  %v6576_v9 = vadd.f32 %v8224_v2, %v6536_v62  ;;  %v1064_v62 = vsub.s32 0, %v9671_v45  ;;  %v8347_v45 = vadd.f32 %v10926_v7, %v1069_v34 }
 0x33b   :  { %v1065_v19 = vrot.slane %v9461_v42, %v1064_v62  ;;  %v6709_v40 = vrot.slane %v6704_v56, %v1064_v62  ;;  %v6729_v33 = vrot.slane %v6724_v15, %v1064_v62 }
 0x33c   :  { %6049 = vmatpush1.bf16.msra.mxu0 %v9431_v6 }
 0x33d   :  { %6050 = vmatprep.subr.bf16.mxu0 %v9436_v8  ;;  %v8345_v58 = vadd.f32 %v10921_v4, %v1065_v19  ;;  %v6733_v4 = vrot.slane %v6724_v15, %v1068_v12 }
 0x340   :  { %6051 = vmatpush1.bf16.msra.mxu0 %v9434_v10 }
 0x343   :  { %6053 = vmatmul.mubr.bf16.vlgmr.msra.gmra.mrb[0].mxu0 %v11926_v36  ;;  %v9448_v36 = vld [vmem:[%s12254_s5 + $0x28] sm:$0xff]  }
 0x344   :  { %8305 = vmatpush3.bf16.msra.mxu1 %v9448_v36  ;;  %v9458_v36 = vld [vmem:[%s12254_s5 + $0xa8] sm:$0xff]  }
 0x345   :  { %8306 = vmatprep.subr.bf16.mxu1 %v9449_v30 }
 0x348   :  { %8307 = vmatpush3.bf16.msra.mxu1 %v9450_v53 }
 0x349   :  { %8308 = vmatprep.subr.bf16.mxu1 %v9451_v57 }
 0x34c   :  { %8309 = vmatpush3.bf16.msra.mxu1 %v9452_v38 }
 0x34d   :  { %8325 = vmatprep.subr.bf16.mxu1 %v9487_v39 }
 0x355   :  { %v8244_v41 = vpop.f32.mrb[56].mxu1 }
 0x356   :  { %v8245_v13 = vpop.f32.mrb[57].mxu1 }
 0x357   :  { %v8246_v17 = vadd.f32 %v8245_v13, %v8244_v41  ;;  %v8247_v18 = vpop.f32.mrb[58].mxu1 }
 0x358   :  { %v8248_v21 = vpop.f32.mrb[59].mxu1 }
 0x359   :  { %v6616_v22 = vadd.f32 %v8246_v17, %v6576_v9 }
 0x375   :  { %v8266_v23 = vpop.f32.mrb[60].mxu1 }
 0x376   :  { %v8267_v11 = vpop.f32.mrb[61].mxu1 }
 0x377   :  { %v8268_v25 = vadd.f32 %v8267_v11, %v8266_v23  ;;  %v8269_v26 = vpop.f32.mrb[62].mxu1 }
 0x378   :  { %v8270_v3 = vpop.f32.mrb[63].mxu1  ;;  %v9454_v26 = vld [vmem:[%s12254_s5 + $0x88] sm:$0xff]  }
 0x379   :  { %v6656_v43 = vadd.f32 %v8268_v25, %v6616_v22  ;;  %v9453_v22 = vld [vmem:[%s12254_s5 + $0x80] sm:$0xff]  }
 0x395   :  { %v8288_v28 = vpop.f32.mrb[64].mxu1 }
 0x396   :  { %v8289_v48 = vpop.f32.mrb[65].mxu1 }
 0x397   :  { %v8290_v29 = vadd.f32 %v8289_v48, %v8288_v28  ;;  %v8291_v32 = vpop.f32.mrb[66].mxu1  ;;  %v9459_v28 = vld [vmem:[%s12254_s5 + $0xb0] sm:$0xff]   ;;  %v9460_v48 = vld [vmem:[%s12254_s5 + $0xb8] sm:$0xff]  }
 0x398   :  { %v8292_v20 = vpop.f32.mrb[67].mxu1 }
 0x399   :  { %v6696_v37 = vadd.f32 %v8290_v29, %v6656_v43  ;;  %v9456_v43 = vld [vmem:[%s12254_s5 + $0x98] sm:$0xff]  }
 0x39b   :  { %v6703_v44 = vmax.f32 %v6696_v37, 0.0  ;;  %v7028_v54 = vpack.c.bf16 %v6696_v37, %v6696_v37  ;;  %v7911_v37 = vld [vmem:[%s12255_s6] ss:$0 sm:$0xff] }
 0x39d   :  { %v6723_v24 = vmul.f32 %v6717_v47, %v6703_v44  ;;  %v7059_v60 = vpack.c.bf16 %v6703_v44, %v6703_v44  ;;  %v7046_v2 = vrot.slane %v7028_v54, %v9686_v51 }
 0x39f   :  { %v6743_v1 = vadd.f32 %v6737_v63, %v6723_v24  ;;  %v7077_v8 = vrot.slane %v7059_v60, %v9686_v51 }
 0x3a1   :  { %v6746_v13 = vpack.c.bf16 %v6743_v1, %v6743_v1 }
 0x3a3   :  { %v7105_v25 = vrot.slane %v6746_v13, %v9686_v51 }
 0x416   :  { %v6054_v49 = vpop.f32.mrb[0].mxu0 }
 0x417   :  { %v8346_v46 = vadd.f32 %v8345_v58, %v6054_v49  ;;  %v6056_v52 = vpop.f32.mrb[1].mxu0 }
 0x418   :  { %v8348_v55 = vadd.f32 %v8347_v45, %v6056_v52  ;;  %v6058_v59 = vpop.f32.mrb[2].mxu0 }
 0x419   :  { %v6701_v5 = vmax.f32 %v8346_v46, 0.0  ;;  %v6059_v27 = vpop.f32.mrb[3].mxu0 }
 0x41a   :  { %v6702_v61 = vmax.f32 %v8348_v55, 0.0  ;;  %v7936_v0 = vpack.c.bf16 %v8348_v55, %v8346_v46 }
 0x41b   :  { %v6721_v7 = vmul.f32 %v6709_v40, %v6701_v5 }
 0x41c   :  { %v6722_v6 = vmul.f32 %v6713_v14, %v6702_v61  ;;  %v7039_v16 = vrot.slane %v7936_v0, %v9686_v51  ;;  %v7938_v31 = vpack.c.bf16 %v6702_v61, %v6701_v5 }
 0x41d   :  { %v6741_v35 = vadd.f32 %v6729_v33, %v6721_v7 }
 0x41e   :  { %v7047_v9 = vcombine.low %v7039_v16, %v7046_v2  ;;  %v7070_v10 = vrot.slane %v7938_v31, %v9686_v51  ;;  %v6742_v41 = vadd.f32 %v6733_v4, %v6722_v6 }
 0x41f   :  { %v6744_v23 = vpack.c.bf16 %v6741_v35, %v6741_v35 }
 0x420   :  { %7937 = vst.sshfl [vmem:[%s12256_s7] sm:$0x15 pattern:$0x73625140] %v7047_v9  ;;  %v7078_v17 = vcombine.low %v7070_v10, %v7077_v8  ;;  %v6745_v18 = vpack.c.bf16 %v6742_v41, %v6742_v41  ;;  %v7940_v21 = vpack.c.bf16 %v6742_v41, %v6741_v35 }
 0x422   :  { %7939 = vst.sshfl [vmem:[%s12257_s8] sm:$0x15 pattern:$0x73625140] %v7078_v17  ;;  %6978 = vmatprep.mubr.bf16.mxu1 %v6745_v18  ;;  %v7098_v11 = vrot.slane %v7940_v21, %v9686_v51  ;;  %v9455_v51 = vld [vmem:[%s12254_s5 + $0x90] sm:$0xff]   ;;  %s9462_s5 = scalar_lea.vmem %s7130_s0, 32 }
 0x423   :  { %6979 = vmatmul.mubr.bf16.vlgmr.msra.gmra.mrb[68].mxu1 %v6744_v23  ;;  %p9463_p0 = scmp.ne.s32.totalorder %s7130_s0, %s9462_s5  ;;  %p9468_p2 = scmp.lt.s32.totalorder %s9462_s5, %s9462_s5 }
 0x424   :  { %8326 = vmatpush3.bf16.msra.mxu1 %v9453_v22  ;;  %8341 = vmatprep.mubr.msk.bf16.mxu1 %vm9488_vm0, %v9487_v39  ;;  %v7106_v3 = vcombine.low %v7098_v11, %v7105_v25 }
 0x425   :  { %8327 = vmatprep.subr.bf16.mxu1 %v9487_v39  ;;  %p9469_p3 = por %p9468_p2, %p9467_p1 }
 0x426   :  { %7941 = vst.sshfl [vmem:[%s12258_s9] sm:$0x15 pattern:$0x73625140] %v7106_v3 }
 0x427   :  { %p9470_p4 = pnand %p9469_p3, %p9463_p0 }
 0x428   :  { %8328 = vmatpush3.bf16.msra.mxu1 %v9454_v26 }
 0x429   :  { %8329 = vmatprep.subr.bf16.mxu1 %v9487_v39 }
 0x42c   :  { %8330 = vmatpush3.bf16.msra.mxu1 %v9455_v51 }
 0x42d   :  { %8331 = vmatprep.subr.bf16.mxu1 %v9487_v39 }
 0x430   :  { %8332 = vmatpush3.bf16.msra.mxu1 %v9456_v43 }
 0x431   :  { %8333 = vmatprep.subr.bf16.mxu1 %v9487_v39 }
 0x434   :  { %8334 = vmatpush3.bf16.msra.mxu1 %v9457_v50 }
 0x435   :  { %8335 = vmatprep.subr.bf16.mxu1 %v9487_v39 }
 0x438   :  { %8336 = vmatpush3.bf16.msra.mxu1 %v9458_v36 }
 0x439   :  { %8337 = vmatprep.subr.bf16.mxu1 %v9487_v39 }
 0x43c   :  { %8338 = vmatpush3.bf16.msra.mxu1 %v9459_v28 }
 0x43d   :  { %8339 = vmatprep.subr.bf16.mxu1 %v9487_v39 }
 0x440   :  { %8340 = vmatpush3.bf16.msra.mxu1 %v9460_v48 }
 0x443   :  { %8342 = vmatmul.mubr.bf16.vlgmr.msra.gmra.mrb[72].mxu1 %v6746_v13 }
 0x4f6   :  { %v8310_v29 = vpop.f32.mrb[68].mxu1 }
 0x4f7   :  { %v8311_v30 = vpop.f32.mrb[69].mxu1 }
 0x4f8   :  { %v8312_v32 = vadd.f32 %v8311_v30, %v8310_v29  ;;  %v8313_v53 = vpop.f32.mrb[70].mxu1 }
 0x4f9   :  { %v8314_v20 = vpop.f32.mrb[71].mxu1 }
 0x4fa   :  { %v6981_v57 = vadd.f32 %v8312_v32, %v7911_v37 }
 0x516   :  { %v7020_v38 = vpop.f32.mrb[72].mxu1 }
 0x517   :  { %v7021_v62 = vadd.f32 %v7020_v38, %v6981_v57  ;;  %v8343_v12 = vpop.f32.mrb[73].mxu1 }
 0x518   :  { %v7023_v56 = vpop.f32.mrb[74].mxu1 }
 0x519   :  { %7116 = vst [vmem:[#allocation2] sm:$0x3] %v7021_v62  ;;  %v8344_v39 = vpop.f32.mrb[75].mxu1 }
 0x51a   :  { %9473 = shalt.err (!%p9470_p4)
}
 0x51b   :  { %s9474_s6 = scalar_lea.hbm %s12259_s10, 32 }
 0x51c   :  { %p9475_p5 = scmp.ne.s32.totalorder %s12259_s10, %s9474_s6  ;;  %p9478_p6 = scmp.lt.u32.totalorder %s9474_s6, %s12259_s10 }
 0x51e   :  { %p9480_p7 = pnand %p9478_p6, %p9475_p5 }
 0x520   :  { %9483 = shalt.err (!%p9480_p7)
}
 0x521   :  { %7132 = dma.vmem_to_hbm [thread:$0]  %s7130_s0, 32, %s12259_s10, [#allocation3]  }
 0x522   :  { %9484 = dma.done.wait [#allocation3], 32  }
 0x523   :  { %9485 = vsyncadd [#allocation3], 4294967264 }
 0x524   :  { %7142 = vsyncpa [#allocation3], 1 }

</bundles_post_ra>
